<compile_context>
chip_gen: v7x
topology: tpu7x:2x2x1
jax: 0.10.0
libtpu: 0.0.40
codegen_flags: <defaults>
</compile_context>

<pallas_src>
from functools import partial

import numpy as np
import jax
import jax.numpy as jnp
from jax.experimental import pallas as pl
from jax.experimental.pallas import tpu as pltpu

F32 = jnp.float32
OUT_W = 128   # lane-dense output slab width


# ----------------------------------------------------------------------------- helpers
def _dot(a, b):
    """a @ b with f32 accumulation (standard (1,0) contraction) -> MXU."""
    return jax.lax.dot_general(a, b, (((1,), (0,)), ((), ())),
                               preferred_element_type=jnp.float32)


def _dot_nt(a, b):
    """a @ b.T: contract last dim of both operands (no transpose materialized)."""
    return jax.lax.dot_general(a, b, (((1,), (1,)), ((), ())),
                               preferred_element_type=jnp.float32)


def _relu(x):
    return jnp.maximum(x, 0.0)


def _rup8(n):
    return ((n + 7) // 8) * 8


class _SlabPacker:
    """Pack many [r, c<=width] f32 arrays into one lane-dense [rows, width] slab.
    Every segment starts at an 8-aligned sublane offset so in-kernel static slices are
    cheap, aligned loads. layout[name] = (row_offset, rows, cols)."""

    def __init__(self, width):
        self.width = width
        self._row = 0
        self.layout = {}
        self._items = []

    def add(self, name, arr):
        arr = np.asarray(arr, dtype=np.float32)
        assert arr.ndim == 2 and arr.shape[1] <= self.width, (name, arr.shape)
        self.layout[name] = (self._row, arr.shape[0], arr.shape[1])
        self._items.append((self._row, arr))
        self._row += _rup8(arr.shape[0])

    def build(self):
        slab = np.zeros((_rup8(self._row), self.width), np.float32)
        for off, arr in self._items:
            slab[off:off + arr.shape[0], :arr.shape[1]] = arr
        return jnp.asarray(slab)


# ----------------------------------------------------------------------------- fused kernel
def fused_graspsamplenet_kernel(pc_ref, w128_ref, w512_ref, out_ref,
                                *, L128, L512, S, K, C):
    def g128(name):
        off, r, c = L128[name]
        return w128_ref[off:off + r, 0:c]

    def g512(name):
        off, r, c = L512[name]
        return w512_ref[off:off + r, 0:c]

    N = pc_ref.shape[0]
    pc = pc_ref[...]                                                      # [N, 3]
    # Augmented pc [pc | ||pc||^2]: feeds the encoder (4th weight row is zero) and the
    # rank-preserving distance matmul in one shared operand.
    pc_aug = jnp.concatenate(
        [pc, jnp.sum(pc * pc, axis=1, keepdims=True)], axis=1)           # [N, 4]

    # ---- EXTRACT FEATURES (encoder stand-in): pointwise MLP 3->64->C + global max-pool
    h = _relu(_dot(pc_aug, g128("enc_w1p")) + g128("enc_b1"))            # [N, 64]
    point_feat = _relu(_dot(h, g128("enc_w2")) + g128("enc_b2"))         # [N, C]
    global_feat = jnp.max(point_feat, axis=0, keepdims=True)             # [1, C]

    # ---- SAMPLE POINTS (sampler stand-in): per-sample linear on global feature + tanh.
    # Block-diagonal extraction full[s, 3s+d] via static mask + static [3S,3] projection.
    gf_b = jnp.broadcast_to(global_feat, (S, C))                         # [S, C]
    full = _dot(gf_b, g128("smp_w")) + g128("smp_b")                     # [S, 3S]
    sampled = jnp.tanh(_dot(full * g128("bd_mask"), g128("p3")))         # [S, 3]

    # ---- GENERATE FEATURES FOR SAMPLED POINTS (compute_neigh_features, in-kernel).
    # Ranking key = 2*<y,x> - ||x||^2 (per-row-constant ||y||^2 and sqrt dropped: only the
    # top-k ordering is needed). Single matmul on the augmented operands.
    sampled_aug = jnp.concatenate(
        [2.0 * sampled, -jnp.ones((S, 1), F32)], axis=1)                 # [S, 4]
    score_mat = _dot_nt(sampled_aug, pc_aug)                             # [S, N]

    # serial K-nearest selection (exact max-then-min tie-break); gathers deferred
    col_f = g128("col_f")                                                # [S, N] float iota
    sel_cols = []
    for _k in range(K):
        row_max = jnp.max(score_mat, axis=1, keepdims=True)              # [S, 1]
        cand = jnp.where(score_mat >= row_max, col_f, jnp.float32(N))    # tie-break: low idx
        sel_col = jnp.min(cand, axis=1, keepdims=True)                   # [S, 1]
        sel_cols.append(sel_col)
        score_mat = jnp.where(col_f == sel_col, -1e30, score_mat)        # mask selected

    # one stacked one-hot + ONE MXU gather for all K neighbours
    sel_stack = jnp.concatenate(sel_cols, axis=0)                        # [K*S, 1]
    onehot = (g128("col_ks") == sel_stack).astype(F32)                   # [K*S, N]
    gathered = _dot(onehot, point_feat)                                  # [K*S, C]
    gf_flat = jnp.concatenate(
        [gathered[k * S:(k + 1) * S, :] for k in range(K)], axis=1)      # [S, K*C] k-major

    # ---- GENERATE THE FINAL GRASP (PosePredictBatch, w_avg aggregator, heads merged)
    agg = _relu(_dot(gf_flat, g128("gp_wagg")) + g128("gp_bagg"))        # [S, C]
    f = _relu(_dot(agg, g128("gp_w1")) + g128("gp_b1"))                  # [S, C]
    hh = _relu(_dot(f, g512("gp_wh1")) + g512("gp_bh1"))                 # [S, 512] = sc|angle
    to_expand = jnp.tanh(_dot(hh, g128("gp_wh2")) + g128("gp_bh2"))      # [S, 4]

    # ---- ContactAngleFeat depth=2 (eval path: in_dim=4 = second_contact|angle)
    c1 = _relu(_dot(to_expand, g128("caf_w1")) + g128("caf_b1"))         # [S, 64]
    caf = _relu(_dot(c1, g128("caf_w2")) + g128("caf_b2"))               # [S, C]

    # ---- CLASSIFY THE GRASP. caf tiling folded into the aggregator by distributivity:
    # relu((gf_flat + tile_K(caf)) @ W + b) == relu(gf_flat @ W + caf @ W_sum + b)
    agg2 = _relu(_dot(gf_flat, g128("gc_wagg"))
                 + _dot(caf, g128("gc_wagg_sum")) + g128("gc_bagg"))     # [S, C]
    f2 = _relu(_dot(agg2, g512("gc_w1")) + g512("gc_b1"))                # [S, 512]
    s2 = _relu(_dot(f2, g512("gc_ws1")) + g512("gc_bs1"))                # [S, 256]
    z = _dot(s2, g128("gc_ws2")) + g128("gc_bs2")                        # [S, 1]
    score = 1.0 / (1.0 + jnp.exp(-z))                                    # exact sigmoid

    # ---- single lane-dense output slab via ONE placement matmul:
    # cols 0:3 contact1 | 3:6 second_contact | 6:7 angle | 7:8 score | rest zero
    small = jnp.concatenate([sampled, to_expand, score], axis=1)         # [S, 8]
    out_ref[...] = _dot(small, g128("proj"))                             # [S, OUT_W]


# ----------------------------------------------------------------------------- params
def make_params(key, *, S, K, C, N):
    keys = iter(jax.random.split(key, 64))

    def w(shape, scale=0.1):
        return (scale * jax.random.normal(next(keys), shape)).astype(F32)

    def bias(c):
        return w((1, c), scale=0.01)

    def conv1d_w(cin, cout):
        # torch Conv1d weight [cout, cin, 1] -> [cin, cout]
        wt = w((cout, cin, 1))
        return jnp.transpose(wt[:, :, 0], (1, 0))

    def conv2d_agg_w(cin, cout, k):
        # torch Conv2d weight [cout, cin, 1, k] -> [k*cin, cout] (k-major rows), matching
        # gather_feat[s, k, cin] flattened row-major as [s, k*cin].
        wt = w((cout, cin, 1, k))
        return jnp.transpose(wt[:, :, 0, :], (2, 1, 0)).reshape(k * cin, cout)

    # ---- raw parameters (torch layouts transposed for right-multiplication) ----
    enc_w1, enc_b1 = w((3, 64)), bias(64)                 # stand-in encoder
    enc_w2, enc_b2 = w((64, C)), bias(C)
    smp_w, smp_b = w((C, S * 3)), bias(S * 3)             # stand-in sampler head
    # PosePredictBatch (input_dim=C, point_num=K, w_avg aggregator, use_tanh=True)
    gp_wagg, gp_bagg = conv2d_agg_w(C, C, K), bias(C)
    gp_w1, gp_b1 = conv1d_w(C, C), bias(C)
    gp_wsc1, gp_bsc1 = conv1d_w(C, 256), bias(256)
    gp_wsc2, gp_bsc2 = conv1d_w(256, 3), bias(3)
    gp_wan1, gp_ban1 = conv1d_w(C, 256), bias(256)
    gp_wan2, gp_ban2 = conv1d_w(256, 1), bias(1)
    # merged heads: single [C,512] first layer, block-diagonal [512,4] second layer
    gp_wh1 = jnp.concatenate([gp_wsc1, gp_wan1], axis=1)                 # [C, 512]
    gp_bh1 = jnp.concatenate([gp_bsc1, gp_ban1], axis=1)                 # [1, 512]
    gp_wh2 = (jnp.zeros((512, 4), F32)
              .at[:256, 0:3].set(gp_wsc2)
              .at[256:, 3:4].set(gp_wan2))                               # [512, 4]
    gp_bh2 = jnp.concatenate([gp_bsc2, gp_ban2], axis=1)                 # [1, 4]
    # ContactAngleFeat (in_dim=4, out_dim=C, depth=2)
    caf_w1, caf_b1 = conv1d_w(4, 64), bias(64)
    caf_w2, caf_b2 = conv1d_w(64, C), bias(C)
    # GraspClassifier (input_dim=C, point_num=K, w_avg aggregator)
    gc_wagg, gc_bagg = conv2d_agg_w(C, C, K), bias(C)
    gc_w1, gc_b1 = conv1d_w(C, 512), bias(512)
    gc_ws1, gc_bs1 = conv1d_w(512, 256), bias(256)
    gc_ws2, gc_bs2 = conv1d_w(256, 1), bias(1)

    # caf-distributivity: sum_k gc_wagg[k*C:(k+1)*C, :]  (numerically identical)
    gc_wagg_sum = jnp.reshape(gc_wagg, (K, C, C)).sum(axis=0)            # [C, C]
    # encoder weight padded with a zero 4th input row (so pc_aug feeds it directly)
    enc_w1p = jnp.zeros((4, 64), F32).at[0:3, :].set(enc_w1)

    # ---- static index / mask constants (hoisted out of the traced kernel body) ----
    j = np.arange(3 * S)
    bd_mask = (j[None, :] // 3 == np.arange(S)[:, None]).astype(np.float32)   # [S, 3S]
    p3 = (j[:, None] % 3 == np.arange(3)[None, :]).astype(np.float32)         # [3S, 3]
    col_f = np.tile(np.arange(N, dtype=np.float32)[None, :], (S, 1))          # [S, N]
    col_ks = np.tile(np.arange(N, dtype=np.float32)[None, :], (K * S, 1))     # [K*S, N]
    proj = np.zeros((8, OUT_W), np.float32)
    proj[np.arange(8), np.arange(8)] = 1.0                                    # [8, OUT_W]

    # ---- pack everything into two lane-dense slabs (2 weight DMAs per call) ----
    pk128 = _SlabPacker(128)
    for name, arr in [
        ("enc_w1p", enc_w1p), ("enc_b1", enc_b1), ("enc_w2", enc_w2), ("enc_b2", enc_b2),
        ("smp_w", smp_w), ("smp_b", smp_b), ("bd_mask", bd_mask), ("p3", p3),
        ("col_f", col_f), ("col_ks", col_ks),
        ("gp_wagg", gp_wagg), ("gp_bagg", gp_bagg), ("gp_w1", gp_w1), ("gp_b1", gp_b1),
        ("gp_wh2", gp_wh2), ("gp_bh2", gp_bh2),
        ("caf_w1", caf_w1), ("caf_b1", caf_b1), ("caf_w2", caf_w2), ("caf_b2", caf_b2),
        ("gc_wagg", gc_wagg), ("gc_wagg_sum", gc_wagg_sum), ("gc_bagg", gc_bagg),
        ("gc_ws2", gc_ws2), ("gc_bs2", gc_bs2), ("proj", proj),
    ]:
        pk128.add(name, arr)

    pk512 = _SlabPacker(512)
    for name, arr in [
        ("gp_wh1", gp_wh1), ("gp_bh1", gp_bh1),
        ("gc_w1", gc_w1), ("gc_b1", gc_b1),
        ("gc_ws1", gc_ws1), ("gc_bs1", gc_bs1),
    ]:
        pk512.add(name, arr)

    slabs = {"w128": pk128.build(), "w512": pk512.build()}
    return slabs, pk128.layout, pk512.layout


# ----------------------------------------------------------------------------- forward
def graspsamplenet_forward(slabs, pc, *, L128, L512, S, K, C):
    B, N, _ = pc.shape
    assert L128["col_f"][2] == N, "params were packed for a different N"
    w128, w512 = slabs["w128"], slabs["w512"]

    slab = pl.pallas_call(
        partial(fused_graspsamplenet_kernel, L128=L128, L512=L512, S=S, K=K, C=C),
        out_shape=jax.ShapeDtypeStruct((B, S, OUT_W), F32),
        grid=(B,),
        in_specs=[
            pl.BlockSpec((None, N, 3), lambda b: (b, 0, 0)),       # per-step point cloud
            pl.BlockSpec(w128.shape, lambda b: (0, 0)),            # weights: fetched once,
            pl.BlockSpec(w512.shape, lambda b: (0, 0)),            # VMEM-resident across grid
        ],
        out_specs=pl.BlockSpec((None, S, OUT_W), lambda b: (b, 0, 0)),
        compiler_params=pltpu.CompilerParams(
            dimension_semantics=("parallel",)),                    # megacore-shard the batch
    )(pc, w128, w512)

    first_sampled = slab[:, :, 0:3]                                # [B, S, 3]
    first_generated = first_sampled  # TODO(synk): soft projection of ContactSampleNet not provided
    predicted_grasps = slab[:, :, 0:7]                             # [B, S, 7]
    grasp_scores = slab[:, :, 7:8]                                 # [B, S, 1]
    return (first_generated, first_sampled), predicted_grasps, grasp_scores


# ----------------------------------------------------------------------------- main
if __name__ == "__main__":
    B, N, S, K, C = 2, 64, 16, 8, 128  # batch, points, sampled grasps, neigh_size, feat_dim
    key = jax.random.PRNGKey(0)
    kp, kx = jax.random.split(key)
    slabs, L128, L512 = make_params(kp, S=S, K=K, C=C, N=N)
    pc = jax.random.normal(kx, (B, N, 3), dtype=F32)

    fwd = jax.jit(partial(graspsamplenet_forward, L128=L128, L512=L512, S=S, K=K, C=C))
    (gen, sampled), grasps, scores = fwd(slabs, pc)
    jax.block_until_ready((gen, sampled, grasps, scores))

    assert gen.shape == (B, S, 3) and sampled.shape == (B, S, 3)
    assert grasps.shape == (B, S, 7)
    assert scores.shape == (B, S, 1)
    assert bool(jnp.all(jnp.isfinite(grasps))) and bool(jnp.all(jnp.isfinite(scores)))
    assert bool(jnp.all((scores >= 0.0) & (scores <= 1.0)))
    assert bool(jnp.all(jnp.abs(grasps) <= 1.0 + 1e-6))  # tanh-bounded contacts/angle
    print("KERNEL_OK")
</pallas_src>

<mosaic_0001>
module attributes {stable_mosaic.version = 11 : i64} {
  func.func @fused_graspsamplenet_kernel(%arg0: i32, %arg1: memref<1x64x3xf32, #tpu.memory_space<vmem>>, %arg2: memref<3640x128xf32, #tpu.memory_space<vmem>>, %arg3: memref<792x512xf32, #tpu.memory_space<vmem>>, %arg4: memref<1x16x128xf32, #tpu.memory_space<vmem>>) attributes {dimension_semantics = [#tpu.dimension_semantics<parallel>], iteration_bounds = array<i64: 2>, scalar_prefetch = 0 : i64, scratch_operands = 0 : i64, tpu.core_type = #tpu.core_type<tc>, window_params = [{transform_indices = @transform_0, window_bounds = array<i64: 1, 64, 3>}, {pipeline_mode = #tpu.pipeline_mode<synchronous>, transform_indices = @transform_1, window_bounds = array<i64: 3640, 128>}, {pipeline_mode = #tpu.pipeline_mode<synchronous>, transform_indices = @transform_2, window_bounds = array<i64: 792, 512>}, {transform_indices = @transform_3, window_bounds = array<i64: 1, 16, 128>}]} {
    %c0 = arith.constant 0 : index
    %c0_0 = arith.constant 0 : index
    %c0_1 = arith.constant 0 : index
    %0 = vector.load %arg1[%c0, %c0_0, %c0_1] : memref<1x64x3xf32, #tpu.memory_space<vmem>>, vector<1x64x3xf32>
    %1 = vector.shape_cast %0 : vector<1x64x3xf32> to vector<64x3xf32>
    %2 = arith.mulf %1, %1 : vector<64x3xf32>
    %cst = arith.constant dense<0.000000e+00> : vector<64xf32>
    %3 = vector.multi_reduction <add>, %2, %cst [1] : vector<64x3xf32> to vector<64xf32>
    %4 = vector.shape_cast %3 : vector<64xf32> to vector<64x1xf32>
    %5 = tpu.concatenate %1, %4 in 1 : vector<64x3xf32>, vector<64x1xf32> -> vector<64x4xf32>
    %c0_2 = arith.constant 0 : index
    %c0_3 = arith.constant 0 : index
    %6 = vector.load %arg2[%c0_2, %c0_3] : memref<3640x128xf32, #tpu.memory_space<vmem>>, vector<4x64xf32>
    %cst_4 = arith.constant dense<0.000000e+00> : vector<64x64xf32>
    %7 = tpu.matmul %5, %6, %cst_4 {dimension_numbers = #tpu.dot_dimension_numbers<[1], [0], [0], [1], [0, 0, 1, 1], [], []>} : vector<64x4xf32>, vector<4x64xf32>, vector<64x64xf32> -> vector<64x64xf32>
    %c8 = arith.constant 8 : index
    %c0_5 = arith.constant 0 : index
    %8 = vector.load %arg2[%c8, %c0_5] : memref<3640x128xf32, #tpu.memory_space<vmem>>, vector<1x64xf32>
    %9 = vector.broadcast %8 : vector<1x64xf32> to vector<64x64xf32>
    %10 = arith.addf %7, %9 : vector<64x64xf32>
    %cst_6 = arith.constant 0.000000e+00 : f32
    %11 = vector.broadcast %cst_6 : f32 to vector<64x64xf32>
    %12 = arith.maximumf %10, %11 : vector<64x64xf32>
    %c16 = arith.constant 16 : index
    %c0_7 = arith.constant 0 : index
    %13 = vector.load %arg2[%c16, %c0_7] : memref<3640x128xf32, #tpu.memory_space<vmem>>, vector<64x128xf32>
    %cst_8 = arith.constant dense<0.000000e+00> : vector<64x128xf32>
    %14 = tpu.matmul %12, %13, %cst_8 {dimension_numbers = #tpu.dot_dimension_numbers<[1], [0], [0], [1], [0, 0, 1, 1], [], []>} : vector<64x64xf32>, vector<64x128xf32>, vector<64x128xf32> -> vector<64x128xf32>
    %c80 = arith.constant 80 : index
    %c0_9 = arith.constant 0 : index
    %15 = vector.load %arg2[%c80, %c0_9] : memref<3640x128xf32, #tpu.memory_space<vmem>>, vector<1x128xf32>
    %16 = vector.broadcast %15 : vector<1x128xf32> to vector<64x128xf32>
    %17 = arith.addf %14, %16 : vector<64x128xf32>
    %cst_10 = arith.constant 0.000000e+00 : f32
    %18 = vector.broadcast %cst_10 : f32 to vector<64x128xf32>
    %19 = arith.maximumf %17, %18 : vector<64x128xf32>
    %cst_11 = arith.constant dense<0xFF800000> : vector<128xf32>
    %20 = vector.multi_reduction <maximumf>, %19, %cst_11 [0] : vector<64x128xf32> to vector<128xf32>
    %21 = vector.shape_cast %20 : vector<128xf32> to vector<1x128xf32>
    %22 = vector.shape_cast %21 : vector<1x128xf32> to vector<1x128xf32>
    %23 = vector.broadcast %22 : vector<1x128xf32> to vector<16x128xf32>
    %c88 = arith.constant 88 : index
    %c0_12 = arith.constant 0 : index
    %24 = vector.load %arg2[%c88, %c0_12] : memref<3640x128xf32, #tpu.memory_space<vmem>>, vector<128x48xf32>
    %cst_13 = arith.constant dense<0.000000e+00> : vector<16x48xf32>
    %25 = tpu.matmul %23, %24, %cst_13 {dimension_numbers = #tpu.dot_dimension_numbers<[1], [0], [0], [1], [0, 0, 1, 1], [], []>} : vector<16x128xf32>, vector<128x48xf32>, vector<16x48xf32> -> vector<16x48xf32>
    %c216 = arith.constant 216 : index
    %c0_14 = arith.constant 0 : index
    %26 = vector.load %arg2[%c216, %c0_14] : memref<3640x128xf32, #tpu.memory_space<vmem>>, vector<1x48xf32>
    %27 = vector.broadcast %26 : vector<1x48xf32> to vector<16x48xf32>
    %28 = arith.addf %25, %27 : vector<16x48xf32>
    %c224 = arith.constant 224 : index
    %c0_15 = arith.constant 0 : index
    %29 = vector.load %arg2[%c224, %c0_15] : memref<3640x128xf32, #tpu.memory_space<vmem>>, vector<16x48xf32>
    %30 = arith.mulf %28, %29 : vector<16x48xf32>
    %c240 = arith.constant 240 : index
    %c0_16 = arith.constant 0 : index
    %31 = vector.load %arg2[%c240, %c0_16] : memref<3640x128xf32, #tpu.memory_space<vmem>>, vector<48x3xf32>
    %cst_17 = arith.constant dense<0.000000e+00> : vector<16x3xf32>
    %32 = tpu.matmul %30, %31, %cst_17 {dimension_numbers = #tpu.dot_dimension_numbers<[1], [0], [0], [1], [0, 0, 1, 1], [], []>} : vector<16x48xf32>, vector<48x3xf32>, vector<16x3xf32> -> vector<16x3xf32>
    %33 = math.tanh %32 : vector<16x3xf32>
    %cst_18 = arith.constant 2.000000e+00 : f32
    %34 = vector.broadcast %cst_18 : f32 to vector<16x3xf32>
    %35 = arith.mulf %34, %33 : vector<16x3xf32>
    %cst_19 = arith.constant 1.000000e+00 : f32
    %36 = vector.broadcast %cst_19 : f32 to vector<16x1xf32>
    %cst_20 = arith.constant 0.000000e+00 : f32
    %37 = vector.broadcast %cst_20 : f32 to vector<16x1xf32>
    %38 = arith.subf %37, %36 : vector<16x1xf32>
    %39 = tpu.concatenate %35, %38 in 1 : vector<16x3xf32>, vector<16x1xf32> -> vector<16x4xf32>
    %cst_21 = arith.constant dense<0.000000e+00> : vector<16x64xf32>
    %40 = tpu.matmul %39, %5, %cst_21 {dimension_numbers = #tpu.dot_dimension_numbers<[1], [1], [0], [0], [0, 0, 1, 0], [], []>} : vector<16x4xf32>, vector<64x4xf32>, vector<16x64xf32> -> vector<16x64xf32>
    %c288 = arith.constant 288 : index
    %c0_22 = arith.constant 0 : index
    %41 = vector.load %arg2[%c288, %c0_22] : memref<3640x128xf32, #tpu.memory_space<vmem>>, vector<16x64xf32>
    %cst_23 = arith.constant dense<0xFF800000> : vector<16xf32>
    %42 = vector.multi_reduction <maximumf>, %40, %cst_23 [1] : vector<16x64xf32> to vector<16xf32>
    %43 = vector.shape_cast %42 : vector<16xf32> to vector<16x1xf32>
    %44 = vector.broadcast %43 : vector<16x1xf32> to vector<16x64xf32>
    %45 = arith.cmpf oge, %40, %44 : vector<16x64xf32>
    %cst_24 = arith.constant 6.400000e+01 : f32
    %46 = vector.broadcast %cst_24 : f32 to vector<16x64xf32>
    %47 = arith.select %45, %41, %46 : vector<16x64xi1>, vector<16x64xf32>
    %cst_25 = arith.constant dense<0x7F800000> : vector<16xf32>
    %48 = vector.multi_reduction <minimumf>, %47, %cst_25 [1] : vector<16x64xf32> to vector<16xf32>
    %49 = vector.shape_cast %48 : vector<16xf32> to vector<16x1xf32>
    %50 = vector.broadcast %49 : vector<16x1xf32> to vector<16x64xf32>
    %51 = arith.cmpf oeq, %41, %50 : vector<16x64xf32>
    %cst_26 = arith.constant -1.000000e+30 : f32
    %52 = vector.broadcast %cst_26 : f32 to vector<16x64xf32>
    %53 = arith.select %51, %52, %40 : vector<16x64xi1>, vector<16x64xf32>
    %cst_27 = arith.constant dense<0xFF800000> : vector<16xf32>
    %54 = vector.multi_reduction <maximumf>, %53, %cst_27 [1] : vector<16x64xf32> to vector<16xf32>
    %55 = vector.shape_cast %54 : vector<16xf32> to vector<16x1xf32>
    %56 = vector.broadcast %55 : vector<16x1xf32> to vector<16x64xf32>
    %57 = arith.cmpf oge, %53, %56 : vector<16x64xf32>
    %cst_28 = arith.constant 6.400000e+01 : f32
    %58 = vector.broadcast %cst_28 : f32 to vector<16x64xf32>
    %59 = arith.select %57, %41, %58 : vector<16x64xi1>, vector<16x64xf32>
    %cst_29 = arith.constant dense<0x7F800000> : vector<16xf32>
    %60 = vector.multi_reduction <minimumf>, %59, %cst_29 [1] : vector<16x64xf32> to vector<16xf32>
    %61 = vector.shape_cast %60 : vector<16xf32> to vector<16x1xf32>
    %62 = vector.broadcast %61 : vector<16x1xf32> to vector<16x64xf32>
    %63 = arith.cmpf oeq, %41, %62 : vector<16x64xf32>
    %cst_30 = arith.constant -1.000000e+30 : f32
    %64 = vector.broadcast %cst_30 : f32 to vector<16x64xf32>
    %65 = arith.select %63, %64, %53 : vector<16x64xi1>, vector<16x64xf32>
    %cst_31 = arith.constant dense<0xFF800000> : vector<16xf32>
    %66 = vector.multi_reduction <maximumf>, %65, %cst_31 [1] : vector<16x64xf32> to vector<16xf32>
    %67 = vector.shape_cast %66 : vector<16xf32> to vector<16x1xf32>
    %68 = vector.broadcast %67 : vector<16x1xf32> to vector<16x64xf32>
    %69 = arith.cmpf oge, %65, %68 : vector<16x64xf32>
    %cst_32 = arith.constant 6.400000e+01 : f32
    %70 = vector.broadcast %cst_32 : f32 to vector<16x64xf32>
    %71 = arith.select %69, %41, %70 : vector<16x64xi1>, vector<16x64xf32>
    %cst_33 = arith.constant dense<0x7F800000> : vector<16xf32>
    %72 = vector.multi_reduction <minimumf>, %71, %cst_33 [1] : vector<16x64xf32> to vector<16xf32>
    %73 = vector.shape_cast %72 : vector<16xf32> to vector<16x1xf32>
    %74 = vector.broadcast %73 : vector<16x1xf32> to vector<16x64xf32>
    %75 = arith.cmpf oeq, %41, %74 : vector<16x64xf32>
    %cst_34 = arith.constant -1.000000e+30 : f32
    %76 = vector.broadcast %cst_34 : f32 to vector<16x64xf32>
    %77 = arith.select %75, %76, %65 : vector<16x64xi1>, vector<16x64xf32>
    %cst_35 = arith.constant dense<0xFF800000> : vector<16xf32>
    %78 = vector.multi_reduction <maximumf>, %77, %cst_35 [1] : vector<16x64xf32> to vector<16xf32>
    %79 = vector.shape_cast %78 : vector<16xf32> to vector<16x1xf32>
    %80 = vector.broadcast %79 : vector<16x1xf32> to vector<16x64xf32>
    %81 = arith.cmpf oge, %77, %80 : vector<16x64xf32>
    %cst_36 = arith.constant 6.400000e+01 : f32
    %82 = vector.broadcast %cst_36 : f32 to vector<16x64xf32>
    %83 = arith.select %81, %41, %82 : vector<16x64xi1>, vector<16x64xf32>
    %cst_37 = arith.constant dense<0x7F800000> : vector<16xf32>
    %84 = vector.multi_reduction <minimumf>, %83, %cst_37 [1] : vector<16x64xf32> to vector<16xf32>
    %85 = vector.shape_cast %84 : vector<16xf32> to vector<16x1xf32>
    %86 = vector.broadcast %85 : vector<16x1xf32> to vector<16x64xf32>
    %87 = arith.cmpf oeq, %41, %86 : vector<16x64xf32>
    %cst_38 = arith.constant -1.000000e+30 : f32
    %88 = vector.broadcast %cst_38 : f32 to vector<16x64xf32>
    %89 = arith.select %87, %88, %77 : vector<16x64xi1>, vector<16x64xf32>
    %cst_39 = arith.constant dense<0xFF800000> : vector<16xf32>
    %90 = vector.multi_reduction <maximumf>, %89, %cst_39 [1] : vector<16x64xf32> to vector<16xf32>
    %91 = vector.shape_cast %90 : vector<16xf32> to vector<16x1xf32>
    %92 = vector.broadcast %91 : vector<16x1xf32> to vector<16x64xf32>
    %93 = arith.cmpf oge, %89, %92 : vector<16x64xf32>
    %cst_40 = arith.constant 6.400000e+01 : f32
    %94 = vector.broadcast %cst_40 : f32 to vector<16x64xf32>
    %95 = arith.select %93, %41, %94 : vector<16x64xi1>, vector<16x64xf32>
    %cst_41 = arith.constant dense<0x7F800000> : vector<16xf32>
    %96 = vector.multi_reduction <minimumf>, %95, %cst_41 [1] : vector<16x64xf32> to vector<16xf32>
    %97 = vector.shape_cast %96 : vector<16xf32> to vector<16x1xf32>
    %98 = vector.broadcast %97 : vector<16x1xf32> to vector<16x64xf32>
    %99 = arith.cmpf oeq, %41, %98 : vector<16x64xf32>
    %cst_42 = arith.constant -1.000000e+30 : f32
    %100 = vector.broadcast %cst_42 : f32 to vector<16x64xf32>
    %101 = arith.select %99, %100, %89 : vector<16x64xi1>, vector<16x64xf32>
    %cst_43 = arith.constant dense<0xFF800000> : vector<16xf32>
    %102 = vector.multi_reduction <maximumf>, %101, %cst_43 [1] : vector<16x64xf32> to vector<16xf32>
    %103 = vector.shape_cast %102 : vector<16xf32> to vector<16x1xf32>
    %104 = vector.broadcast %103 : vector<16x1xf32> to vector<16x64xf32>
    %105 = arith.cmpf oge, %101, %104 : vector<16x64xf32>
    %cst_44 = arith.constant 6.400000e+01 : f32
    %106 = vector.broadcast %cst_44 : f32 to vector<16x64xf32>
    %107 = arith.select %105, %41, %106 : vector<16x64xi1>, vector<16x64xf32>
    %cst_45 = arith.constant dense<0x7F800000> : vector<16xf32>
    %108 = vector.multi_reduction <minimumf>, %107, %cst_45 [1] : vector<16x64xf32> to vector<16xf32>
    %109 = vector.shape_cast %108 : vector<16xf32> to vector<16x1xf32>
    %110 = vector.broadcast %109 : vector<16x1xf32> to vector<16x64xf32>
    %111 = arith.cmpf oeq, %41, %110 : vector<16x64xf32>
    %cst_46 = arith.constant -1.000000e+30 : f32
    %112 = vector.broadcast %cst_46 : f32 to vector<16x64xf32>
    %113 = arith.select %111, %112, %101 : vector<16x64xi1>, vector<16x64xf32>
    %cst_47 = arith.constant dense<0xFF800000> : vector<16xf32>
    %114 = vector.multi_reduction <maximumf>, %113, %cst_47 [1] : vector<16x64xf32> to vector<16xf32>
    %115 = vector.shape_cast %114 : vector<16xf32> to vector<16x1xf32>
    %116 = vector.broadcast %115 : vector<16x1xf32> to vector<16x64xf32>
    %117 = arith.cmpf oge, %113, %116 : vector<16x64xf32>
    %cst_48 = arith.constant 6.400000e+01 : f32
    %118 = vector.broadcast %cst_48 : f32 to vector<16x64xf32>
    %119 = arith.select %117, %41, %118 : vector<16x64xi1>, vector<16x64xf32>
    %cst_49 = arith.constant dense<0x7F800000> : vector<16xf32>
    %120 = vector.multi_reduction <minimumf>, %119, %cst_49 [1] : vector<16x64xf32> to vector<16xf32>
    %121 = vector.shape_cast %120 : vector<16xf32> to vector<16x1xf32>
    %122 = vector.broadcast %121 : vector<16x1xf32> to vector<16x64xf32>
    %123 = arith.cmpf oeq, %41, %122 : vector<16x64xf32>
    %cst_50 = arith.constant -1.000000e+30 : f32
    %124 = vector.broadcast %cst_50 : f32 to vector<16x64xf32>
    %125 = arith.select %123, %124, %113 : vector<16x64xi1>, vector<16x64xf32>
    %cst_51 = arith.constant dense<0xFF800000> : vector<16xf32>
    %126 = vector.multi_reduction <maximumf>, %125, %cst_51 [1] : vector<16x64xf32> to vector<16xf32>
    %127 = vector.shape_cast %126 : vector<16xf32> to vector<16x1xf32>
    %128 = vector.broadcast %127 : vector<16x1xf32> to vector<16x64xf32>
    %129 = arith.cmpf oge, %125, %128 : vector<16x64xf32>
    %cst_52 = arith.constant 6.400000e+01 : f32
    %130 = vector.broadcast %cst_52 : f32 to vector<16x64xf32>
    %131 = arith.select %129, %41, %130 : vector<16x64xi1>, vector<16x64xf32>
    %cst_53 = arith.constant dense<0x7F800000> : vector<16xf32>
    %132 = vector.multi_reduction <minimumf>, %131, %cst_53 [1] : vector<16x64xf32> to vector<16xf32>
    %133 = vector.shape_cast %132 : vector<16xf32> to vector<16x1xf32>
    %134 = tpu.concatenate %49, %61, %73, %85, %97, %109, %121, %133 in 0 : vector<16x1xf32>, vector<16x1xf32>, vector<16x1xf32>, vector<16x1xf32>, vector<16x1xf32>, vector<16x1xf32>, vector<16x1xf32>, vector<16x1xf32> -> vector<128x1xf32>
    %c304 = arith.constant 304 : index
    %c0_54 = arith.constant 0 : index
    %135 = vector.load %arg2[%c304, %c0_54] : memref<3640x128xf32, #tpu.memory_space<vmem>>, vector<128x64xf32>
    %136 = vector.broadcast %134 : vector<128x1xf32> to vector<128x64xf32>
    %137 = arith.cmpf oeq, %135, %136 : vector<128x64xf32>
    %138 = arith.extui %137 : vector<128x64xi1> to vector<128x64xi32>
    %139 = arith.sitofp %138 : vector<128x64xi32> to vector<128x64xf32>
    %cst_55 = arith.constant dense<0.000000e+00> : vector<128x128xf32>
    %140 = tpu.matmul %139, %19, %cst_55 {dimension_numbers = #tpu.dot_dimension_numbers<[1], [0], [0], [1], [0, 0, 1, 1], [], []>} : vector<128x64xf32>, vector<64x128xf32>, vector<128x128xf32> -> vector<128x128xf32>
    %141 = vector.extract_strided_slice %140 {offsets = [0, 0], sizes = [16, 128], strides = [1, 1]} : vector<128x128xf32> to vector<16x128xf32>
    %142 = vector.extract_strided_slice %140 {offsets = [16, 0], sizes = [16, 128], strides = [1, 1]} : vector<128x128xf32> to vector<16x128xf32>
    %143 = vector.extract_strided_slice %140 {offsets = [32, 0], sizes = [16, 128], strides = [1, 1]} : vector<128x128xf32> to vector<16x128xf32>
    %144 = vector.extract_strided_slice %140 {offsets = [48, 0], sizes = [16, 128], strides = [1, 1]} : vector<128x128xf32> to vector<16x128xf32>
    %145 = vector.extract_strided_slice %140 {offsets = [64, 0], sizes = [16, 128], strides = [1, 1]} : vector<128x128xf32> to vector<16x128xf32>
    %146 = vector.extract_strided_slice %140 {offsets = [80, 0], sizes = [16, 128], strides = [1, 1]} : vector<128x128xf32> to vector<16x128xf32>
    %147 = vector.extract_strided_slice %140 {offsets = [96, 0], sizes = [16, 128], strides = [1, 1]} : vector<128x128xf32> to vector<16x128xf32>
    %148 = vector.extract_strided_slice %140 {offsets = [112, 0], sizes = [16, 128], strides = [1, 1]} : vector<128x128xf32> to vector<16x128xf32>
    %149 = tpu.concatenate %141, %142, %143, %144, %145, %146, %147, %148 in 1 : vector<16x128xf32>, vector<16x128xf32>, vector<16x128xf32>, vector<16x128xf32>, vector<16x128xf32>, vector<16x128xf32>, vector<16x128xf32>, vector<16x128xf32> -> vector<16x1024xf32>
    %c432 = arith.constant 432 : index
    %c0_56 = arith.constant 0 : index
    %150 = vector.load %arg2[%c432, %c0_56] : memref<3640x128xf32, #tpu.memory_space<vmem>>, vector<1024x128xf32>
    %cst_57 = arith.constant dense<0.000000e+00> : vector<16x128xf32>
    %151 = tpu.matmul %149, %150, %cst_57 {dimension_numbers = #tpu.dot_dimension_numbers<[1], [0], [0], [1], [0, 0, 1, 1], [], []>} : vector<16x1024xf32>, vector<1024x128xf32>, vector<16x128xf32> -> vector<16x128xf32>
    %c1456 = arith.constant 1456 : index
    %c0_58 = arith.constant 0 : index
    %152 = vector.load %arg2[%c1456, %c0_58] : memref<3640x128xf32, #tpu.memory_space<vmem>>, vector<1x128xf32>
    %153 = vector.broadcast %152 : vector<1x128xf32> to vector<16x128xf32>
    %154 = arith.addf %151, %153 : vector<16x128xf32>
    %cst_59 = arith.constant 0.000000e+00 : f32
    %155 = vector.broadcast %cst_59 : f32 to vector<16x128xf32>
    %156 = arith.maximumf %154, %155 : vector<16x128xf32>
    %c1464 = arith.constant 1464 : index
    %c0_60 = arith.constant 0 : index
    %157 = vector.load %arg2[%c1464, %c0_60] : memref<3640x128xf32, #tpu.memory_space<vmem>>, vector<128x128xf32>
    %cst_61 = arith.constant dense<0.000000e+00> : vector<16x128xf32>
    %158 = tpu.matmul %156, %157, %cst_61 {dimension_numbers = #tpu.dot_dimension_numbers<[1], [0], [0], [1], [0, 0, 1, 1], [], []>} : vector<16x128xf32>, vector<128x128xf32>, vector<16x128xf32> -> vector<16x128xf32>
    %c1592 = arith.constant 1592 : index
    %c0_62 = arith.constant 0 : index
    %159 = vector.load %arg2[%c1592, %c0_62] : memref<3640x128xf32, #tpu.memory_space<vmem>>, vector<1x128xf32>
    %160 = vector.broadcast %159 : vector<1x128xf32> to vector<16x128xf32>
    %161 = arith.addf %158, %160 : vector<16x128xf32>
    %cst_63 = arith.constant 0.000000e+00 : f32
    %162 = vector.broadcast %cst_63 : f32 to vector<16x128xf32>
    %163 = arith.maximumf %161, %162 : vector<16x128xf32>
    %c0_64 = arith.constant 0 : index
    %c0_65 = arith.constant 0 : index
    %164 = vector.load %arg3[%c0_64, %c0_65] : memref<792x512xf32, #tpu.memory_space<vmem>>, vector<128x512xf32>
    %cst_66 = arith.constant dense<0.000000e+00> : vector<16x512xf32>
    %165 = tpu.matmul %163, %164, %cst_66 {dimension_numbers = #tpu.dot_dimension_numbers<[1], [0], [0], [1], [0, 0, 1, 1], [], []>} : vector<16x128xf32>, vector<128x512xf32>, vector<16x512xf32> -> vector<16x512xf32>
    %c128 = arith.constant 128 : index
    %c0_67 = arith.constant 0 : index
    %166 = vector.load %arg3[%c128, %c0_67] : memref<792x512xf32, #tpu.memory_space<vmem>>, vector<1x512xf32>
    %167 = vector.broadcast %166 : vector<1x512xf32> to vector<16x512xf32>
    %168 = arith.addf %165, %167 : vector<16x512xf32>
    %cst_68 = arith.constant 0.000000e+00 : f32
    %169 = vector.broadcast %cst_68 : f32 to vector<16x512xf32>
    %170 = arith.maximumf %168, %169 : vector<16x512xf32>
    %c1600 = arith.constant 1600 : index
    %c0_69 = arith.constant 0 : index
    %171 = vector.load %arg2[%c1600, %c0_69] : memref<3640x128xf32, #tpu.memory_space<vmem>>, vector<512x4xf32>
    %cst_70 = arith.constant dense<0.000000e+00> : vector<16x4xf32>
    %172 = tpu.matmul %170, %171, %cst_70 {dimension_numbers = #tpu.dot_dimension_numbers<[1], [0], [0], [1], [0, 0, 1, 1], [], []>} : vector<16x512xf32>, vector<512x4xf32>, vector<16x4xf32> -> vector<16x4xf32>
    %c2112 = arith.constant 2112 : index
    %c0_71 = arith.constant 0 : index
    %173 = vector.load %arg2[%c2112, %c0_71] : memref<3640x128xf32, #tpu.memory_space<vmem>>, vector<1x4xf32>
    %174 = vector.broadcast %173 : vector<1x4xf32> to vector<16x4xf32>
    %175 = arith.addf %172, %174 : vector<16x4xf32>
    %176 = math.tanh %175 : vector<16x4xf32>
    %c2120 = arith.constant 2120 : index
    %c0_72 = arith.constant 0 : index
    %177 = vector.load %arg2[%c2120, %c0_72] : memref<3640x128xf32, #tpu.memory_space<vmem>>, vector<4x64xf32>
    %cst_73 = arith.constant dense<0.000000e+00> : vector<16x64xf32>
    %178 = tpu.matmul %176, %177, %cst_73 {dimension_numbers = #tpu.dot_dimension_numbers<[1], [0], [0], [1], [0, 0, 1, 1], [], []>} : vector<16x4xf32>, vector<4x64xf32>, vector<16x64xf32> -> vector<16x64xf32>
    %c2128 = arith.constant 2128 : index
    %c0_74 = arith.constant 0 : index
    %179 = vector.load %arg2[%c2128, %c0_74] : memref<3640x128xf32, #tpu.memory_space<vmem>>, vector<1x64xf32>
    %180 = vector.broadcast %179 : vector<1x64xf32> to vector<16x64xf32>
    %181 = arith.addf %178, %180 : vector<16x64xf32>
    %cst_75 = arith.constant 0.000000e+00 : f32
    %182 = vector.broadcast %cst_75 : f32 to vector<16x64xf32>
    %183 = arith.maximumf %181, %182 : vector<16x64xf32>
    %c2136 = arith.constant 2136 : index
    %c0_76 = arith.constant 0 : index
    %184 = vector.load %arg2[%c2136, %c0_76] : memref<3640x128xf32, #tpu.memory_space<vmem>>, vector<64x128xf32>
    %cst_77 = arith.constant dense<0.000000e+00> : vector<16x128xf32>
    %185 = tpu.matmul %183, %184, %cst_77 {dimension_numbers = #tpu.dot_dimension_numbers<[1], [0], [0], [1], [0, 0, 1, 1], [], []>} : vector<16x64xf32>, vector<64x128xf32>, vector<16x128xf32> -> vector<16x128xf32>
    %c2200 = arith.constant 2200 : index
    %c0_78 = arith.constant 0 : index
    %186 = vector.load %arg2[%c2200, %c0_78] : memref<3640x128xf32, #tpu.memory_space<vmem>>, vector<1x128xf32>
    %187 = vector.broadcast %186 : vector<1x128xf32> to vector<16x128xf32>
    %188 = arith.addf %185, %187 : vector<16x128xf32>
    %cst_79 = arith.constant 0.000000e+00 : f32
    %189 = vector.broadcast %cst_79 : f32 to vector<16x128xf32>
    %190 = arith.maximumf %188, %189 : vector<16x128xf32>
    %c2208 = arith.constant 2208 : index
    %c0_80 = arith.constant 0 : index
    %191 = vector.load %arg2[%c2208, %c0_80] : memref<3640x128xf32, #tpu.memory_space<vmem>>, vector<1024x128xf32>
    %cst_81 = arith.constant dense<0.000000e+00> : vector<16x128xf32>
    %192 = tpu.matmul %149, %191, %cst_81 {dimension_numbers = #tpu.dot_dimension_numbers<[1], [0], [0], [1], [0, 0, 1, 1], [], []>} : vector<16x1024xf32>, vector<1024x128xf32>, vector<16x128xf32> -> vector<16x128xf32>
    %c3232 = arith.constant 3232 : index
    %c0_82 = arith.constant 0 : index
    %193 = vector.load %arg2[%c3232, %c0_82] : memref<3640x128xf32, #tpu.memory_space<vmem>>, vector<128x128xf32>
    %cst_83 = arith.constant dense<0.000000e+00> : vector<16x128xf32>
    %194 = tpu.matmul %190, %193, %cst_83 {dimension_numbers = #tpu.dot_dimension_numbers<[1], [0], [0], [1], [0, 0, 1, 1], [], []>} : vector<16x128xf32>, vector<128x128xf32>, vector<16x128xf32> -> vector<16x128xf32>
    %195 = arith.addf %192, %194 : vector<16x128xf32>
    %c3360 = arith.constant 3360 : index
    %c0_84 = arith.constant 0 : index
    %196 = vector.load %arg2[%c3360, %c0_84] : memref<3640x128xf32, #tpu.memory_space<vmem>>, vector<1x128xf32>
    %197 = vector.broadcast %196 : vector<1x128xf32> to vector<16x128xf32>
    %198 = arith.addf %195, %197 : vector<16x128xf32>
    %cst_85 = arith.constant 0.000000e+00 : f32
    %199 = vector.broadcast %cst_85 : f32 to vector<16x128xf32>
    %200 = arith.maximumf %198, %199 : vector<16x128xf32>
    %c136 = arith.constant 136 : index
    %c0_86 = arith.constant 0 : index
    %201 = vector.load %arg3[%c136, %c0_86] : memref<792x512xf32, #tpu.memory_space<vmem>>, vector<128x512xf32>
    %cst_87 = arith.constant dense<0.000000e+00> : vector<16x512xf32>
    %202 = tpu.matmul %200, %201, %cst_87 {dimension_numbers = #tpu.dot_dimension_numbers<[1], [0], [0], [1], [0, 0, 1, 1], [], []>} : vector<16x128xf32>, vector<128x512xf32>, vector<16x512xf32> -> vector<16x512xf32>
    %c264 = arith.constant 264 : index
    %c0_88 = arith.constant 0 : index
    %203 = vector.load %arg3[%c264, %c0_88] : memref<792x512xf32, #tpu.memory_space<vmem>>, vector<1x512xf32>
    %204 = vector.broadcast %203 : vector<1x512xf32> to vector<16x512xf32>
    %205 = arith.addf %202, %204 : vector<16x512xf32>
    %cst_89 = arith.constant 0.000000e+00 : f32
    %206 = vector.broadcast %cst_89 : f32 to vector<16x512xf32>
    %207 = arith.maximumf %205, %206 : vector<16x512xf32>
    %c272 = arith.constant 272 : index
    %c0_90 = arith.constant 0 : index
    %208 = vector.load %arg3[%c272, %c0_90] : memref<792x512xf32, #tpu.memory_space<vmem>>, vector<512x256xf32>
    %cst_91 = arith.constant dense<0.000000e+00> : vector<16x256xf32>
    %209 = tpu.matmul %207, %208, %cst_91 {dimension_numbers = #tpu.dot_dimension_numbers<[1], [0], [0], [1], [0, 0, 1, 1], [], []>} : vector<16x512xf32>, vector<512x256xf32>, vector<16x256xf32> -> vector<16x256xf32>
    %c784 = arith.constant 784 : index
    %c0_92 = arith.constant 0 : index
    %210 = vector.load %arg3[%c784, %c0_92] : memref<792x512xf32, #tpu.memory_space<vmem>>, vector<1x256xf32>
    %211 = vector.broadcast %210 : vector<1x256xf32> to vector<16x256xf32>
    %212 = arith.addf %209, %211 : vector<16x256xf32>
    %cst_93 = arith.constant 0.000000e+00 : f32
    %213 = vector.broadcast %cst_93 : f32 to vector<16x256xf32>
    %214 = arith.maximumf %212, %213 : vector<16x256xf32>
    %c3368 = arith.constant 3368 : index
    %c0_94 = arith.constant 0 : index
    %215 = vector.load %arg2[%c3368, %c0_94] : memref<3640x128xf32, #tpu.memory_space<vmem>>, vector<256x1xf32>
    %cst_95 = arith.constant dense<0.000000e+00> : vector<16x1xf32>
    %216 = tpu.matmul %214, %215, %cst_95 {dimension_numbers = #tpu.dot_dimension_numbers<[1], [0], [0], [1], [0, 0, 1, 1], [], []>} : vector<16x256xf32>, vector<256x1xf32>, vector<16x1xf32> -> vector<16x1xf32>
    %c3624 = arith.constant 3624 : index
    %c0_96 = arith.constant 0 : index
    %217 = vector.load %arg2[%c3624, %c0_96] : memref<3640x128xf32, #tpu.memory_space<vmem>>, vector<1x1xf32>
    %218 = vector.broadcast %217 : vector<1x1xf32> to vector<16x1xf32>
    %219 = arith.addf %216, %218 : vector<16x1xf32>
    %cst_97 = arith.constant 0.000000e+00 : f32
    %220 = vector.broadcast %cst_97 : f32 to vector<16x1xf32>
    %221 = arith.subf %220, %219 : vector<16x1xf32>
    %222 = math.exp %221 : vector<16x1xf32>
    %cst_98 = arith.constant 1.000000e+00 : f32
    %223 = vector.broadcast %cst_98 : f32 to vector<16x1xf32>
    %224 = arith.addf %223, %222 : vector<16x1xf32>
    %cst_99 = arith.constant 1.000000e+00 : f32
    %225 = vector.broadcast %cst_99 : f32 to vector<16x1xf32>
    %226 = arith.divf %225, %224 : vector<16x1xf32>
    %227 = tpu.concatenate %33, %176, %226 in 1 : vector<16x3xf32>, vector<16x4xf32>, vector<16x1xf32> -> vector<16x8xf32>
    %c3632 = arith.constant 3632 : index
    %c0_100 = arith.constant 0 : index
    %228 = vector.load %arg2[%c3632, %c0_100] : memref<3640x128xf32, #tpu.memory_space<vmem>>, vector<8x128xf32>
    %cst_101 = arith.constant dense<0.000000e+00> : vector<16x128xf32>
    %229 = tpu.matmul %227, %228, %cst_101 {dimension_numbers = #tpu.dot_dimension_numbers<[1], [0], [0], [1], [0, 0, 1, 1], [], []>} : vector<16x8xf32>, vector<8x128xf32>, vector<16x128xf32> -> vector<16x128xf32>
    %c0_102 = arith.constant 0 : index
    %c0_103 = arith.constant 0 : index
    %c0_104 = arith.constant 0 : index
    %230 = vector.load %arg4[%c0_102, %c0_103, %c0_104] : memref<1x16x128xf32, #tpu.memory_space<vmem>>, vector<1x16x128xf32>
    %231 = vector.shape_cast %230 : vector<1x16x128xf32> to vector<16x128xf32>
    %232 = vector.shape_cast %229 : vector<16x128xf32> to vector<1x16x128xf32>
    tpu.vector_store %arg4[%c0_102, %c0_103, %c0_104], %232 {strides = array<i32>} : memref<1x16x128xf32, #tpu.memory_space<vmem>>, vector<1x16x128xf32>,
    return
  }
  func.func @transform_0(%arg0: i32) -> (i32, i32, i32) {
    %c0_i32 = arith.constant 0 : i32
    %c0_i32_0 = arith.constant 0 : i32
    %c0_i32_1 = arith.constant 0 : i32
    return %arg0, %c0_i32, %c0_i32_0 : i32, i32, i32
  }
  func.func @transform_1(%arg0: i32) -> (i32, i32) {
    %c0_i32 = arith.constant 0 : i32
    %c0_i32_0 = arith.constant 0 : i32
    %c0_i32_1 = arith.constant 0 : i32
    return %c0_i32, %c0_i32_0 : i32, i32
  }
  func.func @transform_2(%arg0: i32) -> (i32, i32) {
    %c0_i32 = arith.constant 0 : i32
    %c0_i32_0 = arith.constant 0 : i32
    %c0_i32_1 = arith.constant 0 : i32
    return %c0_i32, %c0_i32_0 : i32, i32
  }
  func.func @transform_3(%arg0: i32) -> (i32, i32, i32) {
    %c0_i32 = arith.constant 0 : i32
    %c0_i32_0 = arith.constant 0 : i32
    %c0_i32_1 = arith.constant 0 : i32
    return %arg0, %c0_i32, %c0_i32_0 : i32, i32, i32
  }
}

</mosaic_0001>

<bundles_post_ra>
// kernel: graspsamplenet_forward.1
= control target key start
LH: loop header
LB: loop body
LE: loop exit
PB: predicated region body
PF: predicated region fallthrough
CT: control target
= control target key end

     0   :  { %8 = vsyncpa [#allocation3], 0  ;;  %s6251_s0 = inlined_call_operand.vmem [shape: f32[2,64,3], index: 0, kind: input, shape index: {}]   ;;  %s6252_s1 = inlined_call_operand.hbm [shape: f32[3640,128], index: 1, kind: input, shape index: {}]   ;;  %s6253_s2 = inlined_call_operand.hbm [shape: f32[792,512], index: 2, kind: input, shape index: {}]   ;;  %s6254_s3 = inlined_call_operand.vmem [shape: f32[2,16,128], index: 3, kind: output, shape index: {}]  }
   0x1   :  { %9 = vsyncpa [#allocation5], 0  ;;  %s5757_s12 = smov 0  }
   0x2 LB: > { %s5727_s13 = smov [#allocation2]   ;;  %s5763_s15 = sadd.s32 4294967295, %s5725_s12   ;;  %s5725_s12 = sphi %s5757_s12, %s15_s12  }
   0x3   : > { %s126_s14 = sshll.u32 %s5727_s13, 4  ;;  %p3906_p0 = scmp.ge.s32.totalorder %s5725_s12, 1  ;;  %s127_s14 = int_to_ptr.vmem [resolvable:$true] %s126_s14 }
   0x4   : > { %p114_p1 = scmp.lt.s32.totalorder %s5725_s12, 3  ;;  %p6255_p3 = scmp.eq.s32.totalorder %s5763_s15, 0 }
   0x5   : > { %s5728_s17 = smov [#allocation4]   ;;  %s5655_s22 = scalar_lea.hbm %s6252_s1, 58240 }
   0x6   : > { %p5767_p2 = pnand %p3906_p0, %p114_p1  ;;  %s139_s18 = sshll.u32 %s5728_s17, 4  ;;  %s5780_s18 = int_to_ptr.vmem [resolvable:$true] %s139_s18 }
   0x7   : > { %p5656_p6 = scmp.ne.s32.totalorder %s6252_s1, %s5655_s22  ;;  %p5662_p10 = scmp.lt.u32.totalorder %s5655_s22, %s6252_s1 }
   0x8   : > { %s6257_s16 = scalar_select %p5767_p2, 1, 0 }
   0x9   : > { %p5608_p4 = pneg %p5767_p2 }
   0xb   : > { %p5776_p5 = pnand %p6255_p3, %p5608_p4 }
   0xd   : > { %p5657_p7 = pneg %p5776_p5 }
   0xf   : > { %p5658_p8 = pnand %p5657_p7, %p5656_p6 }
  0x11   : > { %p5659_p9 = pneg %p5658_p8 }
  0x13   : > { %p5664_p11 = pnand %p5662_p10, %p5659_p9 }
  0x15   : > { %5667 = shalt.err (!%p5664_p11)
}
  0x16   : > { %s5668_s27 = scalar_lea.vmem %s127_s14, 58240  ;;  %p5676_p1 = scmp.lt.s32.totalorder %s127_s14, %s127_s14 }
  0x17   : > { %p5669_p12 = scmp.ne.s32.totalorder %s127_s14, %s5668_s27  ;;  %p5677_p4 = scmp.lt.s32.totalorder %s5668_s27, %s5668_s27 }
  0x19   : > { %p5671_p13 = pnand %p5669_p12, %p5657_p7  ;;  %p5678_p3 = por %p5677_p4, %p5676_p1 }
  0x1b   : > { %p5672_p0 = pneg %p5671_p13 }
  0x1d   : > { %p5679_p2 = pnand %p5678_p3, %p5672_p0 }
  0x1f   : > { %5682 = shalt.err (!%p5679_p2)
}
  0x20   : > { %s5729_s28 = smov 128   ;;  %s5730_s29 = smov 8  }
  0x21   : > { %5611 = dma.hbm_to_vmem [thread:$0]  (!%p5776_p5), %s6252_s1, 58240, %s127_s14, [#allocation3], %s5729_s28, %s5729_s28, %s5730_s29  }
  0x22   : > { %s5683_s7 = scalar_lea.hbm %s6253_s2, 50688 }
  0x23   : > { %p5684_p6 = scmp.ne.s32.totalorder %s6253_s2, %s5683_s7  ;;  %p5690_p8 = scmp.lt.u32.totalorder %s5683_s7, %s6253_s2 }
  0x25   : > { %p5686_p2 = pnand %p5684_p6, %p5657_p7 }
  0x27   : > { %p5687_p3 = pneg %p5686_p2 }
  0x29   : > { %p5692_p9 = pnand %p5690_p8, %p5687_p3 }
  0x2b   : > { %5695 = shalt.err (!%p5692_p9)
}
  0x2c   : > { %s5696_s13 = scalar_lea.vmem %s5780_s18, 50688  ;;  %p5704_p13 = scmp.lt.s32.totalorder %s5780_s18, %s5780_s18 }
  0x2d   : > { %p5697_p10 = scmp.ne.s32.totalorder %s5780_s18, %s5696_s13  ;;  %p5705_p0 = scmp.lt.s32.totalorder %s5696_s13, %s5696_s13 }
  0x2f   : > { %p5699_p11 = pnand %p5697_p10, %p5657_p7  ;;  %p5706_p1 = por %p5705_p0, %p5704_p13 }
  0x31   : > { %p5700_p12 = pneg %p5699_p11 }
  0x33   : > { %p5707_p4 = pnand %p5706_p1, %p5700_p12 }
  0x35   : > { %5710 = shalt.err (!%p5707_p4)
}
  0x36   : > { %s5731_s14 = smov 512   ;;  %s5732_s17 = smov 32  }
  0x37   : > { %5614 = dma.hbm_to_vmem [thread:$0]  (!%p5776_p5), %s6253_s2, 50688, %s5780_s18, [#allocation5], %s5731_s14, %s5731_s14, %s5732_s17  }
  0x38   : > { %p6259_p6 = scmp.ne.s32.totalorder %s6257_s16, 0 }
  0x39   : > { %p6260_p7 = scmp.eq.s32.totalorder (!%p6259_p6), %s5763_s15, 0 }
  0x3a   : > { %163 = sbr.rel (%p6259_p6) target bundleno = 6706 (0x1a32), region = 32 }
  0x41   : > { %5716 = dma.done.wait (%p6260_p7), [#allocation3], 58240   ;;  %p6261_p2 = pmov %p6260_p7 }
  0x43   : > { %5718 = vsyncadd (%p6261_p2), [#allocation3], 4294909056  ;;  %p6262_p3 = pmov %p6261_p2 }
  0x44   : > { %p6263_p8 = pmov %p6261_p2 }
  0x45   : > { %5720 = dma.done.wait (%p6262_p3), [#allocation5], 50688  }
  0x46   : > { %5722 = vsyncadd (%p6263_p8), [#allocation5], 4294916608  ;;  %p191_p9 = scmp.lt.s32.totalorder %s5763_s15, 1  ;;  %vm217_vm0 = vcmask 23552   ;;  %v250_v24 = vld [vmem:[#allocation2] sm:$0xf] }
  0x47   : > { %vm281_vm1 = vcmask 1043456   ;;  %v562_v25 = vld [vmem:[#allocation2 + $0x58] sm:$0xff]  ;;  %v563_v26 = vld [vmem:[#allocation2 + $0x60] sm:$0xff]  ;;  %v398_v28 = vld [vmem:[#allocation2 + $0x10] sm:$0xff]  ;;  %vm256_vm2 = vcmask 31744   ;;  %vm411_vm4 = vcmask 523264  }
  0x48   : > { %s6267_s15 = smov (!%p191_p9, %s5763_s15), 1  ;;  %4554 = vmatprep.subr.msk.mxu0 %vm281_vm1, %v250_v24  ;;  %v4820_v27 = vpack.c.bf16 %v563_v26, %v562_v25  ;;  %v399_v29 = vld [vmem:[#allocation2 + $0x18] sm:$0xff]  ;;  %v400_v30 = vld [vmem:[#allocation2 + $0x20] sm:$0xff]  ;;  %v401_v32 = vld [vmem:[#allocation2 + $0x28] sm:$0xff]  ;;  %vm668_vm5 = vcmask 392192   ;;  %s5735_s23 = smov 3  }
  0x49   : > { %s3997_s16 = sshll.u32 %s6267_s15, 6  ;;  %4555 = vmatpush3.msk.msra.mxu0 %vm281_vm1, %v250_v24  ;;  %v4804_v31 = vpack.c.bf16 %v399_v29, %v398_v28  ;;  %v4808_v33 = vpack.c.bf16 %v401_v32, %v400_v30  ;;  %v402_v34 = vld [vmem:[#allocation2 + $0x30] sm:$0xff]  ;;  %v403_v35 = vld [vmem:[#allocation2 + $0x38] sm:$0xff]  ;;  %v564_v40 = vld [vmem:[#allocation2 + $0x68] sm:$0xff]  ;;  %s5736_s24 = smov 7  }
  0x4a   : > { %s195_s22 = scalar_lea.vmem %s6251_s0, %s3997_s16  ;;  %4821 = vmatprep.subr.bf16.mxu0 %v4820_v27  ;;  %v4812_v36 = vpack.c.bf16 %v403_v35, %v402_v34  ;;  %v565_v41 = vld [vmem:[#allocation2 + $0x70] sm:$0xff]  ;;  %v566_v48 = vld [vmem:[#allocation2 + $0x78] sm:$0xff]  ;;  %v567_v49 = vld [vmem:[#allocation2 + $0x80] sm:$0xff]  ;;  %s3998_s25 = sshll.u32 %s6267_s15, 4 }
  0x4b   : > { %v5847_v0 = vld [vmem:[%s195_s22 + $0x10] sm:$0xff]  ;;  %v201_v1 = vld [vmem:[%s195_s22] sm:$0xff]  ;;  %v5849_v2 = vld [vmem:[%s195_s22 + $0x18] sm:$0xff]  ;;  %4805 = vmatprep.subr.bf16.mxu1 %v4804_v31  ;;  %v4824_v45 = vpack.c.bf16 %v565_v41, %v564_v40  ;;  %v4828_v53 = vpack.c.bf16 %v567_v49, %v566_v48  ;;  %s200_s28 = scalar_lea.vmem %s6254_s3, %s3998_s25 }
  0x4c   : > { %v211_v3 = vmul.f32 %v5847_v0, %v5847_v0  ;;  %v209_v4 = vmul.f32 %v201_v1, %v201_v1  ;;  %v212_v5 = vmul.f32 %v5849_v2, %v5849_v2  ;;  %v202_v6 = vld [vmem:[%s195_s22 + $0x8] sm:$0xff]  ;;  %v5857_v9 = vld [vmem:[%s195_s22 + $0x20] sm:$0xff]  ;;  %v5867_v16 = vld [vmem:[%s195_s22 + $0x38] sm:$0xff]  ;;  %4807 = vmatpush3.bf16.msra.mxu1 %v4804_v31 }
  0x4d   : > { %v210_v7 = vmul.f32 %v202_v6, %v202_v6  ;;  %v5855_v8 = vld [vmem:[%s195_s22 + $0x28] sm:$0xff]  ;;  %v213_v15 = vmul.f32 %v5857_v9, %v5857_v9  ;;  %v5869_v17 = vld [vmem:[%s195_s22 + $0x30] sm:$0xff]  ;;  %v216_v20 = vmul.f32 %v5867_v16, %v5867_v16  ;;  %4809 = vmatprep.subr.bf16.mxu1 %v4808_v33  ;;  %vm5911_vm3 = vmpackc.low %vm256_vm2, %vm256_vm2 }
  0x4e   : > { %v224_v10 = vsel %vm217_vm0, %v211_v3, 0.0  ;;  %v218_v11 = vsel %vm217_vm0, %v209_v4, 0.0  ;;  %v227_v12 = vsel %vm217_vm0, %v212_v5, 0.0  ;;  %v214_v14 = vmul.f32 %v5855_v8, %v5855_v8  ;;  %v568_v56 = vld [vmem:[#allocation2 + $0x88] sm:$0xff]  ;;  %v569_v57 = vld [vmem:[#allocation2 + $0x90] sm:$0xff] }
  0x4f   : > { %225 = vadd.xlane.f32.xlu1 %v224_v10  ;;  %219 = vadd.xlane.f32.xlu0 %v218_v11  ;;  %v221_v13 = vsel %vm217_vm0, %v210_v7, 0.0  ;;  %v230_v19 = vsel %vm217_vm0, %v213_v15, 0.0  ;;  %v215_v21 = vmul.f32 %v5869_v17, %v5869_v17  ;;  %v239_v22 = vsel %vm217_vm0, %v216_v20, 0.0  ;;  %v572_v4 = vld [vmem:[#allocation2 + $0xa8] sm:$0xff]  ;;  %v573_v5 = vld [vmem:[#allocation2 + $0xb0] sm:$0xff]  ;;  %v574_v7 = vld [vmem:[#allocation2 + $0xb8] sm:$0xff] }
  0x50   : > { %v233_v18 = vsel %vm217_vm0, %v214_v14, 0.0  ;;  %4811 = vmatpush3.bf16.msra.mxu1 %v4808_v33  ;;  %v4832_v61 = vpack.c.bf16 %v569_v57, %v568_v56  ;;  %v576_v10 = vld [vmem:[#allocation2 + $0xc8] sm:$0xff]  ;;  %v577_v11 = vld [vmem:[#allocation2 + $0xd0] sm:$0xff]  ;;  %v404_v15 = vld [vmem:[#allocation2 + $0x40] sm:$0xff] }
  0x51   : > { %v236_v23 = vsel %vm217_vm0, %v215_v21, 0.0  ;;  %4813 = vmatprep.subr.bf16.mxu1 %v4812_v36  ;;  %v3927_v49 = vld [vmem:[#allocation2 + $0x50] ss:$0 sm:$0xff] }
  0x53   : > { %228 = vadd.xlane.f32.xlu1 %v227_v12  ;;  %222 = vadd.xlane.f32.xlu0 %v221_v13  ;;  %v4848_v12 = vpack.c.bf16 %v577_v11, %v576_v10 }
  0x54   : > { %4815 = vmatpush3.bf16.msra.mxu1 %v4812_v36 }
  0x57   : > { %234 = vadd.xlane.f32.xlu1 %v233_v18  ;;  %231 = vadd.xlane.f32.xlu0 %v230_v19  ;;  %v3917_v18 = vld [vmem:[#allocation2 + $0x8] ss:$0 sm:$0xff] }
  0x5b   : > { %240 = vadd.xlane.f32.xlu1 %v239_v22  ;;  %237 = vadd.xlane.f32.xlu0 %v236_v23 }
  0xdc   : > { %v226_v37 = vpop.xlane.xlu1 %225  ;;  %v220_v38 = vpop.xlane.xlu0 %219 }
  0xdd   : > { %v242_v39 = vsel %vm217_vm0, %v201_v1, %v220_v38  ;;  %v244_v42 = vsel %vm217_vm0, %v5847_v0, %v226_v37  ;;  %v570_v0 = vld [vmem:[#allocation2 + $0x98] sm:$0xff]  ;;  %v571_v1 = vld [vmem:[#allocation2 + $0xa0] sm:$0xff] }
  0xde   : > { %4556 = vmatprep.mubr.msk.f32.mxu0 %vm256_vm2, %v242_v39  ;;  %v4836_v3 = vpack.c.bf16 %v571_v1, %v570_v0 }
  0xe0   : > { %v229_v43 = vpop.xlane.xlu1 %228  ;;  %v223_v44 = vpop.xlane.xlu0 %222 }
  0xe1   : > { %v245_v46 = vsel %vm217_vm0, %v5849_v2, %v229_v43  ;;  %v243_v47 = vsel %vm217_vm0, %v202_v6, %v223_v44  ;;  %v4840_v6 = vpack.c.bf16 %v573_v5, %v572_v4  ;;  %v662_v43 = vld [vmem:[#allocation2 + $0xf0] sm:$0xff]  ;;  %v663_v44 = vld [vmem:[#allocation2 + $0xf8] sm:$0xff] }
  0xe2   : > { %v5888_v50 = vpack.c.bf16 %v245_v46, %v244_v42  ;;  %4557 = vmatmul.mubr.msk.f32.vlgmr.msra.gmra.mrb[0].mxu0 %vm256_vm2, %v243_v47  ;;  %v5915_v14 = vpack.c.bf16 %v243_v47, %v242_v39  ;;  %v665_v47 = vld [vmem:[#allocation2 + $0x108] sm:$0xff] }
  0xe3   : > { %4823 = vmatpush3.bf16.msra.mxu0 %v4820_v27  ;;  %4559 = vmatprep.mubr.msk.f32.mxu0 %vm256_vm2, %v244_v42 }
  0xe4   : > { %4825 = vmatprep.subr.bf16.mxu0 %v4824_v45  ;;  %v235_v51 = vpop.xlane.xlu1 %234  ;;  %v232_v52 = vpop.xlane.xlu0 %231 }
  0xe5   : > { %v247_v54 = vsel %vm217_vm0, %v5855_v8, %v235_v51  ;;  %v246_v55 = vsel %vm217_vm0, %v5857_v9, %v232_v52  ;;  %v575_v8 = vld [vmem:[#allocation2 + $0xc0] sm:$0xff] }
  0xe6   : > { %4560 = vmatmul.mubr.msk.f32.gmra.mrb[2].mxu0 %vm256_vm2, %v245_v46  ;;  %v5897_v58 = vpack.c.bf16 %v247_v54, %v246_v55  ;;  %v4844_v9 = vpack.c.bf16 %v575_v8, %v574_v7  ;;  %v4852_v46 = vpack.c.bf16 %v663_v44, %v662_v43 }
  0xe7   : > { %4827 = vmatpush3.bf16.msra.mxu0 %v4824_v45  ;;  %4562 = vmatprep.mubr.msk.f32.mxu0 %vm256_vm2, %v246_v55  ;;  %v664_v45 = vld [vmem:[#allocation2 + $0x100] sm:$0xff] }
  0xe8   : > { %4829 = vmatprep.subr.bf16.mxu0 %v4828_v53  ;;  %v241_v59 = vpop.xlane.xlu1 %240  ;;  %v238_v60 = vpop.xlane.xlu0 %237  ;;  %v4856_v48 = vpack.c.bf16 %v665_v47, %v664_v45 }
  0xe9   : > { %v249_v62 = vsel %vm217_vm0, %v5867_v16, %v241_v59  ;;  %v248_v63 = vsel %vm217_vm0, %v5869_v17, %v238_v60  ;;  %v405_v16 = vld [vmem:[#allocation2 + $0x48] sm:$0xff] }
  0xea   : > { %4563 = vmatmul.mubr.msk.f32.gmra.mrb[4].mxu0 %vm256_vm2, %v247_v54  ;;  %v5905_v2 = vpack.c.bf16 %v249_v62, %v248_v63  ;;  %v4816_v17 = vpack.c.bf16 %v405_v16, %v404_v15 }
  0xeb   : > { %4831 = vmatpush3.bf16.msra.mxu0 %v4828_v53  ;;  %4565 = vmatprep.mubr.msk.f32.mxu0 %vm256_vm2, %v248_v63 }
  0xec   : > { %4833 = vmatprep.subr.bf16.mxu0 %v4832_v61  ;;  %4817 = vmatprep.subr.bf16.mxu1 %v4816_v17 }
  0xed   : > { %4819 = vmatpush3.bf16.msra.mxu1 %v4816_v17 }
  0xee   : > { %4566 = vmatmul.mubr.msk.f32.gmra.mrb[6].mxu0 %vm256_vm2, %v249_v62  ;;  %4853 = vmatprep.subr.bf16.mxu1 %v4852_v46 }
  0xef   : > { %4835 = vmatpush3.bf16.msra.mxu0 %v4832_v61 }
  0xf0   : > { %4837 = vmatprep.subr.bf16.mxu0 %v4836_v3 }
  0xf3   : > { %4839 = vmatpush3.bf16.msra.mxu0 %v4836_v3 }
  0xf4   : > { %4841 = vmatprep.subr.bf16.mxu0 %v4840_v6 }
  0xf7   : > { %4843 = vmatpush3.bf16.msra.mxu0 %v4840_v6 }
  0xf8   : > { %4845 = vmatprep.subr.bf16.mxu0 %v4844_v9 }
  0xfb   : > { %4847 = vmatpush3.bf16.msra.mxu0 %v4844_v9 }
  0xfc   : > { %4849 = vmatprep.subr.bf16.mxu0 %v4848_v12 }
  0xff   : > { %4851 = vmatpush3.bf16.msra.mxu0 %v4848_v12 }
 0x100   : > { %4866 = vmatprep.subr.msk.bf16.mxu0 %vm5911_vm3, %v5915_v14 }
 0x1b5   : > { %v4558_v19 = vpop.f32.mrb[0].mxu0 }
 0x1b6   : > { %v357_v20 = vadd.f32 %v4558_v19, %v3917_v18  ;;  %v351_v21 = vpop.f32.mrb[1].mxu0 }
 0x1b7   : > { %v352_v22 = vadd.f32 %v3917_v18, %v351_v21 }
 0x1b8   : > { %v391_v25 = vmax.f32 %v357_v20, 0.0 }
 0x1b9   : > { %v390_v23 = vmax.f32 %v352_v22, 0.0  ;;  %v4561_v24 = vpop.f32.mrb[2].mxu0 }
 0x1ba   : > { %v367_v26 = vadd.f32 %v4561_v24, %v3917_v18  ;;  %v361_v27 = vpop.f32.mrb[3].mxu0 }
 0x1bb   : > { %v362_v28 = vadd.f32 %v3917_v18, %v361_v27  ;;  %4584 = vmatprep.mubr.msk.f32.mxu1 %vm411_vm4, %v390_v23 }
 0x1bc   : > { %4585 = vmatmul.mubr.msk.f32.vlgmr.msra.gmra.mrb[0].mxu1 %vm411_vm4, %v391_v25  ;;  %v393_v31 = vmax.f32 %v367_v26, 0.0 }
 0x1bd   : > { %v392_v29 = vmax.f32 %v362_v28, 0.0  ;;  %v4564_v30 = vpop.f32.mrb[4].mxu0  ;;  %4855 = vmatpush3.bf16.msra.mxu1 %v4852_v46 }
 0x1be   : > { %v377_v32 = vadd.f32 %v4564_v30, %v3917_v18  ;;  %v371_v33 = vpop.f32.mrb[5].mxu0  ;;  %4857 = vmatprep.subr.bf16.mxu1 %v4856_v48 }
 0x1bf   : > { %v372_v34 = vadd.f32 %v3917_v18, %v371_v33  ;;  %4587 = vmatprep.mubr.msk.f32.mxu1 %vm411_vm4, %v392_v29  ;;  %v3936_v33 = vld [vmem:[#allocation2 + $0xd8] ss:$0 sm:$0xff] }
 0x1c0   : > { %4588 = vmatmul.mubr.msk.f32.gmra.mrb[2].mxu1 %vm411_vm4, %v393_v31  ;;  %v395_v37 = vmax.f32 %v377_v32, 0.0 }
 0x1c1   : > { %v394_v35 = vmax.f32 %v372_v34, 0.0  ;;  %v4567_v36 = vpop.f32.mrb[6].mxu0  ;;  %4859 = vmatpush3.bf16.msra.mxu1 %v4856_v48 }
 0x1c2   : > { %v387_v38 = vadd.f32 %v4567_v36, %v3917_v18  ;;  %v381_v39 = vpop.f32.mrb[7].mxu0 }
 0x1c3   : > { %v382_v40 = vadd.f32 %v3917_v18, %v381_v39  ;;  %4590 = vmatprep.mubr.msk.f32.mxu1 %vm411_vm4, %v394_v35 }
 0x1c4   : > { %4591 = vmatmul.mubr.msk.f32.gmra.mrb[4].mxu1 %vm411_vm4, %v395_v37  ;;  %v397_v42 = vmax.f32 %v387_v38, 0.0  ;;  %v659_v37 = vld [vmem:[#allocation2 + $0xe8] sm:$0xff] }
 0x1c5   : > { %v396_v41 = vmax.f32 %v382_v40, 0.0 }
 0x1c7   : > { %4593 = vmatprep.mubr.msk.f32.mxu1 %vm411_vm4, %v396_v41 }
 0x1c8   : > { %4594 = vmatmul.mubr.msk.f32.gmra.mrb[6].mxu1 %vm411_vm4, %v397_v42 }
 0x28f   : > { %v4586_v51 = vpop.f32.mrb[0].mxu1 }
 0x290   : > { %v508_v52 = vadd.f32 %v4586_v51, %v3927_v49  ;;  %v502_v53 = vpop.f32.mrb[1].mxu1 }
 0x291   : > { %v503_v54 = vadd.f32 %v3927_v49, %v502_v53 }
 0x292   : > { %v542_v55 = vmax.f32 %v508_v52, 0.0  ;;  %v5969_v52 = vld [vmem:[#allocation2 + $0x128] sm:$0xff] }
 0x293   : > { %v541_v56 = vmax.f32 %v503_v54, 0.0  ;;  %v4589_v57 = vpop.f32.mrb[2].mxu1  ;;  %v5971_v54 = vld [vmem:[#allocation2 + $0x120] sm:$0xff] }
 0x294   : > { %v518_v59 = vadd.f32 %v4589_v57, %v3927_v49  ;;  %v512_v60 = vpop.f32.mrb[3].mxu1 }
 0x295   : > { %v5928_v61 = vpack.c.bf16 %v542_v55, %v541_v56  ;;  %v513_v62 = vadd.f32 %v3927_v49, %v512_v60 }
 0x296   : > { %v544_v63 = vmax.f32 %v518_v59, 0.0 }
 0x297   : > { %v543_v0 = vmax.f32 %v513_v62, 0.0  ;;  %v4592_v1 = vpop.f32.mrb[4].mxu1 }
 0x298   : > { %v528_v3 = vadd.f32 %v4592_v1, %v3927_v49  ;;  %v522_v4 = vpop.f32.mrb[5].mxu1 }
 0x299   : > { %v5930_v5 = vpack.c.bf16 %v544_v63, %v543_v0  ;;  %v523_v6 = vadd.f32 %v3927_v49, %v522_v4 }
 0x29a   : > { %v546_v7 = vmax.f32 %v528_v3, 0.0 }
 0x29b   : > { %v545_v8 = vmax.f32 %v523_v6, 0.0  ;;  %v4595_v9 = vpop.f32.mrb[6].mxu1 }
 0x29c   : > { %v550_v10 = vmax.f32 %v542_v55, %v546_v7  ;;  %v538_v11 = vadd.f32 %v4595_v9, %v3927_v49  ;;  %v532_v12 = vpop.f32.mrb[7].mxu1 }
 0x29d   : > { %v549_v15 = vmax.f32 %v541_v56, %v545_v8  ;;  %v4896_v16 = vpack.c.bf16 %v546_v7, %v545_v8  ;;  %v533_v17 = vadd.f32 %v3927_v49, %v532_v12 }
 0x29e   : > { %v548_v18 = vmax.f32 %v538_v11, 0.0 }
 0x29f   : > { %v553_v19 = vmax.f32 %v549_v15, %v550_v10  ;;  %v547_v20 = vmax.f32 %v533_v17, 0.0 }
 0x2a0   : > { %v552_v21 = vmax.f32 %v544_v63, %v548_v18 }
 0x2a1   : > { %v551_v22 = vmax.f32 %v543_v0, %v547_v20  ;;  %v4900_v23 = vpack.c.bf16 %v548_v18, %v547_v20 }
 0x2a3   : > { %v554_v24 = vmax.f32 %v551_v22, %v552_v21 }
 0x2a5   : > { %v555_v25 = vmax.f32 %v553_v19, %v554_v24 }
 0x2a7   : > { %v556_v26 = vrot.slane %v555_v25, 4 }
 0x2a9   : > { %v557_v27 = vmax.f32 %v555_v25, %v556_v26 }
 0x2ab   : > { %v558_v28 = vrot.slane %v557_v27, 2 }
 0x2ad   : > { %v559_v29 = vmax.f32 %v557_v27, %v558_v28 }
 0x2af   : > { %v560_v30 = vrot.slane %v559_v29, 1 }
 0x2b1   : > { %v561_v31 = vmax.f32 %v559_v29, %v560_v30 }
 0x2b3   : > { %4628 = vmatprep.mubr.f32.mxu0 %v561_v31 }
 0x2b4   : > { %4629 = vmatmul.mubr.f32.vlgmr.msra.gmra.mrb[8].mxu0 %v561_v31 }
 0x2b5   : > { %4869 = vmatpush3.bf16.xpose.msk.msra.mxu0 %vm5911_vm3, %v5915_v14  ;;  %v666_v14 = vld [vmem:[#allocation2 + $0x110] sm:$0xff] }
 0x2b6   : > { %4872 = vmatprep.subr.msk.bf16.mxu0 %vm5911_vm3, %v5888_v50 }
 0x2bd   : > { %4875 = vmatpush3.bf16.xpose.msk.msra.mxu0 %vm5911_vm3, %v5888_v50  ;;  %v667_v50 = vld [vmem:[#allocation2 + $0x118] sm:$0xff] }
 0x2be   : > { %4878 = vmatprep.subr.msk.bf16.mxu0 %vm5911_vm3, %v5897_v58  ;;  %v4860_v32 = vpack.c.bf16 %v667_v50, %v666_v14 }
 0x2c0   : > { %4861 = vmatprep.subr.bf16.mxu1 %v4860_v32 }
 0x2c1   : > { %4863 = vmatpush3.bf16.msra.mxu1 %v4860_v32 }
 0x2c5   : > { %4881 = vmatpush3.bf16.xpose.msk.msra.mxu0 %vm5911_vm3, %v5897_v58  ;;  %v658_v58 = vld [vmem:[#allocation2 + $0xe0] sm:$0xff] }
 0x2c6   : > { %4884 = vmatprep.subr.msk.bf16.mxu0 %vm5911_vm3, %v5905_v2 }
 0x2cd   : > { %4887 = vmatpush3.bf16.xpose.msk.msra.mxu0 %vm5911_vm3, %v5905_v2 }
 0x2ce   : > { %4889 = vmatprep.subr.bf16.mxu0 %v5928_v61 }
 0x387   : > { %v4630_v34 = vpop.f32.mrb[8].mxu0 }
 0x388   : > { %v655_v35 = vadd.f32 %v4630_v34, %v3936_v33  ;;  %v649_v36 = vpop.f32.mrb[9].mxu0 }
 0x389   : > { %v650_v38 = vadd.f32 %v3936_v33, %v649_v36 }
 0x38a   : > { %v661_v40 = vmul.f32 %v659_v37, %v655_v35 }
 0x38b   : > { %v660_v39 = vmul.f32 %v658_v58, %v650_v38 }
 0x38d   : > { %4643 = vmatprep.mubr.msk.f32.mxu1 %vm668_vm5, %v660_v39 }
 0x38e   : > { %4644 = vmatmul.mubr.msk.f32.vlgmr.msra.gmra.mrb[8].mxu1 %vm668_vm5, %v661_v40 }
 0x461   : > { %v4645_v2 = vpop.f32.mrb[8].mxu1 }
 0x462   : > { %5639 = vtanh.f32 %v4645_v2  ;;  %v741_v13 = vpop.f32.mrb[9].mxu1 }
 0x463   : > { %5641 = vtanh.f32 %v741_v13 }
 0x46c   : > { %v5954_v41 = vpop.eup %5639 }
 0x46d   : > { %v5956_v42 = vpop.eup %5641  ;;  %v753_v43 = vmul.f32 2.0, %v5954_v41 }
 0x46e   : > { %v752_v44 = vmul.f32 2.0, %v5956_v42 }
 0x46f   : > { %v755_v46 = vsel %vm217_vm0, %v753_v43, -1.0 }
 0x470   : > { %v754_v45 = vsel %vm217_vm0, %v752_v44, -1.0 }
 0x471   : > { %4662 = vmatprep.mubr.msk.f32.mxu0 %vm256_vm2, %v754_v45 }
 0x472   : > { %4663 = vmatmul.mubr.msk.f32.vlgmr.msra.gmra.mrb[10].mxu0 %vm256_vm2, %v755_v46 }
 0x473   : > { %4891 = vmatpush3.bf16.msra.mxu0 %v5928_v61 }
 0x474   : > { %4893 = vmatprep.subr.bf16.mxu0 %v5930_v5 }
 0x477   : > { %4895 = vmatpush3.bf16.msra.mxu0 %v5930_v5 }
 0x478   : > { %4897 = vmatprep.subr.bf16.mxu0 %v4896_v16 }
 0x47b   : > { %4899 = vmatpush3.bf16.msra.mxu0 %v4896_v16 }
 0x47c   : > { %4901 = vmatprep.subr.bf16.mxu0 %v4900_v23 }
 0x47f   : > { %4903 = vmatpush3.bf16.msra.mxu0 %v4900_v23 }
 0x545   : > { %v4664_v47 = vpop.f32.mrb[10].mxu0 }
 0x546   : > { %v828_v48 = vpop.f32.mrb[11].mxu0  ;;  %v842_v49 = vsel %vm411_vm4, %v4664_v47, -inf }
 0x547   : > { %843 = vmax.xlane.f32.xlu1 %v842_v49  ;;  %v839_v51 = vsel %vm411_vm4, %v828_v48, -inf }
 0x548   : > { %840 = vmax.xlane.f32.xlu0 %v839_v51 }
 0x5d4   : > { %v844_v53 = vpop.xlane.xlu1 %843 }
 0x5d5   : > { %vm846_vm6 = vcmp.ge.f32.partialorder %v4664_v47, %v844_v53  ;;  %v841_v55 = vpop.xlane.xlu0 %840 }
 0x5d6   : > { %vm845_vm7 = vcmp.ge.f32.partialorder %v828_v48, %v841_v55  ;;  %v848_v56 = vsel %vm846_vm6, %v5969_v52, 64.0 }
 0x5d7   : > { %v852_v57 = vsel %vm411_vm4, %v848_v56, inf  ;;  %v847_v59 = vsel %vm845_vm7, %v5971_v54, 64.0 }
 0x5d8   : > { %853 = vmin.xlane.f32.xlu1 %v852_v57  ;;  %v849_v60 = vsel %vm411_vm4, %v847_v59, inf }
 0x5d9   : > { %850 = vmin.xlane.f32.xlu0 %v849_v60 }
 0x665   : > { %v5977_v61 = vpop.xlane.xlu1 %853 }
 0x666   : > { %vm856_vm8 = vcmp.eq.f32.partialorder %v5969_v52, %v5977_v61  ;;  %v5981_v62 = vpop.xlane.xlu0 %850 }
 0x667   : > { %vm855_vm9 = vcmp.eq.f32.partialorder %v5971_v54, %v5981_v62  ;;  %v858_v63 = vsel %vm856_vm8, -1e+30, %v4664_v47 }
 0x668   : > { %v862_v0 = vsel %vm411_vm4, %v858_v63, -inf  ;;  %v857_v1 = vsel %vm855_vm9, -1e+30, %v828_v48 }
 0x669   : > { %863 = vmax.xlane.f32.xlu1 %v862_v0  ;;  %v859_v3 = vsel %vm411_vm4, %v857_v1, -inf }
 0x66a   : > { %860 = vmax.xlane.f32.xlu0 %v859_v3 }
 0x6f6   : > { %v864_v4 = vpop.xlane.xlu1 %863 }
 0x6f7   : > { %vm866_vm10 = vcmp.ge.f32.partialorder %v858_v63, %v864_v4  ;;  %v861_v5 = vpop.xlane.xlu0 %860 }
 0x6f8   : > { %vm865_vm11 = vcmp.ge.f32.partialorder %v857_v1, %v861_v5  ;;  %v868_v6 = vsel %vm866_vm10, %v5969_v52, 64.0 }
 0x6f9   : > { %v872_v7 = vsel %vm411_vm4, %v868_v6, inf  ;;  %v867_v8 = vsel %vm865_vm11, %v5971_v54, 64.0 }
 0x6fa   : > { %873 = vmin.xlane.f32.xlu1 %v872_v7  ;;  %v869_v9 = vsel %vm411_vm4, %v867_v8, inf }
 0x6fb   : > { %870 = vmin.xlane.f32.xlu0 %v869_v9 }
 0x787   : > { %v5991_v10 = vpop.xlane.xlu1 %873 }
 0x788   : > { %vm876_vm12 = vcmp.eq.f32.partialorder %v5969_v52, %v5991_v10  ;;  %v5995_v11 = vpop.xlane.xlu0 %870 }
 0x789   : > { %vm875_vm13 = vcmp.eq.f32.partialorder %v5971_v54, %v5995_v11  ;;  %v878_v12 = vsel %vm876_vm12, -1e+30, %v858_v63 }
 0x78a   : > { %v882_v15 = vsel %vm411_vm4, %v878_v12, -inf  ;;  %v877_v16 = vsel %vm875_vm13, -1e+30, %v857_v1 }
 0x78b   : > { %883 = vmax.xlane.f32.xlu1 %v882_v15  ;;  %v879_v17 = vsel %vm411_vm4, %v877_v16, -inf }
 0x78c   : > { %880 = vmax.xlane.f32.xlu0 %v879_v17 }
 0x818   : > { %v884_v18 = vpop.xlane.xlu1 %883 }
 0x819   : > { %vm886_vm14 = vcmp.ge.f32.partialorder %v878_v12, %v884_v18  ;;  %v881_v19 = vpop.xlane.xlu0 %880 }
 0x81a   : > { %vm885_vm15 = vcmp.ge.f32.partialorder %v877_v16, %v881_v19  ;;  %v888_v20 = vsel %vm886_vm14, %v5969_v52, 64.0 }
 0x81b   : > { %v892_v21 = vsel %vm411_vm4, %v888_v20, inf  ;;  %v887_v22 = vsel %vm885_vm15, %v5971_v54, 64.0 }
 0x81c   : > { %893 = vmin.xlane.f32.xlu1 %v892_v21  ;;  %v889_v23 = vsel %vm411_vm4, %v887_v22, inf  ;;  %v5733_v22 = vmov 0  }
 0x81d   : > { %890 = vmin.xlane.f32.xlu0 %v889_v23  ;;  %5638 = vset.pattern.permute.xlu1 %v5733_v22 }
 0x81e   : > { %5637 = vset.pattern.permute.xlu0 %v5733_v22 }
 0x8a9   : > { %v6005_v24 = vpop.xlane.xlu1 %893 }
 0x8aa   : > { %vm896_vm3 = vcmp.eq.f32.partialorder %v5969_v52, %v6005_v24  ;;  %v6009_v25 = vpop.xlane.xlu0 %890 }
 0x8ab   : > { %vm895_vm5 = vcmp.eq.f32.partialorder %v5971_v54, %v6009_v25  ;;  %v898_v26 = vsel %vm896_vm3, -1e+30, %v878_v12 }
 0x8ac   : > { %v902_v27 = vsel %vm411_vm4, %v898_v26, -inf  ;;  %v897_v28 = vsel %vm895_vm5, -1e+30, %v877_v16 }
 0x8ad   : > { %903 = vmax.xlane.f32.xlu1 %v902_v27  ;;  %v899_v29 = vsel %vm411_vm4, %v897_v28, -inf }
 0x8ae   : > { %900 = vmax.xlane.f32.xlu0 %v899_v29 }
 0x93a   : > { %v904_v30 = vpop.xlane.xlu1 %903 }
 0x93b   : > { %vm906_vm6 = vcmp.ge.f32.partialorder %v898_v26, %v904_v30  ;;  %v901_v31 = vpop.xlane.xlu0 %900 }
 0x93c   : > { %vm905_vm7 = vcmp.ge.f32.partialorder %v897_v28, %v901_v31  ;;  %v908_v14 = vsel %vm906_vm6, %v5969_v52, 64.0 }
 0x93d   : > { %v912_v50 = vsel %vm411_vm4, %v908_v14, inf  ;;  %v907_v32 = vsel %vm905_vm7, %v5971_v54, 64.0  ;;  %v1332_v14 = vld [vmem:[#allocation2 + $0x1b0] sm:$0xff] }
 0x93e   : > { %913 = vmin.xlane.f32.xlu1 %v912_v50  ;;  %v909_v33 = vsel %vm411_vm4, %v907_v32, inf  ;;  %v1333_v50 = vld [vmem:[#allocation2 + $0x1b8] sm:$0xff] }
 0x93f   : > { %910 = vmin.xlane.f32.xlu0 %v909_v33  ;;  %v1350_v33 = vld [vmem:[#allocation2 + $0x240] sm:$0xff] }
 0x9cb   : > { %v6019_v34 = vpop.xlane.xlu1 %913 }
 0x9cc   : > { %vm916_vm8 = vcmp.eq.f32.partialorder %v5969_v52, %v6019_v34  ;;  %v6023_v35 = vpop.xlane.xlu0 %910 }
 0x9cd   : > { %vm915_vm9 = vcmp.eq.f32.partialorder %v5971_v54, %v6023_v35  ;;  %v918_v36 = vsel %vm916_vm8, -1e+30, %v898_v26 }
 0x9ce   : > { %v922_v58 = vsel %vm411_vm4, %v918_v36, -inf  ;;  %v917_v37 = vsel %vm915_vm9, -1e+30, %v897_v28 }
 0x9cf   : > { %923 = vmax.xlane.f32.xlu1 %v922_v58  ;;  %v919_v38 = vsel %vm411_vm4, %v917_v37, -inf  ;;  %v4906_v58 = vpack.c.bf16 %v1333_v50, %v1332_v14  ;;  %v1359_v14 = vld [vmem:[#allocation2 + $0x288] sm:$0xff] }
 0x9d0   : > { %920 = vmax.xlane.f32.xlu0 %v919_v38  ;;  %v1381_v38 = vld [vmem:[#allocation2 + $0x338] sm:$0xff] }
 0xa5c   : > { %v924_v39 = vpop.xlane.xlu1 %923 }
 0xa5d   : > { %vm926_vm10 = vcmp.ge.f32.partialorder %v918_v36, %v924_v39  ;;  %v921_v40 = vpop.xlane.xlu0 %920  ;;  %v5734_v39 = vmov 0.0  }
 0xa5e   : > { %vm925_vm11 = vcmp.ge.f32.partialorder %v917_v37, %v921_v40  ;;  %v928_v2 = vsel %vm926_vm10, %v5969_v52, 64.0 }
 0xa5f   : > { %v932_v13 = vsel %vm411_vm4, %v928_v2, inf  ;;  %v927_v43 = vsel %vm925_vm11, %v5971_v54, 64.0 }
 0xa60   : > { %933 = vmin.xlane.f32.xlu1 %v932_v13  ;;  %v929_v44 = vsel %vm411_vm4, %v927_v43, inf  ;;  %v1334_v13 = vld [vmem:[#allocation2 + $0x1c0] sm:$0xff]  ;;  %v1335_v43 = vld [vmem:[#allocation2 + $0x1c8] sm:$0xff] }
 0xa61   : > { %930 = vmin.xlane.f32.xlu0 %v929_v44 }
 0xaed   : > { %v6033_v45 = vpop.xlane.xlu1 %933 }
 0xaee   : > { %vm936_vm12 = vcmp.eq.f32.partialorder %v5969_v52, %v6033_v45  ;;  %v6037_v46 = vpop.xlane.xlu0 %930 }
 0xaef   : > { %vm935_vm13 = vcmp.eq.f32.partialorder %v5971_v54, %v6037_v46  ;;  %v938_v47 = vsel %vm936_vm12, -1e+30, %v918_v36  ;;  %v998_v36 = vld [vmem:[#allocation2 + $0x148] sm:$0xff] }
 0xaf0   : > { %v942_v48 = vsel %vm411_vm4, %v938_v47, -inf  ;;  %v937_v49 = vsel %vm935_vm13, -1e+30, %v917_v37  ;;  %v1380_v37 = vld [vmem:[#allocation2 + $0x330] sm:$0xff] }
 0xaf1   : > { %943 = vmax.xlane.f32.xlu1 %v942_v48  ;;  %v939_v51 = vsel %vm411_vm4, %v937_v49, -inf  ;;  %v4936_v44 = vpack.c.bf16 %v1381_v38, %v1380_v37  ;;  %v1352_v48 = vld [vmem:[#allocation2 + $0x250] sm:$0xff] }
 0xaf2   : > { %940 = vmax.xlane.f32.xlu0 %v939_v51  ;;  %v1365_v51 = vld [vmem:[#allocation2 + $0x2b8] sm:$0xff]  ;;  %v1360_v38 = vld [vmem:[#allocation2 + $0x290] sm:$0xff] }
 0xaf3   : > { %4937 = vmatprep.subr.bf16.mxu1 %v4936_v44 }
 0xb7e   : > { %v944_v53 = vpop.xlane.xlu1 %943 }
 0xb7f   : > { %vm946_vm14 = vcmp.ge.f32.partialorder %v938_v47, %v944_v53  ;;  %v941_v55 = vpop.xlane.xlu0 %940 }
 0xb80   : > { %vm945_vm15 = vcmp.ge.f32.partialorder %v937_v49, %v941_v55  ;;  %v948_v56 = vsel %vm946_vm14, %v5969_v52, 64.0 }
 0xb81   : > { %v952_v57 = vsel %vm411_vm4, %v948_v56, inf  ;;  %v947_v59 = vsel %vm945_vm15, %v5971_v54, 64.0  ;;  %v1382_v56 = vld [vmem:[#allocation2 + $0x340] sm:$0xff] }
 0xb82   : > { %953 = vmin.xlane.f32.xlu1 %v952_v57  ;;  %v949_v60 = vsel %vm411_vm4, %v947_v59, inf  ;;  %v1383_v57 = vld [vmem:[#allocation2 + $0x348] sm:$0xff]  ;;  %v999_v59 = vld [vmem:[#allocation2 + $0x150] sm:$0xff] }
 0xb83   : > { %950 = vmin.xlane.f32.xlu0 %v949_v60  ;;  %v4910_v60 = vpack.c.bf16 %v1335_v43, %v1334_v13  ;;  %v1003_v43 = vld [vmem:[#allocation2 + $0x170] sm:$0xff] }
 0xc0f   : > { %v954_v63 = vpop.xlane.xlu1 %953 }
 0xc10   : > { %vm956_vm3 = vcmp.eq.f32.partialorder %v5969_v52, %v954_v63  ;;  %v951_v0 = vpop.xlane.xlu0 %950 }
 0xc11   : > { %vm955_vm5 = vcmp.eq.f32.partialorder %v5971_v54, %v951_v0  ;;  %v958_v1 = vsel %vm956_vm3, -1e+30, %v938_v47 }
 0xc12   : > { %v962_v3 = vsel %vm411_vm4, %v958_v1, -inf  ;;  %v957_v4 = vsel %vm955_vm5, -1e+30, %v937_v49  ;;  %v1353_v49 = vld [vmem:[#allocation2 + $0x258] sm:$0xff] }
 0xc13   : > { %963 = vmax.xlane.f32.xlu1 %v962_v3  ;;  %v959_v5 = vsel %vm411_vm4, %v957_v4, -inf  ;;  %v4912_v3 = vpack.c.bf16 %v1353_v49, %v1352_v48  ;;  %v1345_v48 = vld [vmem:[#allocation2 + $0x218] sm:$0xff] }
 0xc14   : > { %960 = vmax.xlane.f32.xlu0 %v959_v5  ;;  %v1337_v5 = vld [vmem:[#allocation2 + $0x1d8] sm:$0xff] }
 0xca0   : > { %v964_v6 = vpop.xlane.xlu1 %963 }
 0xca1   : > { %vm966_vm6 = vcmp.ge.f32.partialorder %v958_v1, %v964_v6  ;;  %v961_v7 = vpop.xlane.xlu0 %960  ;;  %v1384_v6 = vld [vmem:[#allocation2 + $0x350] sm:$0xff] }
 0xca2   : > { %vm965_vm7 = vcmp.ge.f32.partialorder %v957_v4, %v961_v7  ;;  %v968_v8 = vsel %vm966_vm6, %v5969_v52, 64.0 }
 0xca3   : > { %v972_v9 = vsel %vm411_vm4, %v968_v8, inf  ;;  %v967_v12 = vsel %vm965_vm7, %v5971_v54, 64.0 }
 0xca4   : > { %973 = vmin.xlane.f32.xlu1 %v972_v9  ;;  %v969_v15 = vsel %vm411_vm4, %v967_v12, inf  ;;  %v1354_v9 = vld [vmem:[#allocation2 + $0x260] sm:$0xff]  ;;  %v1355_v12 = vld [vmem:[#allocation2 + $0x268] sm:$0xff] }
 0xca5   : > { %970 = vmin.xlane.f32.xlu0 %v969_v15 }
 0xd31   : > { %v974_v16 = vpop.xlane.xlu1 %973 }
 0xd32   : > { %vm976_vm8 = vcmp.eq.f32.partialorder %v5969_v52, %v974_v16  ;;  %v971_v17 = vpop.xlane.xlu0 %970 }
 0xd33   : > { %vm975_vm9 = vcmp.eq.f32.partialorder %v5971_v54, %v971_v17  ;;  %v978_v18 = vsel %vm976_vm8, -1e+30, %v958_v1  ;;  %v1367_v1 = vld [vmem:[#allocation2 + $0x2c8] sm:$0xff] }
 0xd34   : > { %v982_v19 = vsel %vm411_vm4, %v978_v18, -inf  ;;  %v977_v20 = vsel %vm975_vm9, -1e+30, %v957_v4  ;;  %v1336_v4 = vld [vmem:[#allocation2 + $0x1d0] sm:$0xff] }
 0xd35   : > { %983 = vmax.xlane.f32.xlu1 %v982_v19  ;;  %v979_v21 = vsel %vm411_vm4, %v977_v20, -inf  ;;  %v1369_v19 = vld [vmem:[#allocation2 + $0x2d8] sm:$0xff]  ;;  %v4914_v22 = vpack.c.bf16 %v1337_v5, %v1336_v4 }
 0xd36   : > { %980 = vmax.xlane.f32.xlu0 %v979_v21  ;;  %v1000_v21 = vld [vmem:[#allocation2 + $0x158] sm:$0xff] }
 0xdc2   : > { %v984_v23 = vpop.xlane.xlu1 %983 }
 0xdc3   : > { %vm986_vm10 = vcmp.ge.f32.partialorder %v978_v18, %v984_v23  ;;  %v981_v26 = vpop.xlane.xlu0 %980  ;;  %v1368_v18 = vld [vmem:[#allocation2 + $0x2d0] sm:$0xff]  ;;  %v4916_v23 = vpack.c.bf16 %v1355_v12, %v1354_v9  ;;  %v1362_v12 = vld [vmem:[#allocation2 + $0x2a0] sm:$0xff] }
 0xdc4   : > { %vm985_vm11 = vcmp.ge.f32.partialorder %v977_v20, %v981_v26  ;;  %v988_v27 = vsel %vm986_vm10, %v5969_v52, 64.0  ;;  %v1338_v26 = vld [vmem:[#allocation2 + $0x1e0] sm:$0xff] }
 0xdc5   : > { %v992_v28 = vsel %vm411_vm4, %v988_v27, inf  ;;  %v987_v29 = vsel %vm985_vm11, %v5971_v54, 64.0  ;;  %v1339_v27 = vld [vmem:[#allocation2 + $0x1e8] sm:$0xff] }
 0xdc6   : > { %993 = vmin.xlane.f32.xlu1 %v992_v28  ;;  %v989_v30 = vsel %vm411_vm4, %v987_v29, inf  ;;  %v1356_v29 = vld [vmem:[#allocation2 + $0x270] sm:$0xff] }
 0xdc7   : > { %990 = vmin.xlane.f32.xlu0 %v989_v30  ;;  %v1357_v30 = vld [vmem:[#allocation2 + $0x278] sm:$0xff] }
 0xdd7   : > { %1018 = vperm.xlu1 %5638, %v5977_v61  }
 0xddb   : > { %1023 = vperm.xlu1 %5638, %v5995_v11   ;;  %v996_v11 = vld [vmem:[#allocation2 + $0x138] sm:$0xff] }
 0xddd   : > { %1013 = vperm.xlu0 %5637, %v5981_v62   ;;  %v1348_v62 = vld [vmem:[#allocation2 + $0x230] sm:$0xff] }
 0xddf   : > { %1028 = vperm.xlu1 %5638, %v5991_v10   ;;  %v1349_v10 = vld [vmem:[#allocation2 + $0x238] sm:$0xff] }
 0xde0   : > { %v4904_v31 = vpack.c.bf16 %v1349_v10, %v1348_v62  ;;  %v4918_v62 = vpack.c.bf16 %v1339_v27, %v1338_v26  ;;  %v4920_v10 = vpack.c.bf16 %v1357_v30, %v1356_v29  ;;  %v1389_v26 = vld [vmem:[#allocation2 + $0x378] sm:$0xff]  ;;  %v1412_v30 = vld [vmem:[#allocation2 + $0x430] sm:$0xff] }
 0xde1   : > { %1058 = vperm.xlu0 %5637, %v6033_v45   ;;  %v1364_v45 = vld [vmem:[#allocation2 + $0x2b0] sm:$0xff]  ;;  %v1373_v29 = vld [vmem:[#allocation2 + $0x2f8] sm:$0xff] }
 0xde2   : > { %4905 = vmatprep.subr.bf16.mxu0 %v4904_v31  ;;  %v4938_v55 = vpack.c.bf16 %v1365_v51, %v1364_v45  ;;  %v1006_v51 = vld [vmem:[#allocation2 + $0x188] sm:$0xff] }
 0xde3   : > { %1033 = vperm.xlu1 %5638, %v6009_v25   ;;  %v997_v25 = vld [vmem:[#allocation2 + $0x140] sm:$0xff] }
 0xde4   : > { %4939 = vmatpush3.bf16.msra.mxu1 %v4938_v55  ;;  %v1005_v55 = vld [vmem:[#allocation2 + $0x180] sm:$0xff] }
 0xde5   : > { %1068 = vperm.xlu0 %5637, %v954_v63   ;;  %v4940_v63 = vpack.c.bf16 %v1383_v57, %v1382_v56 }
 0xde7   : > { %1038 = vperm.xlu1 %5638, %v6005_v24   ;;  %v995_v24 = vld [vmem:[#allocation2 + $0x130] sm:$0xff]  ;;  %4941 = vmatprep.subr.bf16.mxu1 %v4940_v63 }
 0xde9   : > { %1078 = vperm.xlu0 %5637, %v974_v16   ;;  %v1385_v16 = vld [vmem:[#allocation2 + $0x358] sm:$0xff] }
 0xdeb   : > { %1043 = vperm.xlu1 %5638, %v6023_v35  }
 0xdef   : > { %1048 = vperm.xlu1 %5638, %v6019_v34   ;;  %v1351_v34 = vld [vmem:[#allocation2 + $0x248] sm:$0xff] }
 0xdf0   : > { %v4908_v2 = vpack.c.bf16 %v1351_v34, %v1350_v33  ;;  %v1002_v33 = vld [vmem:[#allocation2 + $0x168] sm:$0xff] }
 0xdf3   : > { %1053 = vperm.xlu1 %5638, %v6037_v46  }
 0xdf7   : > { %1063 = vperm.xlu1 %5638, %v951_v0   ;;  %v1366_v0 = vld [vmem:[#allocation2 + $0x2c0] sm:$0xff] }
 0xdf8   : > { %v4942_v15 = vpack.c.bf16 %v1367_v1, %v1366_v0  ;;  %v1007_v1 = vld [vmem:[#allocation2 + $0x190] sm:$0xff] }
 0xdfa   : > { %4943 = vmatpush3.bf16.msra.mxu1 %v4942_v15  ;;  %v1363_v15 = vld [vmem:[#allocation2 + $0x2a8] sm:$0xff] }
 0xdfb   : > { %1073 = vperm.xlu1 %5638, %v971_v17   ;;  %v4944_v17 = vpack.c.bf16 %v1385_v16, %v1384_v6  ;;  %v1370_v16 = vld [vmem:[#allocation2 + $0x2e0] sm:$0xff] }
 0xdfd   : > { %4945 = vmatprep.subr.bf16.mxu1 %v4944_v17  ;;  %v4932_v17 = vpack.c.bf16 %v1363_v15, %v1362_v12  ;;  %v1400_v12 = vld [vmem:[#allocation2 + $0x3d0] sm:$0xff]  ;;  %v1401_v15 = vld [vmem:[#allocation2 + $0x3d8] sm:$0xff] }
 0xe53   : > { %v994_v52 = vpop.xlane.xlu1 %993 }
 0xe54   : > { %1088 = vperm.xlu0 %5637, %v994_v52   ;;  %v991_v54 = vpop.xlane.xlu0 %990  ;;  %v4946_v52 = vpack.c.bf16 %v1369_v19, %v1368_v18  ;;  %v1371_v18 = vld [vmem:[#allocation2 + $0x2e8] sm:$0xff]  ;;  %v1346_v19 = vld [vmem:[#allocation2 + $0x220] sm:$0xff] }
 0xe55   : > { %1083 = vperm.xlu1 %5638, %v991_v54  }
 0xe56   : > { %4947 = vmatpush3.bf16.msra.mxu1 %v4946_v52 }
 0xe57   : > { %v1019_v61 = vpop.permute.xlu1 %1018 }
 0xe58   : > { %vm1092_vm12 = vcmp.eq.f32.partialorder %v996_v11, %v1019_v61  ;;  %v1001_v61 = vld [vmem:[#allocation2 + $0x160] sm:$0xff]  ;;  %v1340_v11 = vld [vmem:[#allocation2 + $0x1f0] sm:$0xff] }
 0xe59   : > { %v3950_v46 = vsel %vm1092_vm12, 1.0, %v5734_v39 }
 0xe5b   : > { %v1024_v32 = vpop.permute.xlu1 %1023 }
 0xe5c   : > { %v1014_v35 = vpop.permute.xlu0 %1013  ;;  %vm1093_vm13 = vcmp.eq.f32.partialorder %v997_v25, %v1024_v32  ;;  %v1341_v25 = vld [vmem:[#allocation2 + $0x1f8] sm:$0xff] }
 0xe5d   : > { %vm1091_vm14 = vcmp.eq.f32.partialorder %v995_v24, %v1014_v35  ;;  %v3951_v53 = vsel %vm1093_vm13, 1.0, %v5734_v39  ;;  %v1358_v24 = vld [vmem:[#allocation2 + $0x280] sm:$0xff]  ;;  %v4922_v34 = vpack.c.bf16 %v1341_v25, %v1340_v11 }
 0xe5e   : > { %v3949_v40 = vsel %vm1091_vm14, 1.0, %v5734_v39  ;;  %v4924_v35 = vpack.c.bf16 %v1359_v14, %v1358_v24  ;;  %v1374_v25 = vld [vmem:[#allocation2 + $0x300] sm:$0xff]  ;;  %v1392_v14 = vld [vmem:[#allocation2 + $0x390] sm:$0xff] }
 0xe5f   : > { %4681 = vmatprep.mubr.msk.f32.mxu0 %vm411_vm4, %v3949_v40  ;;  %v1029_v47 = vpop.permute.xlu1 %1028  ;;  %v1361_v40 = vld [vmem:[#allocation2 + $0x298] sm:$0xff] }
 0xe60   : > { %vm1094_vm15 = vcmp.eq.f32.partialorder %v998_v36, %v1029_v47  ;;  %4682 = vmatmul.mubr.msk.f32.vlgmr.msra.gmra.mrb[12].mxu0 %vm411_vm4, %v3950_v46  ;;  %v1059_v50 = vpop.permute.xlu0 %1058  ;;  %v1342_v36 = vld [vmem:[#allocation2 + $0x200] sm:$0xff]  ;;  %v4928_v46 = vpack.c.bf16 %v1361_v40, %v1360_v38  ;;  %v1344_v47 = vld [vmem:[#allocation2 + $0x210] sm:$0xff]  ;;  %v1379_v40 = vld [vmem:[#allocation2 + $0x328] sm:$0xff] }
 0xe61   : > { %4684 = vmatprep.mubr.msk.f32.mxu0 %vm411_vm4, %v3951_v53  ;;  %4907 = vmatpush3.bf16.msra.mxu0 %v4906_v58  ;;  %v3952_v7 = vsel %vm1094_vm15, 1.0, %v5734_v39  ;;  %v1343_v58 = vld [vmem:[#allocation2 + $0x208] sm:$0xff]  ;;  %v4930_v56 = vpack.c.bf16 %v1345_v48, %v1344_v47  ;;  %v1378_v38 = vld [vmem:[#allocation2 + $0x320] sm:$0xff]  ;;  %v1444_v48 = vld [vmem:[#allocation2 + $0x530] sm:$0xff] }
 0xe62   : > { %4909 = vmatprep.subr.bf16.mxu0 %v4908_v2  ;;  %v1004_v2 = vld [vmem:[#allocation2 + $0x178] sm:$0xff]  ;;  %v4926_v44 = vpack.c.bf16 %v1343_v58, %v1342_v36  ;;  %v1394_v36 = vld [vmem:[#allocation2 + $0x3a0] sm:$0xff]  ;;  %v1395_v58 = vld [vmem:[#allocation2 + $0x3a8] sm:$0xff] }
 0xe63   : > { %v1034_v8 = vpop.permute.xlu1 %1033  ;;  %vm1100_vm8 = vcmp.eq.f32.partialorder %v1004_v2, %v1059_v50  ;;  %v1393_v50 = vld [vmem:[#allocation2 + $0x398] sm:$0xff]  ;;  %v4966_v2 = vpack.c.bf16 %v1379_v40, %v1378_v38  ;;  %v1407_v38 = vld [vmem:[#allocation2 + $0x408] sm:$0xff]  ;;  %v1424_v40 = vld [vmem:[#allocation2 + $0x490] sm:$0xff] }
 0xe64   : > { %vm1095_vm3 = vcmp.eq.f32.partialorder %v999_v59, %v1034_v8  ;;  %4685 = vmatmul.mubr.msk.f32.gmra.mrb[14].mxu0 %vm411_vm4, %v3952_v7  ;;  %v1069_v45 = vpop.permute.xlu0 %1068  ;;  %v3958_v57 = vsel %vm1100_vm8, 1.0, %v5734_v39  ;;  %v1386_v7 = vld [vmem:[#allocation2 + $0x360] sm:$0xff]  ;;  %v1387_v8 = vld [vmem:[#allocation2 + $0x368] sm:$0xff] }
 0xe65   : > { %v3953_v20 = vsel %vm1095_vm3, 1.0, %v5734_v39  ;;  %4911 = vmatpush3.bf16.msra.mxu0 %v4910_v60  ;;  %vm1102_vm10 = vcmp.eq.f32.partialorder %v1006_v51, %v1069_v45  ;;  %v1008_v60 = vld [vmem:[#allocation2 + $0x198] sm:$0xff]  ;;  %v4948_v9 = vpack.c.bf16 %v1387_v8, %v1386_v7 }
 0xe66   : > { %4687 = vmatprep.mubr.msk.f32.mxu0 %vm411_vm4, %v3953_v20  ;;  %4913 = vmatprep.subr.bf16.mxu0 %v4912_v3  ;;  %v3960_v3 = vsel %vm1102_vm10, 1.0, %v5734_v39  ;;  %v1347_v20 = vld [vmem:[#allocation2 + $0x228] sm:$0xff]  ;;  %v1417_v7 = vld [vmem:[#allocation2 + $0x458] sm:$0xff] }
 0xe67   : > { %v1039_v28 = vpop.permute.xlu1 %1038  ;;  %4949 = vmatprep.subr.bf16.mxu1 %v4948_v9 }
 0xe68   : > { %vm1096_vm5 = vcmp.eq.f32.partialorder %v1000_v21, %v1039_v28  ;;  %v1079_v63 = vpop.permute.xlu0 %1078  ;;  %v4950_v21 = vpack.c.bf16 %v1371_v18, %v1370_v16  ;;  %v1372_v28 = vld [vmem:[#allocation2 + $0x2f0] sm:$0xff]  ;;  %v1419_v18 = vld [vmem:[#allocation2 + $0x468] sm:$0xff] }
 0xe69   : > { %v3954_v54 = vsel %vm1096_vm5, 1.0, %v5734_v39  ;;  %4915 = vmatpush3.bf16.msra.mxu0 %v4914_v22  ;;  %vm1104_vm12 = vcmp.eq.f32.partialorder %v1008_v60, %v1079_v63  ;;  %v4934_v22 = vpack.c.bf16 %v1347_v20, %v1346_v19  ;;  %v4954_v52 = vpack.c.bf16 %v1373_v29, %v1372_v28  ;;  %v1415_v60 = vld [vmem:[#allocation2 + $0x448] sm:$0xff]  ;;  %v1428_v28 = vld [vmem:[#allocation2 + $0x4b0] sm:$0xff]  ;;  %v1429_v29 = vld [vmem:[#allocation2 + $0x4b8] sm:$0xff] }
 0xe6a   : > { %4688 = vmatmul.mubr.msk.f32.gmra.mrb[16].mxu0 %vm411_vm4, %v3954_v54  ;;  %4917 = vmatprep.subr.bf16.mxu0 %v4916_v23  ;;  %v3962_v6 = vsel %vm1104_vm12, 1.0, %v5734_v39  ;;  %v1388_v23 = vld [vmem:[#allocation2 + $0x370] sm:$0xff]  ;;  %v1413_v54 = vld [vmem:[#allocation2 + $0x438] sm:$0xff]  ;;  %v4978_v20 = vpack.c.bf16 %v1401_v15, %v1400_v12 }
 0xe6b   : > { %v1044_v31 = vpop.permute.xlu1 %1043  ;;  %4951 = vmatpush3.bf16.msra.mxu1 %v4950_v21  ;;  %v4952_v27 = vpack.c.bf16 %v1389_v26, %v1388_v23  ;;  %v1403_v23 = vld [vmem:[#allocation2 + $0x3e8] sm:$0xff]  ;;  %v1420_v26 = vld [vmem:[#allocation2 + $0x470] sm:$0xff]  ;;  %v1453_v15 = vld [vmem:[#allocation2 + $0x578] sm:$0xff] }
 0xe6c   : > { %vm1097_vm6 = vcmp.eq.f32.partialorder %v1001_v61, %v1044_v31  ;;  %v4968_v61 = vpack.c.bf16 %v1413_v54, %v1412_v30  ;;  %v1375_v31 = vld [vmem:[#allocation2 + $0x308] sm:$0xff]  ;;  %v1452_v12 = vld [vmem:[#allocation2 + $0x570] sm:$0xff] }
 0xe6d   : > { %v3955_v32 = vsel %vm1097_vm6, 1.0, %v5734_v39  ;;  %4919 = vmatpush3.bf16.msra.mxu0 %v4918_v62  ;;  %4953 = vmatprep.subr.bf16.mxu1 %v4952_v27  ;;  %v1390_v62 = vld [vmem:[#allocation2 + $0x380] sm:$0xff]  ;;  %v4958_v24 = vpack.c.bf16 %v1375_v31, %v1374_v25  ;;  %v1421_v27 = vld [vmem:[#allocation2 + $0x478] sm:$0xff]  ;;  %v1447_v54 = vld [vmem:[#allocation2 + $0x548] sm:$0xff] }
 0xe6e   : > { %4690 = vmatprep.mubr.msk.f32.mxu0 %vm411_vm4, %v3955_v32  ;;  %4921 = vmatprep.subr.bf16.mxu0 %v4920_v10  ;;  %v1391_v10 = vld [vmem:[#allocation2 + $0x388] sm:$0xff]  ;;  %v4960_v32 = vpack.c.bf16 %v1393_v50, %v1392_v14  ;;  %v1422_v25 = vld [vmem:[#allocation2 + $0x480] sm:$0xff] }
 0xe6f   : > { %v1049_v37 = vpop.permute.xlu1 %1048  ;;  %4955 = vmatpush3.bf16.msra.mxu1 %v4954_v52  ;;  %v4956_v11 = vpack.c.bf16 %v1391_v10, %v1390_v62  ;;  %v1446_v52 = vld [vmem:[#allocation2 + $0x540] sm:$0xff]  ;;  %v1404_v62 = vld [vmem:[#allocation2 + $0x3f0] sm:$0xff]  ;;  %v1405_v10 = vld [vmem:[#allocation2 + $0x3f8] sm:$0xff] }
 0xe70   : > { %vm1098_vm7 = vcmp.eq.f32.partialorder %v1002_v33, %v1049_v37  ;;  %v1376_v33 = vld [vmem:[#allocation2 + $0x310] sm:$0xff]  ;;  %v4964_v37 = vpack.c.bf16 %v1395_v58, %v1394_v36  ;;  %v1423_v31 = vld [vmem:[#allocation2 + $0x488] sm:$0xff]  ;;  %v5004_v50 = vpack.c.bf16 %v1447_v54, %v1446_v52  ;;  %v1449_v36 = vld [vmem:[#allocation2 + $0x558] sm:$0xff] }
 0xe71   : > { %v3956_v13 = vsel %vm1098_vm7, 1.0, %v5734_v39  ;;  %4923 = vmatpush3.bf16.msra.mxu0 %v4922_v34  ;;  %4957 = vmatprep.subr.bf16.mxu1 %v4956_v11  ;;  %v1377_v34 = vld [vmem:[#allocation2 + $0x318] sm:$0xff]  ;;  %v4988_v58 = vpack.c.bf16 %v1423_v31, %v1422_v25  ;;  %v1455_v52 = vld [vmem:[#allocation2 + $0x588] sm:$0xff]  ;;  %v1456_v25 = vld [vmem:[#allocation2 + $0x590] sm:$0xff] }
 0xe72   : > { %4691 = vmatmul.mubr.msk.f32.gmra.mrb[18].mxu0 %vm411_vm4, %v3956_v13  ;;  %4925 = vmatprep.subr.bf16.mxu0 %v4924_v35  ;;  %v4962_v35 = vpack.c.bf16 %v1377_v34, %v1376_v33  ;;  %v1010_v13 = vld [vmem:[#allocation2 + $0x1a8] sm:$0xff]  ;;  %v4986_v34 = vpack.c.bf16 %v1405_v10, %v1404_v62  ;;  %v1438_v62 = vld [vmem:[#allocation2 + $0x500] sm:$0xff]  ;;  %v1457_v31 = vld [vmem:[#allocation2 + $0x598] sm:$0xff] }
 0xe73   : > { %v1054_v49 = vpop.permute.xlu1 %1053  ;;  %4959 = vmatpush3.bf16.msra.mxu1 %v4958_v24  ;;  %v5002_v24 = vpack.c.bf16 %v1429_v29, %v1428_v28  ;;  %v1431_v33 = vld [vmem:[#allocation2 + $0x4c8] sm:$0xff] }
 0xe74   : > { %vm1099_vm9 = vcmp.eq.f32.partialorder %v1003_v43, %v1054_v49  ;;  %4961 = vmatprep.subr.bf16.mxu1 %v4960_v32  ;;  %v1009_v43 = vld [vmem:[#allocation2 + $0x1a0] sm:$0xff]  ;;  %v1445_v49 = vld [vmem:[#allocation2 + $0x538] sm:$0xff]  ;;  %v1439_v10 = vld [vmem:[#allocation2 + $0x508] sm:$0xff] }
 0xe75   : > { %v3957_v53 = vsel %vm1099_vm9, 1.0, %v5734_v39  ;;  %4927 = vmatpush3.bf16.msra.mxu0 %v4926_v44  ;;  %v5000_v51 = vpack.c.bf16 %v1445_v49, %v1444_v48  ;;  %v1430_v32 = vld [vmem:[#allocation2 + $0x4c0] sm:$0xff] }
 0xe76   : > { %4693 = vmatprep.mubr.msk.f32.mxu0 %vm411_vm4, %v3957_v53  ;;  %4929 = vmatprep.subr.bf16.mxu0 %v4928_v46  ;;  %v1450_v49 = vld [vmem:[#allocation2 + $0x560] sm:$0xff] }
 0xe77   : > { %4694 = vmatmul.mubr.msk.f32.gmra.mrb[20].mxu0 %vm411_vm4, %v3958_v57  ;;  %v1064_v59 = vpop.permute.xlu1 %1063  ;;  %4963 = vmatpush3.bf16.msra.mxu1 %v4962_v35  ;;  %v1397_v57 = vld [vmem:[#allocation2 + $0x3b8] sm:$0xff]  ;;  %v1448_v35 = vld [vmem:[#allocation2 + $0x550] sm:$0xff] }
 0xe78   : > { %vm1101_vm11 = vcmp.eq.f32.partialorder %v1005_v55, %v1064_v59  ;;  %4965 = vmatprep.subr.bf16.mxu1 %v4964_v37  ;;  %v1414_v59 = vld [vmem:[#allocation2 + $0x440] sm:$0xff] }
 0xe79   : > { %v3959_v0 = vsel %vm1101_vm11, 1.0, %v5734_v39  ;;  %4931 = vmatpush3.bf16.msra.mxu0 %v4930_v56  ;;  %v1396_v56 = vld [vmem:[#allocation2 + $0x3b0] sm:$0xff]  ;;  %v1406_v37 = vld [vmem:[#allocation2 + $0x400] sm:$0xff] }
 0xe7a   : > { %4696 = vmatprep.mubr.msk.f32.mxu0 %vm411_vm4, %v3959_v0  ;;  %4933 = vmatprep.subr.bf16.mxu0 %v4932_v17  ;;  %v4970_v0 = vpack.c.bf16 %v1397_v57, %v1396_v56  ;;  %v1418_v17 = vld [vmem:[#allocation2 + $0x460] sm:$0xff]  ;;  %v4990_v48 = vpack.c.bf16 %v1407_v38, %v1406_v37  ;;  %v1408_v57 = vld [vmem:[#allocation2 + $0x410] sm:$0xff]  ;;  %v1443_v38 = vld [vmem:[#allocation2 + $0x528] sm:$0xff] }
 0xe7b   : > { %4697 = vmatmul.mubr.msk.f32.gmra.mrb[22].mxu0 %vm411_vm4, %v3960_v3  ;;  %v1074_v4 = vpop.permute.xlu1 %1073  ;;  %4967 = vmatpush3.bf16.msra.mxu1 %v4966_v2  ;;  %v4972_v3 = vpack.c.bf16 %v1415_v60, %v1414_v59  ;;  %v4980_v21 = vpack.c.bf16 %v1419_v18, %v1418_v17  ;;  %v1425_v2 = vld [vmem:[#allocation2 + $0x498] sm:$0xff]  ;;  %v1426_v60 = vld [vmem:[#allocation2 + $0x4a0] sm:$0xff] }
 0xe7c   : > { %vm1103_vm13 = vcmp.eq.f32.partialorder %v1007_v1, %v1074_v4  ;;  %5001 = vmatprep.subr.bf16.mxu1 %v5000_v51  ;;  %v1398_v4 = vld [vmem:[#allocation2 + $0x3c0] sm:$0xff]  ;;  %v1451_v51 = vld [vmem:[#allocation2 + $0x568] sm:$0xff]  ;;  %v4992_v56 = vpack.c.bf16 %v1425_v2, %v1424_v40  ;;  %v1409_v59 = vld [vmem:[#allocation2 + $0x418] sm:$0xff] }
 0xe7d   : > { %v3961_v5 = vsel %vm1103_vm13, 1.0, %v5734_v39  ;;  %4935 = vmatpush3.bf16.msra.mxu0 %v4934_v22  ;;  %v1402_v22 = vld [vmem:[#allocation2 + $0x3e0] sm:$0xff] }
 0xe7e   : > { %4699 = vmatprep.mubr.msk.f32.mxu0 %vm411_vm4, %v3961_v5  ;;  %4969 = vmatprep.subr.bf16.mxu0 %v4968_v61  ;;  %v1399_v5 = vld [vmem:[#allocation2 + $0x3c8] sm:$0xff]  ;;  %v4982_v30 = vpack.c.bf16 %v1403_v23, %v1402_v22  ;;  %v4984_v61 = vpack.c.bf16 %v1421_v27, %v1420_v26  ;;  %v1410_v18 = vld [vmem:[#allocation2 + $0x420] sm:$0xff]  ;;  %v5016_v23 = vpack.c.bf16 %v1453_v15, %v1452_v12  ;;  %v1436_v26 = vld [vmem:[#allocation2 + $0x4f0] sm:$0xff] }
 0xe7f   : > { %4700 = vmatmul.mubr.msk.f32.gmra.mrb[24].mxu0 %vm411_vm4, %v3962_v6  ;;  %v1416_v6 = vld [vmem:[#allocation2 + $0x450] sm:$0xff]  ;;  %v4974_v8 = vpack.c.bf16 %v1399_v5, %v1398_v4  ;;  %v5012_v5 = vpack.c.bf16 %v1451_v51, %v1450_v49  ;;  %v1437_v27 = vld [vmem:[#allocation2 + $0x4f8] sm:$0xff]  ;;  %v1442_v37 = vld [vmem:[#allocation2 + $0x520] sm:$0xff] }
 0xe80   : > { %v4976_v9 = vpack.c.bf16 %v1417_v7, %v1416_v6  ;;  %v1434_v6 = vld [vmem:[#allocation2 + $0x4e0] sm:$0xff]  ;;  %v1435_v7 = vld [vmem:[#allocation2 + $0x4e8] sm:$0xff]  ;;  %v5018_v54 = vpack.c.bf16 %v1437_v27, %v1436_v26  ;;  %v5030_v40 = vpack.c.bf16 %v1443_v38, %v1442_v37  ;;  %v1770_v49 = vld [vmem:[#allocation2 + $0x5d0] sm:$0xff] }
 0xe81   : > { %v1778_v12 = vld [vmem:[#allocation2 + $0x610] sm:$0xff] }
 0xed3   : > { %v1089_v44 = vpop.permute.xlu0 %1088 }
 0xed4   : > { %vm1106_vm14 = vcmp.eq.f32.partialorder %v1010_v13, %v1089_v44  ;;  %v1084_v45 = vpop.permute.xlu1 %1083  ;;  %v5006_v13 = vpack.c.bf16 %v1431_v33, %v1430_v32  ;;  %v5008_v44 = vpack.c.bf16 %v1449_v36, %v1448_v35  ;;  %v1440_v32 = vld [vmem:[#allocation2 + $0x510] sm:$0xff]  ;;  %v1441_v33 = vld [vmem:[#allocation2 + $0x518] sm:$0xff]  ;;  %v1459_v35 = vld [vmem:[#allocation2 + $0x5a8] sm:$0xff] }
 0xed5   : > { %vm1105_vm15 = vcmp.eq.f32.partialorder %v1009_v43, %v1084_v45  ;;  %v3964_v47 = vsel %vm1106_vm14, 1.0, %v5734_v39  ;;  %v1432_v45 = vld [vmem:[#allocation2 + $0x4d0] sm:$0xff]  ;;  %v5026_v36 = vpack.c.bf16 %v1441_v33, %v1440_v32  ;;  %v1874_v32 = vld [vmem:[#allocation4 + $0x48] sm:$0xff] }
 0xed6   : > { %v3963_v46 = vsel %vm1105_vm15, 1.0, %v5734_v39  ;;  %v1878_v33 = vld [vmem:[#allocation4 + $0x68] sm:$0xff] }
 0xed7   : > { %4702 = vmatprep.mubr.msk.f32.mxu0 %vm411_vm4, %v3963_v46  ;;  %v1433_v46 = vld [vmem:[#allocation2 + $0x4d8] sm:$0xff] }
 0xed8   : > { %4703 = vmatmul.mubr.msk.f32.gmra.mrb[26].mxu0 %vm411_vm4, %v3964_v47 }
 0xf33   : > { %v6107_v53 = vpop.f32.mrb[12].mxu0 }
 0xf34   : > { %v6109_v55 = vpop.f32.mrb[13].mxu0 }
 0xf37   : > { %v6111_v63 = vpop.f32.mrb[14].mxu0 }
 0xf38   : > { %v6113_v1 = vpop.f32.mrb[15].mxu0 }
 0xf39   : > { %1529 = vmatprep.mubr.f32.mxu0 %v6113_v1 }
 0xf3a   : > { %1530 = vmatmul.mubr.f32.vlgmr.msra.gmra.mrb[28].mxu0 %v6109_v55 }
 0xf3b   : > { %4971 = vmatpush3.bf16.msra.mxu0 %v4970_v0  ;;  %1534 = vmatprep.mubr.f32.mxu0 %v6111_v63  ;;  %v1427_v0 = vld [vmem:[#allocation2 + $0x4a8] sm:$0xff] }
 0xf3c   : > { %4973 = vmatprep.subr.bf16.mxu0 %v4972_v3  ;;  %v5010_v3 = vpack.c.bf16 %v1433_v46, %v1432_v45  ;;  %v4996_v17 = vpack.c.bf16 %v1427_v0, %v1426_v60  ;;  %v1768_v45 = vld [vmem:[#allocation2 + $0x5c0] sm:$0xff]  ;;  %v1769_v46 = vld [vmem:[#allocation2 + $0x5c8] sm:$0xff]  ;;  %v1774_v0 = vld [vmem:[#allocation2 + $0x5f0] sm:$0xff] }
 0xf3d   : > { %v6118_v16 = vpop.f32.mrb[16].mxu0  ;;  %v5036_v51 = vpack.c.bf16 %v1770_v49, %v1769_v46  ;;  %v1773_v60 = vld [vmem:[#allocation2 + $0x5e8] sm:$0xff]  ;;  %v1885_v49 = vld [vmem:[#allocation4 + $0xa0] sm:$0xff] }
 0xf3e   : > { %v6120_v19 = vpop.f32.mrb[17].mxu0  ;;  %1535 = vmatmul.mubr.f32.gmra.mrb[30].mxu0 %v6107_v53 }
 0xf3f   : > { %4975 = vmatpush3.bf16.msra.mxu0 %v4974_v8 }
 0xf40   : > { %4977 = vmatprep.subr.bf16.mxu0 %v4976_v9  ;;  %v4994_v9 = vpack.c.bf16 %v1409_v59, %v1408_v57  ;;  %v1772_v57 = vld [vmem:[#allocation2 + $0x5e0] sm:$0xff] }
 0xf43   : > { %4979 = vmatpush3.bf16.msra.mxu0 %v4978_v20  ;;  %v1411_v20 = vld [vmem:[#allocation2 + $0x428] sm:$0xff] }
 0xf44   : > { %4981 = vmatprep.subr.bf16.mxu0 %v4980_v21  ;;  %v5014_v21 = vpack.c.bf16 %v1435_v7, %v1434_v6  ;;  %v4998_v29 = vpack.c.bf16 %v1411_v20, %v1410_v18  ;;  %v1776_v6 = vld [vmem:[#allocation2 + $0x600] sm:$0xff] }
 0xf45   : > { %v6123_v11 = vpop.f32.mrb[18].mxu0  ;;  %v1780_v18 = vld [vmem:[#allocation2 + $0x620] sm:$0xff] }
 0xf46   : > { %v6125_v14 = vpop.f32.mrb[19].mxu0 }
 0xf47   : > { %4983 = vmatpush3.bf16.msra.mxu0 %v4982_v30  ;;  %1604 = vmatprep.mubr.f32.mxu1 %v6125_v14  ;;  %v1454_v30 = vld [vmem:[#allocation2 + $0x580] sm:$0xff] }
 0xf48   : > { %1605 = vmatmul.mubr.f32.vlgmr.msra.gmra.mrb[10].mxu1 %v6120_v19  ;;  %4985 = vmatprep.subr.bf16.mxu0 %v4984_v61  ;;  %v5020_v61 = vpack.c.bf16 %v1455_v52, %v1454_v30  ;;  %v1870_v30 = vld [vmem:[#allocation4 + $0x28] sm:$0xff]  ;;  %v1868_v52 = vld [vmem:[#allocation4 + $0x18] sm:$0xff] }
 0xf49   : > { %1609 = vmatprep.mubr.f32.mxu1 %v6123_v11  ;;  %5003 = vmatpush3.bf16.msra.mxu1 %v5002_v24  ;;  %v5022_v24 = vpack.c.bf16 %v1439_v10, %v1438_v62  ;;  %v1872_v62 = vld [vmem:[#allocation4 + $0x38] sm:$0xff]  ;;  %v1865_v10 = vld [vmem:[#allocation4] sm:$0xff] }
 0xf4a   : > { %v6130_v43 = vpop.f32.mrb[20].mxu0  ;;  %5005 = vmatprep.subr.bf16.mxu1 %v5004_v50  ;;  %v5024_v50 = vpack.c.bf16 %v1457_v31, %v1456_v25  ;;  %v1869_v25 = vld [vmem:[#allocation4 + $0x20] sm:$0xff] }
 0xf4b   : > { %4987 = vmatpush3.bf16.msra.mxu0 %v4986_v34  ;;  %v6132_v47 = vpop.f32.mrb[21].mxu0  ;;  %v1458_v34 = vld [vmem:[#allocation2 + $0x5a0] sm:$0xff] }
 0xf4c   : > { %1610 = vmatmul.mubr.f32.gmra.mrb[12].mxu1 %v6118_v16  ;;  %4989 = vmatprep.subr.bf16.mxu0 %v4988_v58  ;;  %v5028_v58 = vpack.c.bf16 %v1459_v35, %v1458_v34  ;;  %v5068_v35 = vpack.c.bf16 %v1878_v33, %v1874_v32  ;;  %v1918_v32 = vld [vmem:[#allocation4 + $0x1a8] sm:$0xff] }
 0xf4d   : > { %5007 = vmatpush3.bf16.msra.mxu1 %v5006_v13 }
 0xf4e   : > { %v6135_v4 = vpop.f32.mrb[22].mxu0  ;;  %5009 = vmatprep.subr.bf16.mxu1 %v5008_v44  ;;  %v1767_v44 = vld [vmem:[#allocation2 + $0x5b8] sm:$0xff] }
 0xf4f   : > { %4991 = vmatpush3.bf16.msra.mxu0 %v4990_v48  ;;  %v6137_v8 = vpop.f32.mrb[23].mxu0  ;;  %v5032_v48 = vpack.c.bf16 %v1768_v45, %v1767_v44  ;;  %v1886_v44 = vld [vmem:[#allocation4 + $0xa8] sm:$0xff] }
 0xf50   : > { %1679 = vmatprep.mubr.f32.mxu0 %v6137_v8  ;;  %4993 = vmatprep.subr.bf16.mxu0 %v4992_v56  ;;  %v1771_v56 = vld [vmem:[#allocation2 + $0x5d8] sm:$0xff] }
 0xf51   : > { %5011 = vmatpush3.bf16.msra.mxu1 %v5010_v3  ;;  %v5040_v59 = vpack.c.bf16 %v1772_v57, %v1771_v56  ;;  %v5044_v3 = vpack.c.bf16 %v1774_v0, %v1773_v60  ;;  %v1890_v56 = vld [vmem:[#allocation4 + $0xc8] sm:$0xff]  ;;  %v1889_v60 = vld [vmem:[#allocation4 + $0xc0] sm:$0xff] }
 0xf52   : > { %v6140_v22 = vpop.f32.mrb[24].mxu0  ;;  %5013 = vmatprep.subr.bf16.mxu1 %v5012_v5  ;;  %v1775_v5 = vld [vmem:[#allocation2 + $0x5f8] sm:$0xff]  ;;  %v1894_v57 = vld [vmem:[#allocation4 + $0xe8] sm:$0xff] }
 0xf53   : > { %4995 = vmatpush3.bf16.msra.mxu0 %v4994_v9  ;;  %v6142_v28 = vpop.f32.mrb[25].mxu0  ;;  %v5048_v7 = vpack.c.bf16 %v1776_v6, %v1775_v5  ;;  %v1777_v9 = vld [vmem:[#allocation2 + $0x608] sm:$0xff]  ;;  %v1893_v0 = vld [vmem:[#allocation4 + $0xe0] sm:$0xff]  ;;  %v3981_v5 = vld [vmem:[#allocation2 + $0x5b0] ss:$0 sm:$0xff] }
 0xf54   : > { %4997 = vmatprep.subr.bf16.mxu0 %v4996_v17  ;;  %v5052_v15 = vpack.c.bf16 %v1778_v12, %v1777_v9  ;;  %v1779_v17 = vld [vmem:[#allocation2 + $0x618] sm:$0xff]  ;;  %v1898_v6 = vld [vmem:[#allocation4 + $0x108] sm:$0xff] }
 0xf55   : > { %5015 = vmatpush3.bf16.msra.mxu1 %v5014_v21  ;;  %v5056_v20 = vpack.c.bf16 %v1780_v18, %v1779_v17  ;;  %v1781_v21 = vld [vmem:[#allocation2 + $0x628] sm:$0xff]  ;;  %v1901_v17 = vld [vmem:[#allocation4 + $0x120] sm:$0xff] }
 0xf56   : > { %5017 = vmatprep.subr.bf16.mxu1 %v5016_v23  ;;  %v1782_v23 = vld [vmem:[#allocation2 + $0x630] sm:$0xff] }
 0xf57   : > { %4999 = vmatpush3.bf16.msra.mxu0 %v4998_v29  ;;  %v5060_v26 = vpack.c.bf16 %v1782_v23, %v1781_v21  ;;  %v1866_v29 = vld [vmem:[#allocation4 + $0x8] sm:$0xff] }
 0xf58   : > { %5033 = vmatprep.subr.bf16.mxu0 %v5032_v48 }
 0xf59   : > { %5019 = vmatpush3.bf16.msra.mxu1 %v5018_v54 }
 0xf5a   : > { %1680 = vmatmul.mubr.f32.vlgmr.msra.gmra.mrb[32].mxu0 %v6132_v47  ;;  %5021 = vmatprep.subr.bf16.mxu1 %v5020_v61  ;;  %v5064_v61 = vpack.c.bf16 %v1870_v30, %v1866_v29 }
 0xf5b   : > { %1684 = vmatprep.mubr.f32.mxu0 %v6135_v4  ;;  %5035 = vmatpush3.bf16.msra.mxu0 %v5032_v48  ;;  %v1881_v48 = vld [vmem:[#allocation4 + $0x80] sm:$0xff] }
 0xf5c   : > { %5037 = vmatprep.subr.bf16.mxu0 %v5036_v51 }
 0xf5d   : > { %5023 = vmatpush3.bf16.msra.mxu1 %v5022_v24  ;;  %v5096_v24 = vpack.c.bf16 %v1872_v62, %v1868_v52 }
 0xf5e   : > { %1685 = vmatmul.mubr.f32.gmra.mrb[34].mxu0 %v6130_v43  ;;  %5025 = vmatprep.subr.bf16.mxu1 %v5024_v50  ;;  %v5066_v50 = vpack.c.bf16 %v1869_v25, %v1865_v10 }
 0xf5f   : > { %5039 = vmatpush3.bf16.msra.mxu0 %v5036_v51  ;;  %v5074_v51 = vpack.c.bf16 %v1885_v49, %v1881_v48 }
 0xf60   : > { %5041 = vmatprep.subr.bf16.mxu0 %v5040_v59 }
 0xf61   : > { %5027 = vmatpush3.bf16.msra.mxu1 %v5026_v36  ;;  %v1873_v36 = vld [vmem:[#allocation4 + $0x40] sm:$0xff] }
 0xf62   : > { %5029 = vmatprep.subr.bf16.mxu1 %v5028_v58  ;;  %v1877_v58 = vld [vmem:[#allocation4 + $0x60] sm:$0xff] }
 0xf63   : > { %5043 = vmatpush3.bf16.msra.mxu0 %v5040_v59  ;;  %v5070_v38 = vpack.c.bf16 %v1877_v58, %v1873_v36  ;;  %v5076_v59 = vpack.c.bf16 %v1894_v57, %v1890_v56 }
 0xf64   : > { %5045 = vmatprep.subr.bf16.mxu0 %v5044_v3 }
 0xf65   : > { %5031 = vmatpush3.bf16.msra.mxu1 %v5030_v40  ;;  %v1882_v40 = vld [vmem:[#allocation4 + $0x88] sm:$0xff] }
 0xf66   : > { %5065 = vmatprep.subr.bf16.mxu1 %v5064_v61  ;;  %v5072_v46 = vpack.c.bf16 %v1886_v44, %v1882_v40  ;;  %v1909_v61 = vld [vmem:[#allocation4 + $0x160] sm:$0xff] }
 0xf67   : > { %5047 = vmatpush3.bf16.msra.mxu0 %v5044_v3  ;;  %v5078_v3 = vpack.c.bf16 %v1893_v0, %v1889_v60 }
 0xf68   : > { %5049 = vmatprep.subr.bf16.mxu0 %v5048_v7 }
 0xf6b   : > { %5051 = vmatpush3.bf16.msra.mxu0 %v5048_v7  ;;  %v1902_v7 = vld [vmem:[#allocation4 + $0x128] sm:$0xff] }
 0xf6c   : > { %5053 = vmatprep.subr.bf16.mxu0 %v5052_v15  ;;  %v5080_v12 = vpack.c.bf16 %v1902_v7, %v1898_v6  ;;  %v1871_v6 = vld [vmem:[#allocation4 + $0x30] sm:$0xff]  ;;  %v1876_v7 = vld [vmem:[#allocation4 + $0x58] sm:$0xff] }
 0xf6f   : > { %5055 = vmatpush3.bf16.msra.mxu0 %v5052_v15  ;;  %v1897_v15 = vld [vmem:[#allocation4 + $0x100] sm:$0xff] }
 0xf70   : > { %5057 = vmatprep.subr.bf16.mxu0 %v5056_v20  ;;  %v5082_v23 = vpack.c.bf16 %v1901_v17, %v1897_v15 }
 0xf73   : > { %5059 = vmatpush3.bf16.msra.mxu0 %v5056_v20 }
 0xf74   : > { %5061 = vmatprep.subr.bf16.mxu0 %v5060_v26 }
 0xf77   : > { %5063 = vmatpush3.bf16.msra.mxu0 %v5060_v26  ;;  %v1906_v26 = vld [vmem:[#allocation4 + $0x148] sm:$0xff] }
 0xf78   : > { %5097 = vmatprep.subr.bf16.mxu0 %v5096_v24 }
 0xfab   : > { %v6147_v2 = vpop.f32.mrb[26].mxu0 }
 0xfac   : > { %v6149_v13 = vpop.f32.mrb[27].mxu0 }
 0xfad   : > { %1754 = vmatprep.mubr.f32.mxu1 %v6149_v13 }
 0xfae   : > { %1755 = vmatmul.mubr.f32.vlgmr.msra.gmra.mrb[14].mxu1 %v6142_v28 }
 0xfaf   : > { %1759 = vmatprep.mubr.f32.mxu1 %v6147_v2  ;;  %5067 = vmatpush1.bf16.msra.mxu1 %v5066_v50  ;;  %v1914_v50 = vld [vmem:[#allocation4 + $0x188] sm:$0xff] }
 0xfb0   : > { %5069 = vmatprep.subr.bf16.mxu1 %v5068_v35  ;;  %v5088_v33 = vpack.c.bf16 %v1918_v32, %v1914_v50  ;;  %v1917_v35 = vld [vmem:[#allocation4 + $0x1a0] sm:$0xff]  ;;  %v1900_v50 = vld [vmem:[#allocation4 + $0x118] sm:$0xff] }
 0xfb1   : > { %v1904_v32 = vld [vmem:[#allocation4 + $0x138] sm:$0xff] }
 0xfb2   : > { %1760 = vmatmul.mubr.f32.gmra.mrb[16].mxu1 %v6140_v22 }
 0xfb3   : > { %2016 = vmatprep.mubr.f32.mxu1 %v5734_v39  ;;  %5071 = vmatpush1.bf16.msra.mxu1 %v5070_v38 }
 0xfb4   : > { %5073 = vmatprep.subr.bf16.mxu1 %v5072_v46 }
 0xfb7   : > { %5075 = vmatpush1.bf16.msra.mxu1 %v5074_v51 }
 0xfb8   : > { %5077 = vmatprep.subr.bf16.mxu1 %v5076_v59 }
 0xfbb   : > { %5079 = vmatpush1.bf16.msra.mxu1 %v5078_v3 }
 0xfbc   : > { %5081 = vmatprep.subr.bf16.mxu1 %v5080_v12 }
 0xfbf   : > { %5083 = vmatpush1.bf16.msra.mxu1 %v5082_v23  ;;  %v1884_v23 = vld [vmem:[#allocation4 + $0x98] sm:$0xff] }
0x100d   : > { %v4116_v27 = vpop.f32.mrb[28].mxu0 }
0x100e   : > { %v4117_v54 = vpop.f32.mrb[29].mxu0 }
0x100f   : > { %v4118_v31 = vadd.f32 %v4117_v54, %v4116_v27  ;;  %v1910_v27 = vld [vmem:[#allocation4 + $0x168] sm:$0xff]  ;;  %v1905_v54 = vld [vmem:[#allocation4 + $0x140] sm:$0xff] }
0x1010   : > { %v5084_v52 = vpack.c.bf16 %v1910_v27, %v1906_v26  ;;  %v5086_v24 = vpack.c.bf16 %v1909_v61, %v1905_v54  ;;  %v1888_v26 = vld [vmem:[#allocation4 + $0xb8] sm:$0xff] }
0x1011   : > { %v4119_v34 = vpop.f32.mrb[30].mxu0  ;;  %v1532_v20 = vadd.f32 %v4118_v31, %v3981_v5  ;;  %v1892_v54 = vld [vmem:[#allocation4 + $0xd8] sm:$0xff] }
0x1012   : > { %v4120_v37 = vpop.f32.mrb[31].mxu0  ;;  %5085 = vmatprep.subr.bf16.mxu1 %v5084_v52  ;;  %v1887_v52 = vld [vmem:[#allocation4 + $0xb0] sm:$0xff]  ;;  %v1896_v61 = vld [vmem:[#allocation4 + $0xf8] sm:$0xff] }
0x1013   : > { %v4121_v45 = vadd.f32 %v4120_v37, %v4119_v34  ;;  %v1913_v34 = vld [vmem:[#allocation4 + $0x180] sm:$0xff]  ;;  %5087 = vmatpush1.bf16.msra.mxu1 %v5086_v24  ;;  %v1895_v24 = vld [vmem:[#allocation4 + $0xf0] sm:$0xff] }
0x1014   : > { %v5090_v36 = vpack.c.bf16 %v1917_v35, %v1913_v34  ;;  %5089 = vmatprep.subr.bf16.mxu1 %v5088_v33  ;;  %v5112_v33 = vpack.c.bf16 %v1904_v32, %v1900_v50  ;;  %v1899_v34 = vld [vmem:[#allocation4 + $0x110] sm:$0xff]  ;;  %v2133_v32 = vld [vmem:[#allocation2 + $0x6d8] sm:$0xff] }
0x1015   : > { %v1537_v10 = vadd.f32 %v4121_v45, %v3981_v5  ;;  %v1867_v5 = vld [vmem:[#allocation4 + $0x10] sm:$0xff] }
0x1016   : > { %v5098_v15 = vpack.c.bf16 %v1871_v6, %v1867_v5  ;;  %v1903_v35 = vld [vmem:[#allocation4 + $0x130] sm:$0xff]  ;;  %v1928_v5 = vld [vmem:[#allocation4 + $0x1f8] sm:$0xff]  ;;  %v1921_v6 = vld [vmem:[#allocation4 + $0x1c0] sm:$0xff] }
0x1017   : > { %5091 = vmatpush1.bf16.msra.mxu1 %v5090_v36  ;;  %v1908_v36 = vld [vmem:[#allocation4 + $0x158] sm:$0xff] }
0x101b   : > { %v4154_v9 = vpop.f32.mrb[10].mxu1 }
0x101c   : > { %v4155_v18 = vpop.f32.mrb[11].mxu1 }
0x101d   : > { %v4156_v21 = vadd.f32 %v4155_v18, %v4154_v9  ;;  %v1880_v9 = vld [vmem:[#allocation4 + $0x78] sm:$0xff] }
0x101e   : > { %v5100_v18 = vpack.c.bf16 %v1880_v9, %v1876_v7  ;;  %v1925_v9 = vld [vmem:[#allocation4 + $0x1e0] sm:$0xff] }
0x101f   : > { %v1607_v29 = vadd.f32 %v4156_v21, %v1532_v20  ;;  %v4157_v30 = vpop.f32.mrb[12].mxu1  ;;  %v1875_v20 = vld [vmem:[#allocation4 + $0x50] sm:$0xff] }
0x1020   : > { %v4158_v62 = vpop.f32.mrb[13].mxu1  ;;  %v1879_v21 = vld [vmem:[#allocation4 + $0x70] sm:$0xff] }
0x1021   : > { %v4159_v25 = vadd.f32 %v4158_v62, %v4157_v30  ;;  %v5102_v27 = vpack.c.bf16 %v1879_v21, %v1875_v20  ;;  %v1883_v30 = vld [vmem:[#allocation4 + $0x90] sm:$0xff]  ;;  %v2130_v20 = vld [vmem:[#allocation2 + $0x6c0] sm:$0xff] }
0x1022   : > { %v5106_v62 = vpack.c.bf16 %v1887_v52, %v1883_v30  ;;  %v2131_v21 = vld [vmem:[#allocation2 + $0x6c8] sm:$0xff]  ;;  %v3982_v30 = vld [vmem:[#allocation2 + $0x638] ss:$0 sm:$0xff] }
0x1023   : > { %v1612_v31 = vadd.f32 %v4159_v25, %v1537_v10  ;;  %v5108_v10 = vpack.c.bf16 %v1896_v61, %v1892_v54  ;;  %v1891_v25 = vld [vmem:[#allocation4 + $0xd0] sm:$0xff]  ;;  %v2114_v54 = vld [vmem:[#allocation2 + $0x640] sm:$0xff] }
0x1024   : > { %v2115_v61 = vld [vmem:[#allocation2 + $0x648] sm:$0xff] }
0x102d   : > { %v4192_v58 = vpop.f32.mrb[32].mxu0 }
0x102e   : > { %v4193_v37 = vpop.f32.mrb[33].mxu0 }
0x102f   : > { %v4194_v38 = vadd.f32 %v4193_v37, %v4192_v58  ;;  %v1912_v58 = vld [vmem:[#allocation4 + $0x178] sm:$0xff]  ;;  %v5114_v37 = vpack.c.bf16 %v1903_v35, %v1899_v34 }
0x1031   : > { %v1682_v40 = vadd.f32 %v4194_v38, %v1607_v29  ;;  %v4195_v44 = vpop.f32.mrb[34].mxu0  ;;  %v5104_v29 = vpack.c.bf16 %v1888_v26, %v1884_v23  ;;  %v5116_v38 = vpack.c.bf16 %v1912_v58, %v1908_v36  ;;  %v2162_v23 = vld [vmem:[#allocation2 + $0x7c0] sm:$0xff]  ;;  %v5128_v26 = vpack.c.bf16 %v2131_v21, %v2130_v20 }
0x1032   : > { %v4196_v45 = vpop.f32.mrb[35].mxu0  ;;  %v5130_v36 = vpack.c.bf16 %v2115_v61, %v2114_v54  ;;  %v2138_v54 = vld [vmem:[#allocation2 + $0x700] sm:$0xff]  ;;  %v2139_v61 = vld [vmem:[#allocation2 + $0x708] sm:$0xff] }
0x1033   : > { %v4197_v46 = vadd.f32 %v4196_v45, %v4195_v44  ;;  %v1911_v44 = vld [vmem:[#allocation4 + $0x170] sm:$0xff]  ;;  %v1916_v45 = vld [vmem:[#allocation4 + $0x198] sm:$0xff] }
0x1035   : > { %v1687_v48 = vadd.f32 %v4197_v46, %v1612_v31  ;;  %v5110_v31 = vpack.c.bf16 %v1895_v24, %v1891_v25  ;;  %v1920_v46 = vld [vmem:[#allocation4 + $0x1b8] sm:$0xff]  ;;  %v2147_v25 = vld [vmem:[#allocation2 + $0x748] sm:$0xff] }
0x1036   : > { %v2132_v24 = vld [vmem:[#allocation2 + $0x6d0] sm:$0xff] }
0x1081   : > { %v4230_v49 = vpop.f32.mrb[14].mxu1 }
0x1082   : > { %v4231_v51 = vpop.f32.mrb[15].mxu1 }
0x1083   : > { %v4232_v56 = vadd.f32 %v4231_v51, %v4230_v49  ;;  %v5120_v49 = vpack.c.bf16 %v1920_v46, %v1916_v45  ;;  %v1915_v51 = vld [vmem:[#allocation4 + $0x190] sm:$0xff]  ;;  %v2148_v45 = vld [vmem:[#allocation2 + $0x750] sm:$0xff]  ;;  %v2149_v46 = vld [vmem:[#allocation2 + $0x758] sm:$0xff] }
0x1085   : > { %v1757_v57 = vadd.f32 %v4232_v56, %v1682_v40  ;;  %v4233_v59 = vpop.f32.mrb[16].mxu1  ;;  %v1907_v40 = vld [vmem:[#allocation4 + $0x150] sm:$0xff] }
0x1086   : > { %v4234_v60 = vpop.f32.mrb[17].mxu1  ;;  %v1919_v56 = vld [vmem:[#allocation4 + $0x1b0] sm:$0xff] }
0x1087   : > { %v1765_v0 = vmax.f32 %v1757_v57, 0.0  ;;  %v4235_v3 = vadd.f32 %v4234_v60, %v4233_v59  ;;  %v5122_v57 = vpack.c.bf16 %v1919_v56, %v1915_v51  ;;  %v1922_v59 = vld [vmem:[#allocation4 + $0x1c8] sm:$0xff]  ;;  %v2167_v56 = vld [vmem:[#allocation2 + $0x7e8] sm:$0xff] }
0x1088   : > { %v1926_v60 = vld [vmem:[#allocation4 + $0x1e8] sm:$0xff] }
0x1089   : > { %v1762_v12 = vadd.f32 %v4235_v3, %v1687_v48  ;;  %4737 = vmatprep.mubr.f32.mxu0 %v1765_v0  ;;  %v5118_v48 = vpack.c.bf16 %v1911_v44, %v1907_v40  ;;  %v5092_v0 = vpack.c.bf16 %v1926_v60, %v1922_v59  ;;  %v1924_v3 = vld [vmem:[#allocation4 + $0x1d8] sm:$0xff]  ;;  %v5132_v40 = vpack.c.bf16 %v2133_v32, %v2132_v24  ;;  %v2166_v51 = vld [vmem:[#allocation2 + $0x7e0] sm:$0xff]  ;;  %v2123_v32 = vld [vmem:[#allocation2 + $0x688] sm:$0xff] }
0x108a   : > { %v5124_v7 = vpack.c.bf16 %v1928_v5, %v1924_v3  ;;  %v5166_v60 = vpack.c.bf16 %v2149_v46, %v2148_v45  ;;  %v2119_v3 = vld [vmem:[#allocation2 + $0x668] sm:$0xff]  ;;  %v2124_v45 = vld [vmem:[#allocation2 + $0x690] sm:$0xff]  ;;  %v2125_v46 = vld [vmem:[#allocation2 + $0x698] sm:$0xff] }
0x108b   : > { %v1766_v17 = vmax.f32 %v1762_v12, 0.0  ;;  %v1923_v12 = vld [vmem:[#allocation4 + $0x1d0] sm:$0xff]  ;;  %5093 = vmatprep.subr.bf16.mxu1 %v5092_v0  ;;  %v2118_v0 = vld [vmem:[#allocation2 + $0x660] sm:$0xff] }
0x108c   : > { %v5138_v20 = vpack.c.bf16 %v2119_v3, %v2118_v0  ;;  %v2175_v0 = vld [vmem:[#allocation2 + $0x828] sm:$0xff]  ;;  %v5150_v3 = vpack.c.bf16 %v2125_v46, %v2124_v45 }
0x108d   : > { %4738 = vmatmul.mubr.f32.vlgmr.msra.gmra.mrb[36].mxu0 %v1766_v17  ;;  %v5094_v17 = vpack.c.bf16 %v1925_v9, %v1921_v6  ;;  %v5168_v6 = vpack.c.bf16 %v2167_v56, %v2166_v51  ;;  %v2151_v9 = vld [vmem:[#allocation2 + $0x768] sm:$0xff]  ;;  %v2156_v51 = vld [vmem:[#allocation2 + $0x790] sm:$0xff]  ;;  %v2157_v56 = vld [vmem:[#allocation2 + $0x798] sm:$0xff] }
0x108e   : > { %5099 = vmatpush1.bf16.msra.mxu0 %v5098_v15  ;;  %2093 = vmatprep.mubr.f32.mxu0 %v5734_v39  ;;  %v1927_v15 = vld [vmem:[#allocation4 + $0x1f0] sm:$0xff] }
0x108f   : > { %5101 = vmatprep.subr.bf16.mxu0 %v5100_v18  ;;  %v5126_v18 = vpack.c.bf16 %v1927_v15, %v1923_v12  ;;  %5095 = vmatpush1.bf16.msra.mxu1 %v5094_v17  ;;  %v2136_v12 = vld [vmem:[#allocation2 + $0x6f0] sm:$0xff]  ;;  %v2137_v15 = vld [vmem:[#allocation2 + $0x6f8] sm:$0xff] }
0x1090   : > { %5129 = vmatprep.subr.bf16.mxu1 %v5128_v26  ;;  %v2168_v17 = vld [vmem:[#allocation2 + $0x7f0] sm:$0xff]  ;;  %v2121_v26 = vld [vmem:[#allocation2 + $0x678] sm:$0xff] }
0x1092   : > { %5103 = vmatpush1.bf16.msra.mxu0 %v5102_v27  ;;  %v2163_v27 = vld [vmem:[#allocation2 + $0x7c8] sm:$0xff] }
0x1093   : > { %5105 = vmatprep.subr.bf16.mxu0 %v5104_v29  ;;  %v5160_v29 = vpack.c.bf16 %v2163_v27, %v2162_v23  ;;  %v2120_v23 = vld [vmem:[#allocation2 + $0x670] sm:$0xff]  ;;  %v5140_v27 = vpack.c.bf16 %v2137_v15, %v2136_v12  ;;  %v2127_v12 = vld [vmem:[#allocation2 + $0x6a8] sm:$0xff]  ;;  %v2158_v15 = vld [vmem:[#allocation2 + $0x7a0] sm:$0xff] }
0x1096   : > { %5107 = vmatpush1.bf16.msra.mxu0 %v5106_v62 }
0x1097   : > { %5109 = vmatprep.subr.bf16.mxu0 %v5108_v10  ;;  %v2146_v10 = vld [vmem:[#allocation2 + $0x740] sm:$0xff] }
0x1098   : > { %v5162_v58 = vpack.c.bf16 %v2147_v25, %v2146_v10  ;;  %v2171_v10 = vld [vmem:[#allocation2 + $0x808] sm:$0xff]  ;;  %v5142_v25 = vpack.c.bf16 %v2121_v26, %v2120_v23  ;;  %v2145_v23 = vld [vmem:[#allocation2 + $0x738] sm:$0xff]  ;;  %v2176_v26 = vld [vmem:[#allocation2 + $0x830] sm:$0xff] }
0x109a   : > { %5111 = vmatpush1.bf16.msra.mxu0 %v5110_v31  ;;  %v2164_v31 = vld [vmem:[#allocation2 + $0x7d0] sm:$0xff] }
0x109b   : > { %5113 = vmatprep.subr.bf16.mxu0 %v5112_v33  ;;  %v2165_v33 = vld [vmem:[#allocation2 + $0x7d8] sm:$0xff] }
0x109c   : > { %v5164_v44 = vpack.c.bf16 %v2165_v33, %v2164_v31  ;;  %v5144_v31 = vpack.c.bf16 %v2139_v61, %v2138_v54 }
0x109e   : > { %5115 = vmatpush1.bf16.msra.mxu0 %v5114_v37  ;;  %v2116_v37 = vld [vmem:[#allocation2 + $0x650] sm:$0xff] }
0x109f   : > { %5117 = vmatprep.subr.bf16.mxu0 %v5116_v38  ;;  %v2117_v38 = vld [vmem:[#allocation2 + $0x658] sm:$0xff] }
0x10a0   : > { %v5134_v59 = vpack.c.bf16 %v2117_v38, %v2116_v37  ;;  %v2172_v37 = vld [vmem:[#allocation2 + $0x810] sm:$0xff]  ;;  %v2173_v38 = vld [vmem:[#allocation2 + $0x818] sm:$0xff] }
0x10a2   : > { %5119 = vmatpush1.bf16.msra.mxu0 %v5118_v48  ;;  %v2134_v48 = vld [vmem:[#allocation2 + $0x6e0] sm:$0xff] }
0x10a3   : > { %5121 = vmatprep.subr.bf16.mxu0 %v5120_v49  ;;  %v2135_v49 = vld [vmem:[#allocation2 + $0x6e8] sm:$0xff] }
0x10a4   : > { %v5136_v5 = vpack.c.bf16 %v2135_v49, %v2134_v48  ;;  %v5180_v49 = vpack.c.bf16 %v2173_v38, %v2172_v37 }
0x10a6   : > { %5123 = vmatpush1.bf16.msra.mxu0 %v5122_v57 }
0x10a7   : > { %5125 = vmatprep.subr.bf16.mxu0 %v5124_v7  ;;  %v2150_v7 = vld [vmem:[#allocation2 + $0x760] sm:$0xff] }
0x10a8   : > { %v5170_v21 = vpack.c.bf16 %v2151_v9, %v2150_v7  ;;  %v2126_v9 = vld [vmem:[#allocation2 + $0x6a0] sm:$0xff] }
0x10aa   : > { %5127 = vmatpush1.bf16.msra.mxu0 %v5126_v18  ;;  %v2169_v18 = vld [vmem:[#allocation2 + $0x7f8] sm:$0xff] }
0x10ab   : > { %5161 = vmatprep.subr.bf16.mxu0 %v5160_v29  ;;  %v5172_v29 = vpack.c.bf16 %v2169_v18, %v2168_v17  ;;  %v5154_v17 = vpack.c.bf16 %v2127_v12, %v2126_v9  ;;  %v2159_v18 = vld [vmem:[#allocation2 + $0x7a8] sm:$0xff] }
0x1160   : > { %v4739_v52 = vpop.f32.mrb[36].mxu0 }
0x1161   : > { %v1854_v62 = vpop.f32.mrb[37].mxu0  ;;  %v1860_v34 = vadd.f32 %v4739_v52, %v3982_v30  ;;  %v2153_v52 = vld [vmem:[#allocation2 + $0x778] sm:$0xff] }
0x1162   : > { %v1855_v50 = vadd.f32 %v3982_v30, %v1854_v62  ;;  %v2152_v30 = vld [vmem:[#allocation2 + $0x770] sm:$0xff]  ;;  %v2170_v62 = vld [vmem:[#allocation2 + $0x800] sm:$0xff] }
0x1163   : > { %v1864_v57 = vmax.f32 %v1860_v34, 0.0  ;;  %v5174_v24 = vpack.c.bf16 %v2153_v52, %v2152_v30  ;;  %v5176_v33 = vpack.c.bf16 %v2171_v10, %v2170_v62  ;;  %v2154_v34 = vld [vmem:[#allocation2 + $0x780] sm:$0xff]  ;;  %v2128_v30 = vld [vmem:[#allocation2 + $0x6b0] sm:$0xff]  ;;  %v2129_v52 = vld [vmem:[#allocation2 + $0x6b8] sm:$0xff] }
0x1164   : > { %v1863_v35 = vmax.f32 %v1855_v50, 0.0  ;;  %v2122_v50 = vld [vmem:[#allocation2 + $0x680] sm:$0xff]  ;;  %v5158_v61 = vpack.c.bf16 %v2129_v52, %v2128_v30  ;;  %v2160_v62 = vld [vmem:[#allocation2 + $0x7b0] sm:$0xff]  ;;  %v2161_v10 = vld [vmem:[#allocation2 + $0x7b8] sm:$0xff] }
0x1165   : > { %v3983_v30 = vld [vmem:[#allocation2 + $0x840] ss:$0 sm:$0xff] }
0x1166   : > { %2017 = vmatmul.mubr.f32.vlgmr.msra.gmra.mrb[18].mxu1 %v1863_v35  ;;  %2094 = vmatmul.mubr.f32.vlgmr.msra.gmra.mrb[38].mxu0 %v1863_v35  ;;  %v2155_v35 = vld [vmem:[#allocation2 + $0x788] sm:$0xff] }
0x1167   : > { %2022 = vmatprep.mubr.f32.mxu1 %v5734_v39  ;;  %2099 = vmatprep.mubr.f32.mxu0 %v5734_v39 }
0x1168   : > { %5131 = vmatpush3.bf16.msra.mxu1 %v5130_v36  ;;  %5163 = vmatpush3.bf16.msra.mxu0 %v5162_v58  ;;  %v2140_v36 = vld [vmem:[#allocation2 + $0x710] sm:$0xff]  ;;  %v2141_v58 = vld [vmem:[#allocation2 + $0x718] sm:$0xff] }
0x1169   : > { %5133 = vmatprep.subr.bf16.mxu1 %v5132_v40  ;;  %5165 = vmatprep.subr.bf16.mxu0 %v5164_v44  ;;  %v5146_v40 = vpack.c.bf16 %v2123_v32, %v2122_v50  ;;  %v5178_v44 = vpack.c.bf16 %v2155_v35, %v2154_v34  ;;  %v5148_v48 = vpack.c.bf16 %v2141_v58, %v2140_v36 }
0x116a   : > { %2023 = vmatmul.mubr.f32.gmra.mrb[20].mxu1 %v1864_v57  ;;  %2100 = vmatmul.mubr.f32.gmra.mrb[40].mxu0 %v1864_v57  ;;  %v2142_v57 = vld [vmem:[#allocation2 + $0x720] sm:$0xff] }
0x116c   : > { %5135 = vmatpush3.bf16.msra.mxu1 %v5134_v59  ;;  %5167 = vmatpush3.bf16.msra.mxu0 %v5166_v60  ;;  %v2143_v59 = vld [vmem:[#allocation2 + $0x728] sm:$0xff]  ;;  %v2174_v60 = vld [vmem:[#allocation2 + $0x820] sm:$0xff] }
0x116d   : > { %5137 = vmatprep.subr.bf16.mxu1 %v5136_v5  ;;  %5169 = vmatprep.subr.bf16.mxu0 %v5168_v6  ;;  %v5182_v5 = vpack.c.bf16 %v2157_v56, %v2156_v51  ;;  %v5152_v6 = vpack.c.bf16 %v2143_v59, %v2142_v57  ;;  %v5184_v7 = vpack.c.bf16 %v2175_v0, %v2174_v60 }
0x1170   : > { %5139 = vmatpush3.bf16.msra.mxu1 %v5138_v20  ;;  %5171 = vmatpush3.bf16.msra.mxu0 %v5170_v21  ;;  %v5186_v20 = vpack.c.bf16 %v2159_v18, %v2158_v15  ;;  %v2144_v21 = vld [vmem:[#allocation2 + $0x730] sm:$0xff] }
0x1171   : > { %5141 = vmatprep.subr.bf16.mxu1 %v5140_v27  ;;  %5173 = vmatprep.subr.bf16.mxu0 %v5172_v29  ;;  %v5156_v27 = vpack.c.bf16 %v2145_v23, %v2144_v21  ;;  %v2177_v29 = vld [vmem:[#allocation2 + $0x838] sm:$0xff] }
0x1172   : > { %v5188_v54 = vpack.c.bf16 %v2177_v29, %v2176_v26  ;;  %v2335_v26 = vld [vmem:[#allocation2 + $0x848] sm:$0xf] }
0x1174   : > { %5143 = vmatpush3.bf16.msra.mxu1 %v5142_v25  ;;  %5175 = vmatpush3.bf16.msra.mxu0 %v5174_v24  ;;  %v5190_v25 = vpack.c.bf16 %v2161_v10, %v2160_v62  ;;  %v1932_v24 = vlaneseq }
0x1175   : > { %5145 = vmatprep.subr.bf16.mxu1 %v5144_v31  ;;  %5177 = vmatprep.subr.bf16.mxu0 %v5176_v33  ;;  %v1930_v33 = vld [vmem:[#allocation4 + $0x200] ss:$8 sm:$0xf] }
0x1176   : > { %v6159_v50 = vshrl.u32 %v1932_v24, 7 }
0x1178   : > { %5147 = vmatpush3.bf16.msra.mxu1 %v5146_v40  ;;  %5179 = vmatpush3.bf16.msra.mxu0 %v5178_v44  ;;  %v6162_v32 = vsub.s32 0, %v6159_v50  ;;  %v1942_v31 = vsub.s32 2, %v6159_v50  ;;  %v6166_v34 = vsub.s32 1, %v6159_v50  ;;  %v1946_v35 = vsub.s32 3, %v6159_v50 }
0x1179   : > { %5149 = vmatprep.subr.bf16.mxu1 %v5148_v48  ;;  %5181 = vmatprep.subr.bf16.mxu0 %v5180_v49 }
0x117a   : > { %v1935_v36 = vrot.slane %v1930_v33, %v6162_v32  ;;  %v1943_v58 = vrot.slane %v1930_v33, %v1942_v31  ;;  %v1939_v37 = vrot.slane %v1930_v33, %v6166_v34  ;;  %v1947_v38 = vrot.slane %v1930_v33, %v1946_v35 }
0x117c   : > { %5151 = vmatpush3.bf16.msra.mxu1 %v5150_v3  ;;  %5183 = vmatpush3.bf16.msra.mxu0 %v5182_v5 }
0x117d   : > { %5153 = vmatprep.subr.bf16.mxu1 %v5152_v6  ;;  %5185 = vmatprep.subr.bf16.mxu0 %v5184_v7 }
0x1180   : > { %5155 = vmatpush3.bf16.msra.mxu1 %v5154_v17  ;;  %5187 = vmatpush3.bf16.msra.mxu0 %v5186_v20 }
0x1181   : > { %5157 = vmatprep.subr.bf16.mxu1 %v5156_v27  ;;  %5189 = vmatprep.subr.bf16.mxu0 %v5188_v54 }
0x1184   : > { %5159 = vmatpush3.bf16.msra.mxu1 %v5158_v61  ;;  %5191 = vmatpush3.bf16.msra.mxu0 %v5190_v25 }
0x1185   : > { %4740 = vmatprep.subr.msk.mxu1 %vm281_vm1, %v2335_v26 }
0x1239   : > { %v2018_v40 = vpop.f32.mrb[18].mxu1  ;;  %v2095_v44 = vpop.f32.mrb[38].mxu0 }
0x123a   : > { %v2019_v45 = vadd.f32 %v2018_v40, %v1935_v36  ;;  %v2096_v46 = vadd.f32 %v2095_v44, %v1943_v58  ;;  %v2020_v48 = vpop.f32.mrb[19].mxu1  ;;  %v2097_v49 = vpop.f32.mrb[39].mxu0 }
0x123b   : > { %v2021_v51 = vadd.f32 %v2020_v48, %v1939_v37  ;;  %v2098_v56 = vadd.f32 %v2097_v49, %v1947_v38 }
0x123c   : > { %v2106_v3 = vmax.f32 %v2019_v45, 0.0  ;;  %v2108_v5 = vmax.f32 %v2096_v46, 0.0  ;;  %v2427_v45 = vld [vmem:[#allocation2 + $0x858] sm:$0xff]  ;;  %v2428_v46 = vld [vmem:[#allocation2 + $0x860] sm:$0xff] }
0x123d   : > { %v2107_v57 = vmax.f32 %v2021_v51, 0.0  ;;  %v2109_v59 = vmax.f32 %v2098_v56, 0.0  ;;  %v2024_v60 = vpop.f32.mrb[20].mxu1  ;;  %v2101_v0 = vpop.f32.mrb[40].mxu0  ;;  %v5192_v48 = vpack.c.bf16 %v2428_v46, %v2427_v45  ;;  %v2429_v51 = vld [vmem:[#allocation2 + $0x868] sm:$0xff]  ;;  %v2430_v56 = vld [vmem:[#allocation2 + $0x870] sm:$0xff] }
0x123e   : > { %v2025_v6 = vadd.f32 %v2024_v60, %v1935_v36  ;;  %v2102_v7 = vadd.f32 %v2101_v0, %v1943_v58  ;;  %v2026_v9 = vpop.f32.mrb[21].mxu1  ;;  %v2103_v12 = vpop.f32.mrb[41].mxu0  ;;  %v2431_v60 = vld [vmem:[#allocation2 + $0x878] sm:$0xff]  ;;  %v2432_v0 = vld [vmem:[#allocation2 + $0x880] sm:$0xff] }
0x123f   : > { %v2027_v15 = vadd.f32 %v2026_v9, %v1939_v37  ;;  %v2104_v17 = vadd.f32 %v2103_v12, %v1947_v38  ;;  %2247 = vmatprep.mubr.f32.mxu1 %v2107_v57  ;;  %2322 = vmatprep.mubr.f32.mxu0 %v2109_v59  ;;  %v5196_v57 = vpack.c.bf16 %v2430_v56, %v2429_v51  ;;  %v2539_v9 = vld [vmem:[#allocation2 + $0x920] sm:$0xff]  ;;  %v2540_v12 = vld [vmem:[#allocation2 + $0x928] sm:$0xff]  ;;  %v2541_v56 = vld [vmem:[#allocation2 + $0x930] sm:$0xff] }
0x1240   : > { %2248 = vmatmul.mubr.f32.vlgmr.msra.gmra.mrb[22].mxu1 %v2106_v3  ;;  %2323 = vmatmul.mubr.f32.vlgmr.msra.gmra.mrb[42].mxu0 %v2108_v5  ;;  %v2110_v21 = vmax.f32 %v2025_v6, 0.0  ;;  %v2112_v23 = vmax.f32 %v2102_v7, 0.0  ;;  %v5200_v3 = vpack.c.bf16 %v2432_v0, %v2431_v60  ;;  %v2433_v5 = vld [vmem:[#allocation2 + $0x888] sm:$0xff]  ;;  %v2434_v6 = vld [vmem:[#allocation2 + $0x890] sm:$0xff] }
0x1241   : > { %v2111_v18 = vmax.f32 %v2027_v15, 0.0  ;;  %v2113_v20 = vmax.f32 %v2104_v17, 0.0  ;;  %4741 = vmatpush3.msk.msra.mxu1 %vm281_vm1, %v2335_v26  ;;  %v5204_v7 = vpack.c.bf16 %v2434_v6, %v2433_v5  ;;  %v5240_v15 = vpack.c.bf16 %v2540_v12, %v2539_v9  ;;  %v2651_v17 = vld [vmem:[#allocation2 + $0xca0] sm:$0xff]  ;;  %v2525_v5 = vld [vmem:[#allocation2 + $0x8b0] sm:$0xff]  ;;  %v2526_v6 = vld [vmem:[#allocation2 + $0x8b8] sm:$0xff] }
0x1242   : > { %5193 = vmatprep.subr.bf16.mxu1 %v5192_v48  ;;  %v2544_v9 = vld [vmem:[#allocation2 + $0x948] sm:$0xff]  ;;  %v5246_v12 = vpack.c.bf16 %v2526_v6, %v2525_v5  ;;  %v2587_v6 = vld [vmem:[#allocation2 + $0xaa0] sm:$0xff]  ;;  %vm3739_vm1 = vcmask 56320  }
0x1243   : > { %2252 = vmatprep.mubr.f32.mxu1 %v2111_v18  ;;  %2327 = vmatprep.mubr.f32.mxu0 %v2113_v20  ;;  %v2652_v18 = vld [vmem:[#allocation2 + $0xca8] sm:$0xff]  ;;  %v2653_v20 = vld [vmem:[#allocation2 + $0xcb0] sm:$0xff] }
0x1244   : > { %2253 = vmatmul.mubr.f32.gmra.mrb[24].mxu1 %v2110_v21  ;;  %2328 = vmatmul.mubr.f32.gmra.mrb[44].mxu0 %v2112_v23  ;;  %v5208_v21 = vpack.c.bf16 %v2652_v18, %v2651_v17  ;;  %v2654_v23 = vld [vmem:[#allocation2 + $0xcb8] sm:$0xff]  ;;  %v2527_v17 = vld [vmem:[#allocation2 + $0x8c0] sm:$0xff]  ;;  %v2528_v18 = vld [vmem:[#allocation2 + $0x8c8] sm:$0xff] }
0x1245   : > { %v5212_v26 = vpack.c.bf16 %v2654_v23, %v2653_v20  ;;  %v2545_v20 = vld [vmem:[#allocation2 + $0x950] sm:$0xff]  ;;  %v5250_v23 = vpack.c.bf16 %v2528_v18, %v2527_v17 }
0x1246   : > { %5209 = vmatprep.subr.bf16.mxu0 %v5208_v21  ;;  %v2589_v18 = vld [vmem:[#allocation2 + $0xab0] sm:$0xff] }
0x1247   : > { %5211 = vmatpush3.bf16.msra.mxu0 %v5208_v21  ;;  %v2546_v21 = vld [vmem:[#allocation2 + $0x958] sm:$0xff] }
0x1248   : > { %5213 = vmatprep.subr.bf16.mxu0 %v5212_v26 }
0x124b   : > { %5215 = vmatpush3.bf16.msra.mxu0 %v5212_v26  ;;  %v5252_v26 = vpack.c.bf16 %v2546_v21, %v2545_v20  ;;  %v2590_v20 = vld [vmem:[#allocation2 + $0xab8] sm:$0xff]  ;;  %v2607_v21 = vld [vmem:[#allocation2 + $0xb40] sm:$0xff] }
0x1313   : > { %v4286_v27 = vpop.f32.mrb[22].mxu1  ;;  %v4324_v29 = vpop.f32.mrb[42].mxu0 }
0x1314   : > { %v4287_v52 = vpop.f32.mrb[23].mxu1  ;;  %v4325_v54 = vpop.f32.mrb[43].mxu0 }
0x1315   : > { %v4288_v61 = vadd.f32 %v4287_v52, %v4286_v27  ;;  %v4326_v62 = vadd.f32 %v4325_v54, %v4324_v29  ;;  %v2655_v27 = vld [vmem:[#allocation2 + $0xcc0] sm:$0xff]  ;;  %v2656_v29 = vld [vmem:[#allocation2 + $0xcc8] sm:$0xff]  ;;  %v2657_v52 = vld [vmem:[#allocation2 + $0xcd0] sm:$0xff] }
0x1316   : > { %v2658_v54 = vld [vmem:[#allocation2 + $0xcd8] sm:$0xff] }
0x1317   : > { %v2250_v10 = vadd.f32 %v4288_v61, %v3983_v30  ;;  %v4289_v25 = vpop.f32.mrb[24].mxu1  ;;  %v4327_v24 = vpop.f32.mrb[44].mxu0  ;;  %v5220_v61 = vpack.c.bf16 %v2658_v54, %v2657_v52  ;;  %v2548_v52 = vld [vmem:[#allocation2 + $0x968] sm:$0xff] }
0x1318   : > { %v4290_v33 = vpop.f32.mrb[25].mxu1  ;;  %v4328_v36 = vpop.f32.mrb[45].mxu0 }
0x1319   : > { %v2325_v58 = vadd.f32 %v4326_v62, %v2250_v10  ;;  %v4291_v37 = vadd.f32 %v4290_v33, %v4289_v25  ;;  %v4329_v38 = vadd.f32 %v4328_v36, %v4327_v24  ;;  %v2659_v62 = vld [vmem:[#allocation2 + $0xce0] sm:$0xff]  ;;  %v2660_v10 = vld [vmem:[#allocation2 + $0xce8] sm:$0xff]  ;;  %v2661_v24 = vld [vmem:[#allocation2 + $0xcf0] sm:$0xff] }
0x131a   : > { %v5224_v25 = vpack.c.bf16 %v2660_v10, %v2659_v62  ;;  %v2662_v33 = vld [vmem:[#allocation2 + $0xcf8] sm:$0xff]  ;;  %v2532_v62 = vld [vmem:[#allocation2 + $0x8e8] sm:$0xff]  ;;  %v2549_v10 = vld [vmem:[#allocation2 + $0x970] sm:$0xff] }
0x131b   : > { %5643 = vtanh.f32 %v2325_v58  ;;  %v2255_v40 = vadd.f32 %v4291_v37, %v3983_v30  ;;  %v5216_v30 = vpack.c.bf16 %v2656_v29, %v2655_v27  ;;  %v5228_v36 = vpack.c.bf16 %v2662_v33, %v2661_v24  ;;  %v2663_v58 = vld [vmem:[#allocation2 + $0xd00] sm:$0xff]  ;;  %v2664_v37 = vld [vmem:[#allocation2 + $0xd08] sm:$0xff]  ;;  %v2529_v27 = vld [vmem:[#allocation2 + $0x8d0] sm:$0xff] }
0x131c   : > { %v2530_v29 = vld [vmem:[#allocation2 + $0x8d8] sm:$0xff] }
0x131d   : > { %v2330_v44 = vadd.f32 %v4329_v38, %v2255_v40  ;;  %5217 = vmatprep.subr.bf16.mxu0 %v5216_v30  ;;  %v5232_v38 = vpack.c.bf16 %v2664_v37, %v2663_v58  ;;  %v3984_v40 = vld [vmem:[#allocation2 + $0x850] ss:$0 sm:$0xff]  ;;  %v5254_v54 = vpack.c.bf16 %v2530_v29, %v2529_v27  ;;  %v2534_v58 = vld [vmem:[#allocation2 + $0x8f8] sm:$0xff]  ;;  %v2551_v37 = vld [vmem:[#allocation2 + $0x980] sm:$0xff] }
0x131e   : > { %5219 = vmatpush3.bf16.msra.mxu0 %v5216_v30  ;;  %v2547_v30 = vld [vmem:[#allocation2 + $0x960] sm:$0xff] }
0x131f   : > { %5645 = vtanh.f32 %v2330_v44  ;;  %5221 = vmatprep.subr.bf16.mxu0 %v5220_v61  ;;  %v2591_v29 = vld [vmem:[#allocation2 + $0xac0] sm:$0xff] }
0x1322   : > { %5223 = vmatpush3.bf16.msra.mxu0 %v5220_v61  ;;  %v5256_v61 = vpack.c.bf16 %v2548_v52, %v2547_v30  ;;  %v2592_v30 = vld [vmem:[#allocation2 + $0xac8] sm:$0xff]  ;;  %v2609_v52 = vld [vmem:[#allocation2 + $0xb50] sm:$0xff] }
0x1323   : > { %5225 = vmatprep.subr.bf16.mxu0 %v5224_v25 }
0x1325   : > { %v5644_v49 = vpop.eup %5643 }
0x1326   : > { %3723 = vrot.lane.b32.xlu1 %v5644_v49, %s5735_s23  ;;  %4742 = vmatprep.mubr.msk.f32.mxu1 %vm256_vm2, %v5644_v49  ;;  %v2524_v49 = vld [vmem:[#allocation2 + $0x8a8] sm:$0xff] }
0x1327   : > { %5227 = vmatpush3.bf16.msra.mxu0 %v5224_v25  ;;  %v2550_v25 = vld [vmem:[#allocation2 + $0x978] sm:$0xff] }
0x1328   : > { %5229 = vmatprep.subr.bf16.mxu0 %v5228_v36  ;;  %v5260_v33 = vpack.c.bf16 %v2550_v25, %v2549_v10  ;;  %v2611_v10 = vld [vmem:[#allocation2 + $0xb60] sm:$0xff] }
0x1329   : > { %v5646_v59 = vpop.eup %5645 }
0x132a   : > { %3725 = vrot.lane.b32.xlu0 %v5646_v59, %s5735_s23  ;;  %4743 = vmatmul.mubr.msk.f32.vlgmr.msra.gmra.mrb[26].mxu1 %vm256_vm2, %v5646_v59  ;;  %vm3743_vm2 = vcmask 64512  }
0x132b   : > { %5195 = vmatpush3.bf16.msra.mxu1 %v5192_v48  ;;  %5231 = vmatpush3.bf16.msra.mxu0 %v5228_v36  ;;  %v2523_v48 = vld [vmem:[#allocation2 + $0x8a0] sm:$0xff]  ;;  %v2533_v36 = vld [vmem:[#allocation2 + $0x8f0] sm:$0xff] }
0x132c   : > { %5197 = vmatprep.subr.bf16.mxu1 %v5196_v57  ;;  %5233 = vmatprep.subr.bf16.mxu0 %v5232_v38  ;;  %v5242_v60 = vpack.c.bf16 %v2524_v49, %v2523_v48  ;;  %v2553_v48 = vld [vmem:[#allocation2 + $0x990] sm:$0xff]  ;;  %v2554_v49 = vld [vmem:[#allocation2 + $0x998] sm:$0xff] }
0x132f   : > { %5199 = vmatpush3.bf16.msra.mxu1 %v5196_v57  ;;  %5235 = vmatpush3.bf16.msra.mxu0 %v5232_v38  ;;  %v2542_v57 = vld [vmem:[#allocation2 + $0x938] sm:$0xff]  ;;  %v2552_v38 = vld [vmem:[#allocation2 + $0x988] sm:$0xff] }
0x1330   : > { %5201 = vmatprep.subr.bf16.mxu1 %v5200_v3 }
0x1333   : > { %5203 = vmatpush3.bf16.msra.mxu1 %v5200_v3  ;;  %v5244_v3 = vpack.c.bf16 %v2542_v57, %v2541_v56  ;;  %v5268_v56 = vpack.c.bf16 %v2554_v49, %v2553_v48  ;;  %v2537_v57 = vld [vmem:[#allocation2 + $0x910] sm:$0xff]  ;;  %v2599_v49 = vld [vmem:[#allocation2 + $0xb00] sm:$0xff] }
0x1334   : > { %5205 = vmatprep.subr.bf16.mxu1 %v5204_v7 }
0x1337   : > { %5207 = vmatpush3.bf16.msra.mxu1 %v5204_v7  ;;  %v2543_v7 = vld [vmem:[#allocation2 + $0x940] sm:$0xff] }
0x1338   : > { %5241 = vmatprep.subr.bf16.mxu1 %v5240_v15  ;;  %v5248_v15 = vpack.c.bf16 %v2544_v9, %v2543_v7  ;;  %v2588_v7 = vld [vmem:[#allocation2 + $0xaa8] sm:$0xff]  ;;  %v2605_v9 = vld [vmem:[#allocation2 + $0xb30] sm:$0xff] }
0x13fd   : > { %v4744_v44 = vpop.f32.mrb[26].mxu1 }
0x13fe   : > { %v2422_v45 = vadd.f32 %v4744_v44, %v3984_v40  ;;  %v2416_v46 = vpop.f32.mrb[27].mxu1  ;;  %v5264_v44 = vpack.c.bf16 %v2552_v38, %v2551_v37  ;;  %v2614_v37 = vld [vmem:[#allocation2 + $0xb78] sm:$0xff] }
0x13ff   : > { %v2417_v51 = vadd.f32 %v3984_v40, %v2416_v46  ;;  %v5262_v40 = vpack.c.bf16 %v2534_v58, %v2533_v36  ;;  %v2536_v46 = vld [vmem:[#allocation2 + $0x908] sm:$0xff]  ;;  %v2613_v58 = vld [vmem:[#allocation2 + $0xb70] sm:$0xff] }
0x1400   : > { %v2426_v0 = vmax.f32 %v2422_v45, 0.0  ;;  %v2535_v45 = vld [vmem:[#allocation2 + $0x900] sm:$0xff]  ;;  %v2596_v36 = vld [vmem:[#allocation2 + $0xae8] sm:$0xff]  ;;  %v5324_v38 = vpack.c.bf16 %v2614_v37, %v2613_v58 }
0x1401   : > { %v2425_v59 = vmax.f32 %v2417_v51, 0.0  ;;  %v5266_v51 = vpack.c.bf16 %v2536_v46, %v2535_v45  ;;  %v2616_v45 = vld [vmem:[#allocation2 + $0xb88] sm:$0xff] }
0x1403   : > { %4761 = vmatprep.mubr.msk.f32.mxu1 %vm411_vm4, %v2425_v59  ;;  %v2538_v59 = vld [vmem:[#allocation2 + $0x918] sm:$0xff] }
0x1404   : > { %4762 = vmatmul.mubr.msk.f32.vlgmr.msra.gmra.mrb[28].mxu1 %vm411_vm4, %v2426_v0  ;;  %v2604_v0 = vld [vmem:[#allocation2 + $0xb28] sm:$0xff] }
0x1405   : > { %5243 = vmatpush3.bf16.msra.mxu1 %v5242_v60  ;;  %2806 = vmatprep.mubr.f32.mxu1 %v6113_v1  ;;  %v2531_v1 = vld [vmem:[#allocation2 + $0x8e0] sm:$0xff] }
0x1406   : > { %5245 = vmatprep.subr.bf16.mxu1 %v5244_v3  ;;  %v5258_v24 = vpack.c.bf16 %v2532_v62, %v2531_v1  ;;  %v2603_v60 = vld [vmem:[#allocation2 + $0xb20] sm:$0xff]  ;;  %v5270_v3 = vpack.c.bf16 %v2538_v59, %v2537_v57  ;;  %v2593_v62 = vld [vmem:[#allocation2 + $0xad0] sm:$0xff]  ;;  %v2618_v57 = vld [vmem:[#allocation2 + $0xb98] sm:$0xff] }
0x1407   : > { %v5304_v5 = vpack.c.bf16 %v2604_v0, %v2603_v60  ;;  %v2601_v0 = vld [vmem:[#allocation2 + $0xb10] sm:$0xff] }
0x1409   : > { %5247 = vmatpush3.bf16.msra.mxu1 %v5246_v12  ;;  %v2606_v12 = vld [vmem:[#allocation2 + $0xb38] sm:$0xff] }
0x140a   : > { %5249 = vmatprep.subr.bf16.mxu1 %v5248_v15  ;;  %v5306_v15 = vpack.c.bf16 %v2588_v7, %v2587_v6  ;;  %v5308_v17 = vpack.c.bf16 %v2606_v12, %v2605_v9  ;;  %v2665_v6 = vld [vmem:[#allocation2 + $0xd10] sm:$0xff]  ;;  %v2666_v7 = vld [vmem:[#allocation2 + $0xd18] sm:$0xff]  ;;  %v2571_v12 = vld [vmem:[#allocation2 + $0xa20] sm:$0xff] }
0x140b   : > { %v5236_v9 = vpack.c.bf16 %v2666_v7, %v2665_v6  ;;  %v2567_v6 = vld [vmem:[#allocation2 + $0xa00] sm:$0xff]  ;;  %v2568_v7 = vld [vmem:[#allocation2 + $0xa08] sm:$0xff] }
0x140d   : > { %5251 = vmatpush3.bf16.msra.mxu1 %v5250_v23  ;;  %v2608_v23 = vld [vmem:[#allocation2 + $0xb48] sm:$0xff]  ;;  %5237 = vmatprep.subr.bf16.mxu0 %v5236_v9 }
0x140e   : > { %5253 = vmatprep.subr.bf16.mxu1 %v5252_v26  ;;  %v5310_v26 = vpack.c.bf16 %v2590_v20, %v2589_v18  ;;  %v5312_v27 = vpack.c.bf16 %v2608_v23, %v2607_v21  ;;  %5239 = vmatpush3.bf16.msra.mxu0 %v5236_v9  ;;  %v3988_v18 = vld [vmem:[#allocation2 + $0x898] ss:$0 sm:$0xff]  ;;  %v2585_v9 = vld [vmem:[#allocation2 + $0xa90] sm:$0xff] }
0x1411   : > { %5255 = vmatpush3.bf16.msra.mxu1 %v5254_v54  ;;  %v2610_v54 = vld [vmem:[#allocation2 + $0xb58] sm:$0xff] }
0x1412   : > { %5257 = vmatprep.subr.bf16.mxu1 %v5256_v61  ;;  %v5314_v61 = vpack.c.bf16 %v2592_v30, %v2591_v29  ;;  %v5316_v1 = vpack.c.bf16 %v2610_v54, %v2609_v52 }
0x1415   : > { %5259 = vmatpush3.bf16.msra.mxu1 %v5258_v24 }
0x1416   : > { %5261 = vmatprep.subr.bf16.mxu1 %v5260_v33  ;;  %v2595_v33 = vld [vmem:[#allocation2 + $0xae0] sm:$0xff] }
0x1419   : > { %5263 = vmatpush3.bf16.msra.mxu1 %v5262_v40  ;;  %v2598_v40 = vld [vmem:[#allocation2 + $0xaf8] sm:$0xff] }
0x141a   : > { %5265 = vmatprep.subr.bf16.mxu1 %v5264_v44  ;;  %v2615_v44 = vld [vmem:[#allocation2 + $0xb80] sm:$0xff] }
0x141b   : > { %v5328_v48 = vpack.c.bf16 %v2616_v45, %v2615_v44 }
0x141d   : > { %5267 = vmatpush3.bf16.msra.mxu1 %v5266_v51  ;;  %v2600_v51 = vld [vmem:[#allocation2 + $0xb08] sm:$0xff] }
0x141e   : > { %5269 = vmatprep.subr.bf16.mxu1 %v5268_v56  ;;  %v2617_v56 = vld [vmem:[#allocation2 + $0xb90] sm:$0xff]  ;;  %v5330_v59 = vpack.c.bf16 %v2600_v51, %v2599_v49  ;;  %v2582_v49 = vld [vmem:[#allocation2 + $0xa78] sm:$0xff] }
0x141f   : > { %v5332_v60 = vpack.c.bf16 %v2618_v57, %v2617_v56  ;;  %v2565_v57 = vld [vmem:[#allocation2 + $0x9f0] sm:$0xff] }
0x1421   : > { %5271 = vmatpush3.bf16.msra.mxu1 %v5270_v3  ;;  %v2602_v3 = vld [vmem:[#allocation2 + $0xb18] sm:$0xff] }
0x1422   : > { %5305 = vmatprep.subr.bf16.mxu1 %v5304_v5  ;;  %v5334_v5 = vpack.c.bf16 %v2602_v3, %v2601_v0  ;;  %v2584_v0 = vld [vmem:[#allocation2 + $0xa88] sm:$0xff] }
0x1424   : > { %2807 = vmatmul.mubr.f32.vlgmr.msra.gmra.mrb[30].mxu1 %v6109_v55  ;;  %v2594_v55 = vld [vmem:[#allocation2 + $0xad8] sm:$0xff] }
0x1425   : > { %2811 = vmatprep.mubr.f32.mxu1 %v6111_v63  ;;  %5307 = vmatpush3.bf16.msra.mxu1 %v5306_v15  ;;  %v2612_v63 = vld [vmem:[#allocation2 + $0xb68] sm:$0xff]  ;;  %v5318_v25 = vpack.c.bf16 %v2594_v55, %v2593_v62  ;;  %v2575_v62 = vld [vmem:[#allocation2 + $0xa40] sm:$0xff] }
0x1426   : > { %5309 = vmatprep.subr.bf16.mxu1 %v5308_v17  ;;  %v5320_v24 = vpack.c.bf16 %v2612_v63, %v2611_v10  ;;  %v2572_v15 = vld [vmem:[#allocation2 + $0xa28] sm:$0xff] }
0x1427   : > { %v5272_v17 = vpack.c.bf16 %v2572_v15, %v2571_v12  ;;  %v2576_v55 = vld [vmem:[#allocation2 + $0xa48] sm:$0xff]  ;;  %v2586_v12 = vld [vmem:[#allocation2 + $0xa98] sm:$0xff]  ;;  %v5298_v15 = vpack.c.bf16 %v2568_v7, %v2567_v6  ;;  %v2631_v7 = vld [vmem:[#allocation2 + $0xc00] sm:$0xff] }
0x1428   : > { %2812 = vmatmul.mubr.f32.gmra.mrb[32].mxu1 %v6107_v53  ;;  %v5322_v53 = vpack.c.bf16 %v2596_v36, %v2595_v33  ;;  %v5280_v63 = vpack.c.bf16 %v2576_v55, %v2575_v62  ;;  %v2577_v33 = vld [vmem:[#allocation2 + $0xa50] sm:$0xff]  ;;  %v2578_v36 = vld [vmem:[#allocation2 + $0xa58] sm:$0xff] }
0x1429   : > { %5311 = vmatpush3.bf16.msra.mxu1 %v5310_v26  ;;  %2956 = vmatprep.mubr.f32.mxu1 %v6137_v8  ;;  %v2597_v8 = vld [vmem:[#allocation2 + $0xaf0] sm:$0xff]  ;;  %v2556_v26 = vld [vmem:[#allocation2 + $0x9a8] sm:$0xff]  ;;  %v5284_v37 = vpack.c.bf16 %v2578_v36, %v2577_v33 }
0x142a   : > { %5313 = vmatprep.subr.bf16.mxu1 %v5312_v27  ;;  %v5326_v46 = vpack.c.bf16 %v2598_v40, %v2597_v8  ;;  %5273 = vmatprep.subr.bf16.mxu0 %v5272_v17  ;;  %v2573_v27 = vld [vmem:[#allocation2 + $0xa30] sm:$0xff]  ;;  %v2579_v8 = vld [vmem:[#allocation2 + $0xa60] sm:$0xff]  ;;  %v2580_v40 = vld [vmem:[#allocation2 + $0xa68] sm:$0xff]  ;;  %v5300_v17 = vpack.c.bf16 %v2586_v12, %v2585_v9 }
0x142b   : > { %v5288_v45 = vpack.c.bf16 %v2580_v40, %v2579_v8  ;;  %v2640_v33 = vld [vmem:[#allocation2 + $0xc48] sm:$0xff]  ;;  %v2642_v8 = vld [vmem:[#allocation2 + $0xc58] sm:$0xff]  ;;  %v2649_v12 = vld [vmem:[#allocation2 + $0xc90] sm:$0xff] }
0x142c   : > { %v2632_v9 = vld [vmem:[#allocation2 + $0xc08] sm:$0xff] }
0x142d   : > { %5315 = vmatpush3.bf16.msra.mxu1 %v5314_v61  ;;  %v2557_v61 = vld [vmem:[#allocation2 + $0x9b0] sm:$0xff] }
0x142e   : > { %5317 = vmatprep.subr.bf16.mxu1 %v5316_v1  ;;  %v2558_v1 = vld [vmem:[#allocation2 + $0x9b8] sm:$0xff] }
0x142f   : > { %v5278_v10 = vpack.c.bf16 %v2558_v1, %v2557_v61 }
0x1431   : > { %5319 = vmatpush3.bf16.msra.mxu1 %v5318_v25  ;;  %v2559_v25 = vld [vmem:[#allocation2 + $0x9c0] sm:$0xff] }
0x1432   : > { %5321 = vmatprep.subr.bf16.mxu1 %v5320_v24  ;;  %v2560_v24 = vld [vmem:[#allocation2 + $0x9c8] sm:$0xff] }
0x1433   : > { %v5282_v58 = vpack.c.bf16 %v2560_v24, %v2559_v25  ;;  %v2639_v24 = vld [vmem:[#allocation2 + $0xc40] sm:$0xff] }
0x1435   : > { %5323 = vmatpush3.bf16.msra.mxu1 %v5322_v53  ;;  %v2561_v53 = vld [vmem:[#allocation2 + $0x9d0] sm:$0xff] }
0x1436   : > { %5325 = vmatprep.subr.bf16.mxu1 %v5324_v38  ;;  %v2562_v38 = vld [vmem:[#allocation2 + $0x9d8] sm:$0xff] }
0x1437   : > { %v5286_v44 = vpack.c.bf16 %v2562_v38, %v2561_v53  ;;  %v2624_v53 = vld [vmem:[#allocation2 + $0xbc8] sm:$0xff]  ;;  %v2641_v38 = vld [vmem:[#allocation2 + $0xc50] sm:$0xff] }
0x1439   : > { %5327 = vmatpush3.bf16.msra.mxu1 %v5326_v46  ;;  %v2564_v46 = vld [vmem:[#allocation2 + $0x9e8] sm:$0xff] }
0x143a   : > { %5329 = vmatprep.subr.bf16.mxu1 %v5328_v48  ;;  %v2581_v48 = vld [vmem:[#allocation2 + $0xa70] sm:$0xff] }
0x143b   : > { %v5292_v56 = vpack.c.bf16 %v2582_v49, %v2581_v48  ;;  %v2627_v49 = vld [vmem:[#allocation2 + $0xbe0] sm:$0xff] }
0x143d   : > { %5331 = vmatpush3.bf16.msra.mxu1 %v5330_v59  ;;  %v2566_v59 = vld [vmem:[#allocation2 + $0x9f8] sm:$0xff] }
0x143e   : > { %5333 = vmatprep.subr.bf16.mxu1 %v5332_v60  ;;  %v2583_v60 = vld [vmem:[#allocation2 + $0xa80] sm:$0xff]  ;;  %v5294_v3 = vpack.c.bf16 %v2566_v59, %v2565_v57  ;;  %v2646_v57 = vld [vmem:[#allocation2 + $0xc78] sm:$0xff] }
0x1441   : > { %5335 = vmatpush3.bf16.msra.mxu1 %v5334_v5  ;;  %v5296_v5 = vpack.c.bf16 %v2584_v0, %v2583_v60  ;;  %v2630_v60 = vld [vmem:[#allocation2 + $0xbf8] sm:$0xff]  ;;  %v2647_v0 = vld [vmem:[#allocation2 + $0xc80] sm:$0xff] }
0x1444   : > { %2957 = vmatmul.mubr.f32.vlgmr.msra.gmra.mrb[34].mxu1 %v6132_v47  ;;  %v2555_v47 = vld [vmem:[#allocation2 + $0x9a0] sm:$0xff] }
0x1445   : > { %2961 = vmatprep.mubr.f32.mxu1 %v6135_v4  ;;  %v5274_v30 = vpack.c.bf16 %v2556_v26, %v2555_v47 }
0x1448   : > { %2962 = vmatmul.mubr.f32.gmra.mrb[36].mxu1 %v6130_v43  ;;  %v2574_v43 = vld [vmem:[#allocation2 + $0xa38] sm:$0xff] }
0x1449   : > { %3202 = vmatprep.mubr.f32.mxu1 %v5734_v39  ;;  %v5276_v54 = vpack.c.bf16 %v2574_v43, %v2573_v27  ;;  %v2619_v43 = vld [vmem:[#allocation2 + $0xba0] sm:$0xff] }
0x14d7   : > { %v4763_v20 = vpop.f32.mrb[28].mxu1 }
0x14d8   : > { %v2518_v21 = vadd.f32 %v4763_v20, %v3988_v18  ;;  %v2512_v23 = vpop.f32.mrb[29].mxu1  ;;  %v2570_v20 = vld [vmem:[#allocation2 + $0xa18] sm:$0xff] }
0x14d9   : > { %v2513_v4 = vadd.f32 %v3988_v18, %v2512_v23  ;;  %v2569_v18 = vld [vmem:[#allocation2 + $0xa10] sm:$0xff]  ;;  %v2636_v23 = vld [vmem:[#allocation2 + $0xc28] sm:$0xff] }
0x14da   : > { %v2522_v52 = vmax.f32 %v2518_v21, 0.0  ;;  %v2635_v21 = vld [vmem:[#allocation2 + $0xc20] sm:$0xff]  ;;  %v5302_v26 = vpack.c.bf16 %v2570_v20, %v2569_v18  ;;  %v2633_v20 = vld [vmem:[#allocation2 + $0xc10] sm:$0xff] }
0x14db   : > { %v2521_v29 = vmax.f32 %v2513_v4, 0.0  ;;  %v5336_v27 = vpack.c.bf16 %v2636_v23, %v2635_v21  ;;  %v2634_v21 = vld [vmem:[#allocation2 + $0xc18] sm:$0xff] }
0x14dd   : > { %4796 = vmatprep.mubr.f32.mxu0 %v2521_v29  ;;  %v2620_v29 = vld [vmem:[#allocation2 + $0xba8] sm:$0xff] }
0x14de   : > { %4797 = vmatmul.mubr.f32.vlgmr.msra.gmra.mrb[46].mxu0 %v2522_v52  ;;  %v2637_v52 = vld [vmem:[#allocation2 + $0xc30] sm:$0xff]  ;;  %v5338_v1 = vpack.c.bf16 %v2620_v29, %v2619_v43 }
0x14df   : > { %5275 = vmatpush3.bf16.msra.mxu0 %v5274_v30  ;;  %2881 = vmatprep.mubr.f32.mxu0 %v6125_v14  ;;  %v2563_v14 = vld [vmem:[#allocation2 + $0x9e0] sm:$0xff] }
0x14e0   : > { %5277 = vmatprep.subr.bf16.mxu0 %v5276_v54  ;;  %v5290_v51 = vpack.c.bf16 %v2564_v46, %v2563_v14  ;;  %v2638_v54 = vld [vmem:[#allocation2 + $0xc38] sm:$0xff]  ;;  %v2643_v14 = vld [vmem:[#allocation2 + $0xc60] sm:$0xff] }
0x14e1   : > { %v5340_v55 = vpack.c.bf16 %v2638_v54, %v2637_v52  ;;  %v3052_v52 = vld [vmem:[#allocation4 + $0x228] sm:$0xff] }
0x14e2   : > { %v3056_v54 = vld [vmem:[#allocation4 + $0x248] sm:$0xff] }
0x14e3   : > { %5279 = vmatpush3.bf16.msra.mxu0 %v5278_v10  ;;  %v2621_v10 = vld [vmem:[#allocation2 + $0xbb0] sm:$0xff] }
0x14e4   : > { %5281 = vmatprep.subr.bf16.mxu0 %v5280_v63  ;;  %v2622_v63 = vld [vmem:[#allocation2 + $0xbb8] sm:$0xff] }
0x14e5   : > { %v5342_v36 = vpack.c.bf16 %v2622_v63, %v2621_v10  ;;  %v3055_v10 = vld [vmem:[#allocation4 + $0x240] sm:$0xff] }
0x14e7   : > { %5283 = vmatpush3.bf16.msra.mxu0 %v5282_v58  ;;  %v5344_v58 = vpack.c.bf16 %v2640_v33, %v2639_v24  ;;  %v3053_v33 = vld [vmem:[#allocation4 + $0x230] sm:$0xff] }
0x14e8   : > { %5285 = vmatprep.subr.bf16.mxu0 %v5284_v37  ;;  %v2623_v37 = vld [vmem:[#allocation2 + $0xbc0] sm:$0xff] }
0x14e9   : > { %v5346_v40 = vpack.c.bf16 %v2624_v53, %v2623_v37  ;;  %v3064_v37 = vld [vmem:[#allocation4 + $0x288] sm:$0xff]  ;;  %v3066_v53 = vld [vmem:[#allocation4 + $0x298] sm:$0xff] }
0x14eb   : > { %5287 = vmatpush3.bf16.msra.mxu0 %v5286_v44  ;;  %v5348_v44 = vpack.c.bf16 %v2642_v8, %v2641_v38  ;;  %v3059_v8 = vld [vmem:[#allocation4 + $0x260] sm:$0xff] }
0x14ec   : > { %5289 = vmatprep.subr.bf16.mxu0 %v5288_v45  ;;  %v2625_v45 = vld [vmem:[#allocation2 + $0xbd0] sm:$0xff] }
0x14ef   : > { %5291 = vmatpush3.bf16.msra.mxu0 %v5290_v51  ;;  %v2628_v51 = vld [vmem:[#allocation2 + $0xbe8] sm:$0xff] }
0x14f0   : > { %5293 = vmatprep.subr.bf16.mxu0 %v5292_v56  ;;  %v2645_v56 = vld [vmem:[#allocation2 + $0xc70] sm:$0xff] }
0x14f1   : > { %v5356_v59 = vpack.c.bf16 %v2646_v57, %v2645_v56  ;;  %v3067_v56 = vld [vmem:[#allocation4 + $0x2a0] sm:$0xff] }
0x14f3   : > { %5295 = vmatpush3.bf16.msra.mxu0 %v5294_v3  ;;  %v2648_v3 = vld [vmem:[#allocation2 + $0xc88] sm:$0xff] }
0x14f4   : > { %5297 = vmatprep.subr.bf16.mxu0 %v5296_v5  ;;  %v5360_v6 = vpack.c.bf16 %v2648_v3, %v2647_v0  ;;  %v3076_v0 = vld [vmem:[#allocation4 + $0x2e8] sm:$0xff] }
0x14f5   : > { %v3080_v3 = vld [vmem:[#allocation4 + $0x308] sm:$0xff] }
0x14f7   : > { %v4393_v47 = vpop.f32.mrb[30].mxu1  ;;  %5299 = vmatpush3.bf16.msra.mxu0 %v5298_v15  ;;  %v2650_v15 = vld [vmem:[#allocation2 + $0xc98] sm:$0xff] }
0x14f8   : > { %v4394_v4 = vpop.f32.mrb[31].mxu1  ;;  %5301 = vmatprep.subr.bf16.mxu0 %v5300_v17  ;;  %v5362_v17 = vpack.c.bf16 %v2632_v9, %v2631_v7  ;;  %v5364_v18 = vpack.c.bf16 %v2650_v15, %v2649_v12  ;;  %v5380_v7 = vpack.c.bf16 %v3080_v3, %v3076_v0  ;;  %v3082_v9 = vld [vmem:[#allocation4 + $0x318] sm:$0xff]  ;;  %v3075_v12 = vld [vmem:[#allocation4 + $0x2e0] sm:$0xff] }
0x14f9   : > { %v6191_v30 = vadd.f32 %v4394_v4, %v4393_v47  ;;  %v5366_v47 = vpack.c.bf16 %v2634_v21, %v2633_v20  ;;  %v3079_v15 = vld [vmem:[#allocation4 + $0x300] sm:$0xff]  ;;  %v3081_v20 = vld [vmem:[#allocation4 + $0x310] sm:$0xff]  ;;  %v3084_v21 = vld [vmem:[#allocation4 + $0x328] sm:$0xff] }
0x14fa   : > { %v3114_v3 = vld [vmem:[#allocation4 + $0x418] sm:$0xff] }
0x14fb   : > { %v4396_v61 = vpop.f32.mrb[32].mxu1  ;;  %5303 = vmatpush3.bf16.msra.mxu0 %v5302_v26 }
0x14fc   : > { %v4397_v62 = vpop.f32.mrb[33].mxu1  ;;  %5337 = vmatprep.subr.bf16.mxu0 %v5336_v27 }
0x14fd   : > { %v6193_v25 = vadd.f32 %v4397_v62, %v4396_v61  ;;  %v3054_v61 = vld [vmem:[#allocation4 + $0x238] sm:$0xff] }
0x14fe   : > { %2882 = vmatmul.mubr.f32.vlgmr.msra.gmra.mrb[48].mxu0 %v6120_v19  ;;  %v2626_v19 = vld [vmem:[#allocation2 + $0xbd8] sm:$0xff]  ;;  %v3058_v62 = vld [vmem:[#allocation4 + $0x258] sm:$0xff] }
0x14ff   : > { %2886 = vmatprep.mubr.f32.mxu0 %v6123_v11  ;;  %5339 = vmatpush3.bf16.msra.mxu0 %v5338_v1  ;;  %v2644_v11 = vld [vmem:[#allocation2 + $0xc68] sm:$0xff]  ;;  %v5350_v46 = vpack.c.bf16 %v2626_v19, %v2625_v45  ;;  %v5368_v1 = vpack.c.bf16 %v3056_v54, %v3052_v52  ;;  %v5400_v63 = vpack.c.bf16 %v3058_v62, %v3054_v61  ;;  %v3083_v54 = vld [vmem:[#allocation4 + $0x320] sm:$0xff] }
0x1500   : > { %5341 = vmatprep.subr.bf16.mxu0 %v5340_v55  ;;  %v5352_v48 = vpack.c.bf16 %v2644_v11, %v2643_v14  ;;  %v3051_v55 = vld [vmem:[#allocation4 + $0x220] sm:$0xff]  ;;  %v3065_v19 = vld [vmem:[#allocation4 + $0x290] sm:$0xff]  ;;  %v3068_v14 = vld [vmem:[#allocation4 + $0x2a8] sm:$0xff] }
0x1501   : > { %v5370_v24 = vpack.c.bf16 %v3055_v10, %v3051_v55  ;;  %5369 = vmatprep.subr.bf16.mxu1 %v5368_v1  ;;  %v3072_v11 = vld [vmem:[#allocation4 + $0x2c8] sm:$0xff]  ;;  %v3087_v61 = vld [vmem:[#allocation4 + $0x340] sm:$0xff]  ;;  %v3085_v1 = vld [vmem:[#allocation4 + $0x330] sm:$0xff] }
0x1502   : > { %2887 = vmatmul.mubr.f32.gmra.mrb[50].mxu0 %v6118_v16  ;;  %v5354_v16 = vpack.c.bf16 %v2628_v51, %v2627_v49  ;;  %v3070_v49 = vld [vmem:[#allocation4 + $0x2b8] sm:$0xff]  ;;  %v3089_v55 = vld [vmem:[#allocation4 + $0x350] sm:$0xff]  ;;  %v3092_v10 = vld [vmem:[#allocation4 + $0x368] sm:$0xff] }
0x1503   : > { %5343 = vmatpush3.bf16.msra.mxu0 %v5342_v36  ;;  %3031 = vmatprep.mubr.f32.mxu0 %v6149_v13  ;;  %v2629_v13 = vld [vmem:[#allocation2 + $0xbf0] sm:$0xff]  ;;  %v3057_v36 = vld [vmem:[#allocation4 + $0x250] sm:$0xff] }
0x1504   : > { %5345 = vmatprep.subr.bf16.mxu0 %v5344_v58  ;;  %v5358_v5 = vpack.c.bf16 %v2630_v60, %v2629_v13  ;;  %v3060_v58 = vld [vmem:[#allocation4 + $0x268] sm:$0xff]  ;;  %5371 = vmatpush1.bf16.msra.mxu1 %v5370_v24  ;;  %v3074_v51 = vld [vmem:[#allocation4 + $0x2d8] sm:$0xff]  ;;  %v3073_v13 = vld [vmem:[#allocation4 + $0x2d0] sm:$0xff] }
0x1505   : > { %v5408_v57 = vpack.c.bf16 %v3074_v51, %v3070_v49  ;;  %v3094_v24 = vld [vmem:[#allocation4 + $0x378] sm:$0xff] }
0x1507   : > { %5347 = vmatpush3.bf16.msra.mxu0 %v5346_v40  ;;  %v3063_v40 = vld [vmem:[#allocation4 + $0x280] sm:$0xff] }
0x1508   : > { %5349 = vmatprep.subr.bf16.mxu0 %v5348_v44  ;;  %v3061_v44 = vld [vmem:[#allocation4 + $0x270] sm:$0xff]  ;;  %v5374_v45 = vpack.c.bf16 %v3063_v40, %v3059_v8 }
0x150b   : > { %5351 = vmatpush3.bf16.msra.mxu0 %v5350_v46  ;;  %v5406_v46 = vpack.c.bf16 %v3065_v19, %v3061_v44  ;;  %v3100_v44 = vld [vmem:[#allocation4 + $0x3a8] sm:$0xff]  ;;  %v3102_v19 = vld [vmem:[#allocation4 + $0x3b8] sm:$0xff] }
0x150c   : > { %5353 = vmatprep.subr.bf16.mxu0 %v5352_v48  ;;  %v5376_v48 = vpack.c.bf16 %v3072_v11, %v3068_v14  ;;  %v3106_v11 = vld [vmem:[#allocation4 + $0x3d8] sm:$0xff] }
0x150d   : > { %v5424_v49 = vpack.c.bf16 %v3106_v11, %v3102_v19  ;;  %v3306_v11 = vld [vmem:[#allocation4 + $0x4a0] sm:$0xff] }
0x150f   : > { %5355 = vmatpush3.bf16.msra.mxu0 %v5354_v16  ;;  %v3071_v16 = vld [vmem:[#allocation4 + $0x2c0] sm:$0xff] }
0x1510   : > { %5357 = vmatprep.subr.bf16.mxu0 %v5356_v59  ;;  %v3069_v59 = vld [vmem:[#allocation4 + $0x2b0] sm:$0xff]  ;;  %v5378_v60 = vpack.c.bf16 %v3071_v16, %v3067_v56 }
0x1511   : > { %v3101_v56 = vld [vmem:[#allocation4 + $0x3b0] sm:$0xff] }
0x1513   : > { %5359 = vmatpush3.bf16.msra.mxu0 %v5358_v5  ;;  %v3078_v5 = vld [vmem:[#allocation4 + $0x2f8] sm:$0xff] }
0x1514   : > { %5361 = vmatprep.subr.bf16.mxu0 %v5360_v6  ;;  %v5410_v6 = vpack.c.bf16 %v3073_v13, %v3069_v59  ;;  %v3108_v59 = vld [vmem:[#allocation4 + $0x3e8] sm:$0xff] }
0x1515   : > { %v3112_v13 = vld [vmem:[#allocation4 + $0x408] sm:$0xff] }
0x1516   : > { %v5396_v0 = vpack.c.bf16 %v3112_v13, %v3108_v59  ;;  %v3313_v59 = vld [vmem:[#allocation4 + $0x508] sm:$0xff] }
0x1517   : > { %v4469_v23 = vpop.f32.mrb[34].mxu1  ;;  %5363 = vmatpush3.bf16.msra.mxu0 %v5362_v17  ;;  %v5412_v17 = vpack.c.bf16 %v3082_v9, %v3078_v5  ;;  %v3107_v5 = vld [vmem:[#allocation4 + $0x3e0] sm:$0xff]  ;;  %v3109_v9 = vld [vmem:[#allocation4 + $0x3f0] sm:$0xff]  ;;  %v3315_v13 = vld [vmem:[#allocation4 + $0x528] sm:$0xff] }
0x1518   : > { %v4470_v26 = vpop.f32.mrb[35].mxu1  ;;  %5365 = vmatprep.subr.bf16.mxu0 %v5364_v18  ;;  %v3077_v18 = vld [vmem:[#allocation4 + $0x2f0] sm:$0xff] }
0x1519   : > { %v6199_v4 = vadd.f32 %v4470_v26, %v4469_v23  ;;  %v3088_v23 = vld [vmem:[#allocation4 + $0x348] sm:$0xff]  ;;  %v3090_v26 = vld [vmem:[#allocation4 + $0x358] sm:$0xff] }
0x151a   : > { %v5384_v52 = vpack.c.bf16 %v3088_v23, %v3084_v21 }
0x151b   : > { %v4472_v27 = vpop.f32.mrb[36].mxu1  ;;  %5367 = vmatpush3.bf16.msra.mxu0 %v5366_v47  ;;  %v3086_v47 = vld [vmem:[#allocation4 + $0x338] sm:$0xff] }
0x151c   : > { %v4473_v43 = vpop.f32.mrb[37].mxu1  ;;  %5401 = vmatprep.subr.bf16.mxu0 %v5400_v63  ;;  %v5416_v62 = vpack.c.bf16 %v3090_v26, %v3086_v47  ;;  %v3096_v63 = vld [vmem:[#allocation4 + $0x388] sm:$0xff] }
0x151d   : > { %v6201_v29 = vadd.f32 %v4473_v43, %v4472_v27  ;;  %v5382_v27 = vpack.c.bf16 %v3079_v15, %v3075_v12  ;;  %v5414_v43 = vpack.c.bf16 %v3081_v20, %v3077_v18  ;;  %v3113_v12 = vld [vmem:[#allocation4 + $0x410] sm:$0xff]  ;;  %v3301_v18 = vld [vmem:[#allocation4 + $0x448] sm:$0xff] }
0x151e   : > { %3032 = vmatmul.mubr.f32.vlgmr.msra.gmra.mrb[52].mxu0 %v6142_v28  ;;  %v5402_v28 = vpack.c.bf16 %v3057_v36, %v3053_v33  ;;  %v3098_v33 = vld [vmem:[#allocation4 + $0x398] sm:$0xff]  ;;  %v5386_v36 = vpack.c.bf16 %v3087_v61, %v3083_v54  ;;  %v3303_v20 = vld [vmem:[#allocation4 + $0x468] sm:$0xff] }
0x151f   : > { %3036 = vmatprep.mubr.f32.mxu0 %v6147_v2  ;;  %v3062_v2 = vld [vmem:[#allocation4 + $0x278] sm:$0xff]  ;;  %v5432_v21 = vpack.c.bf16 %v3303_v20, %v3301_v18  ;;  %v3323_v18 = vld [vmem:[#allocation4 + $0x5a8] sm:$0xff] }
0x1520   : > { %v5404_v38 = vpack.c.bf16 %v3066_v53, %v3062_v2  ;;  %5403 = vmatpush1.bf16.msra.mxu0 %v5402_v28  ;;  %v5388_v28 = vpack.c.bf16 %v3096_v63, %v3092_v10  ;;  %v3095_v2 = vld [vmem:[#allocation4 + $0x380] sm:$0xff]  ;;  %v5420_v53 = vpack.c.bf16 %v3098_v33, %v3094_v24 }
0x1522   : > { %3037 = vmatmul.mubr.f32.gmra.mrb[54].mxu0 %v6140_v22  ;;  %v5372_v22 = vpack.c.bf16 %v3064_v37, %v3060_v58  ;;  %5405 = vmatprep.subr.bf16.mxu0 %v5404_v38  ;;  %v5418_v58 = vpack.c.bf16 %v3089_v55, %v3085_v1  ;;  %v3091_v37 = vld [vmem:[#allocation4 + $0x360] sm:$0xff]  ;;  %v3097_v38 = vld [vmem:[#allocation4 + $0x390] sm:$0xff] }
0x1523   : > { %3279 = vmatprep.mubr.f32.mxu0 %v5734_v39  ;;  %v5390_v8 = vpack.c.bf16 %v3095_v2, %v3091_v37 }
0x1524   : > { %5373 = vmatprep.subr.bf16.mxu1 %v5372_v22  ;;  %5407 = vmatpush1.bf16.msra.mxu0 %v5406_v46  ;;  %v3093_v22 = vld [vmem:[#allocation4 + $0x370] sm:$0xff]  ;;  %v3099_v46 = vld [vmem:[#allocation4 + $0x3a0] sm:$0xff] }
0x1525   : > { %5375 = vmatpush1.bf16.msra.mxu1 %v5374_v45  ;;  %5409 = vmatprep.subr.bf16.mxu0 %v5408_v57  ;;  %v5422_v40 = vpack.c.bf16 %v3097_v38, %v3093_v22  ;;  %v3104_v45 = vld [vmem:[#allocation4 + $0x3c8] sm:$0xff]  ;;  %v3105_v57 = vld [vmem:[#allocation4 + $0x3d0] sm:$0xff] }
0x1526   : > { %5377 = vmatprep.subr.bf16.mxu1 %v5376_v48  ;;  %v5392_v14 = vpack.c.bf16 %v3104_v45, %v3100_v44  ;;  %v3103_v48 = vld [vmem:[#allocation4 + $0x3c0] sm:$0xff]  ;;  %v5426_v16 = vpack.c.bf16 %v3105_v57, %v3101_v56 }
0x1527   : > { %v5394_v51 = vpack.c.bf16 %v3103_v48, %v3099_v46  ;;  %v3309_v46 = vld [vmem:[#allocation4 + $0x4c8] sm:$0xff]  ;;  %v3308_v57 = vld [vmem:[#allocation4 + $0x4c0] sm:$0xff] }
0x1528   : > { %5411 = vmatpush1.bf16.msra.mxu0 %v5410_v6  ;;  %v3311_v48 = vld [vmem:[#allocation4 + $0x4e8] sm:$0xff] }
0x1529   : > { %5379 = vmatpush1.bf16.msra.mxu1 %v5378_v60  ;;  %5413 = vmatprep.subr.bf16.mxu0 %v5412_v17  ;;  %v3110_v60 = vld [vmem:[#allocation4 + $0x3f8] sm:$0xff]  ;;  %v5430_v17 = vpack.c.bf16 %v3113_v12, %v3109_v9  ;;  %v5440_v56 = vpack.c.bf16 %v3311_v48, %v3309_v46  ;;  %v3316_v12 = vld [vmem:[#allocation4 + $0x540] sm:$0xff] }
0x152a   : > { %5381 = vmatprep.subr.bf16.mxu1 %v5380_v7  ;;  %v5428_v6 = vpack.c.bf16 %v3114_v3, %v3110_v60  ;;  %v3111_v7 = vld [vmem:[#allocation4 + $0x400] sm:$0xff] }
0x152b   : > { %v5398_v15 = vpack.c.bf16 %v3111_v7, %v3107_v5  ;;  %v3312_v3 = vld [vmem:[#allocation4 + $0x500] sm:$0xff]  ;;  %v3319_v7 = vld [vmem:[#allocation4 + $0x568] sm:$0xff] }
0x152c   : > { %5415 = vmatpush1.bf16.msra.mxu0 %v5414_v43  ;;  %v3314_v5 = vld [vmem:[#allocation4 + $0x520] sm:$0xff] }
0x152d   : > { %5383 = vmatpush1.bf16.msra.mxu1 %v5382_v27  ;;  %5417 = vmatprep.subr.bf16.mxu0 %v5416_v62 }
0x152e   : > { %5385 = vmatprep.subr.bf16.mxu1 %v5384_v52 }
0x1530   : > { %5419 = vmatpush1.bf16.msra.mxu0 %v5418_v58 }
0x1531   : > { %5387 = vmatpush1.bf16.msra.mxu1 %v5386_v36  ;;  %5421 = vmatprep.subr.bf16.mxu0 %v5420_v53  ;;  %v3302_v53 = vld [vmem:[#allocation4 + $0x460] sm:$0xff] }
0x1532   : > { %5389 = vmatprep.subr.bf16.mxu1 %v5388_v28  ;;  %v3991_v28 = vld [vmem:[#allocation2 + $0xd20] ss:$0 sm:$0xff] }
0x1534   : > { %5423 = vmatpush1.bf16.msra.mxu0 %v5422_v40  ;;  %v3307_v40 = vld [vmem:[#allocation4 + $0x4a8] sm:$0xff] }
0x1535   : > { %5391 = vmatpush1.bf16.msra.mxu1 %v5390_v8  ;;  %5425 = vmatprep.subr.bf16.mxu0 %v5424_v49  ;;  %v3305_v8 = vld [vmem:[#allocation4 + $0x488] sm:$0xff] }
0x1536   : > { %5393 = vmatprep.subr.bf16.mxu1 %v5392_v14  ;;  %v3304_v14 = vld [vmem:[#allocation4 + $0x480] sm:$0xff] }
0x1538   : > { %5427 = vmatpush1.bf16.msra.mxu0 %v5426_v16  ;;  %v3310_v16 = vld [vmem:[#allocation4 + $0x4e0] sm:$0xff] }
0x1539   : > { %5395 = vmatpush1.bf16.msra.mxu1 %v5394_v51  ;;  %5429 = vmatprep.subr.bf16.mxu0 %v5428_v6  ;;  %v5438_v51 = vpack.c.bf16 %v3306_v11, %v3304_v14  ;;  %v5442_v60 = vpack.c.bf16 %v3310_v16, %v3308_v57  ;;  %v3317_v6 = vld [vmem:[#allocation4 + $0x548] sm:$0xff]  ;;  %v3342_v14 = vld [vmem:[#allocation4 + $0x6e0] sm:$0xff] }
0x153a   : > { %5397 = vmatprep.subr.bf16.mxu1 %v5396_v0  ;;  %v5444_v0 = vpack.c.bf16 %v3315_v13, %v3313_v59  ;;  %v5448_v9 = vpack.c.bf16 %v3319_v7, %v3317_v6  ;;  %v3345_v11 = vld [vmem:[#allocation4 + $0x708] sm:$0xff]  ;;  %v3348_v13 = vld [vmem:[#allocation4 + $0x740] sm:$0xff] }
0x153b   : > { %v3351_v57 = vld [vmem:[#allocation4 + $0x768] sm:$0xff]  ;;  %v3352_v7 = vld [vmem:[#allocation4 + $0x780] sm:$0xff] }
0x153c   : > { %5431 = vmatpush1.bf16.msra.mxu0 %v5430_v17  ;;  %v3321_v17 = vld [vmem:[#allocation4 + $0x588] sm:$0xff] }
0x153d   : > { %5399 = vmatpush1.bf16.msra.mxu1 %v5398_v15  ;;  %v3318_v15 = vld [vmem:[#allocation4 + $0x560] sm:$0xff] }
0x153e   : > { %5433 = vmatprep.subr.bf16.mxu1 %v5432_v21  ;;  %v5450_v20 = vpack.c.bf16 %v3318_v15, %v3316_v12  ;;  %v5452_v21 = vpack.c.bf16 %v3323_v18, %v3321_v17  ;;  %v3359_v12 = vld [vmem:[#allocation4 + $0x7e8] sm:$0xff]  ;;  %v3356_v18 = vld [vmem:[#allocation4 + $0x7c0] sm:$0xff] }
0x15b1   : > { %v4798_v23 = vpop.f32.mrb[46].mxu0 }
0x15b2   : > { %v2814_v47 = vadd.f32 %v4798_v23, %v6193_v25  ;;  %v2733_v26 = vpop.f32.mrb[47].mxu0  ;;  %v3320_v23 = vld [vmem:[#allocation4 + $0x580] sm:$0xff] }
0x15b3   : > { %v2809_v27 = vadd.f32 %v6191_v30, %v2733_v26  ;;  %v3300_v30 = vld [vmem:[#allocation4 + $0x440] sm:$0xff]  ;;  %v3325_v26 = vld [vmem:[#allocation4 + $0x5c8] sm:$0xff] }
0x15b4   : > { %v5434_v19 = vpack.c.bf16 %v3302_v53, %v3300_v30  ;;  %v3339_v30 = vld [vmem:[#allocation4 + $0x6a8] sm:$0xff] }
0x15d1   : > { %v4431_v43 = vpop.f32.mrb[48].mxu0 }
0x15d2   : > { %v4432_v52 = vpop.f32.mrb[49].mxu0 }
0x15d3   : > { %v4433_v54 = vadd.f32 %v4432_v52, %v4431_v43 }
0x15d5   : > { %v2884_v61 = vadd.f32 %v4433_v54, %v2809_v27  ;;  %v4434_v1 = vpop.f32.mrb[50].mxu0  ;;  %v3327_v27 = vld [vmem:[#allocation4 + $0x5e8] sm:$0xff]  ;;  %v3324_v54 = vld [vmem:[#allocation4 + $0x5c0] sm:$0xff] }
0x15d6   : > { %v4435_v62 = vpop.f32.mrb[51].mxu0  ;;  %v5456_v52 = vpack.c.bf16 %v3327_v27, %v3325_v26  ;;  %v3360_v27 = vld [vmem:[#allocation4 + $0x800] sm:$0xff] }
0x15d7   : > { %v4436_v55 = vadd.f32 %v4435_v62, %v4434_v1  ;;  %v2959_v10 = vadd.f32 %v6199_v4, %v2884_v61  ;;  %v5436_v4 = vpack.c.bf16 %v3307_v40, %v3305_v8  ;;  %v3326_v61 = vld [vmem:[#allocation4 + $0x5e0] sm:$0xff]  ;;  %v3329_v1 = vld [vmem:[#allocation4 + $0x608] sm:$0xff] }
0x15d8   : > { %v3331_v62 = vld [vmem:[#allocation4 + $0x628] sm:$0xff]  ;;  %v3338_v8 = vld [vmem:[#allocation4 + $0x6a0] sm:$0xff] }
0x15d9   : > { %v2889_v63 = vadd.f32 %v4436_v55, %v2814_v47  ;;  %v3322_v47 = vld [vmem:[#allocation4 + $0x5a0] sm:$0xff]  ;;  %v5458_v55 = vpack.c.bf16 %v3326_v61, %v3324_v54  ;;  %v3341_v40 = vld [vmem:[#allocation4 + $0x6c8] sm:$0xff] }
0x15da   : > { %v5454_v43 = vpack.c.bf16 %v3322_v47, %v3320_v23  ;;  %v3361_v23 = vld [vmem:[#allocation4 + $0x808] sm:$0xff] }
0x15db   : > { %v2964_v24 = vadd.f32 %v6201_v29, %v2889_v63  ;;  %v3328_v63 = vld [vmem:[#allocation4 + $0x600] sm:$0xff]  ;;  %v3363_v47 = vld [vmem:[#allocation4 + $0x828] sm:$0xff] }
0x15dc   : > { %v5492_v26 = vpack.c.bf16 %v3363_v47, %v3361_v23  ;;  %v3365_v54 = vld [vmem:[#allocation4 + $0x848] sm:$0xff]  ;;  %v3366_v23 = vld [vmem:[#allocation4 + $0x860] sm:$0xff] }
0x15dd   : > { %v3367_v61 = vld [vmem:[#allocation4 + $0x868] sm:$0xff] }
0x15f1   : > { %v4507_v33 = vpop.f32.mrb[52].mxu0 }
0x15f2   : > { %v4508_v36 = vpop.f32.mrb[53].mxu0 }
0x15f3   : > { %v4509_v58 = vadd.f32 %v4508_v36, %v4507_v33  ;;  %v3333_v33 = vld [vmem:[#allocation4 + $0x648] sm:$0xff] }
0x15f4   : > { %v3335_v36 = vld [vmem:[#allocation4 + $0x668] sm:$0xff] }
0x15f5   : > { %v3034_v25 = vadd.f32 %v4509_v58, %v2959_v10  ;;  %v4510_v37 = vpop.f32.mrb[54].mxu0  ;;  %v5460_v10 = vpack.c.bf16 %v3331_v62, %v3329_v1  ;;  %v5496_v1 = vpack.c.bf16 %v3367_v61, %v3365_v54  ;;  %v3615_v62 = vld [vmem:[#allocation2 + $0xda8] sm:$0xff] }
0x15f6   : > { %v4511_v2 = vpop.f32.mrb[55].mxu0 }
0x15f7   : > { %v3047_v22 = vadd.f32 %v3991_v28, %v3034_v25  ;;  %v4512_v38 = vadd.f32 %v4511_v2, %v4510_v37  ;;  %v3332_v25 = vld [vmem:[#allocation4 + $0x640] sm:$0xff]  ;;  %v3337_v2 = vld [vmem:[#allocation4 + $0x688] sm:$0xff] }
0x15f8   : > { %v3334_v37 = vld [vmem:[#allocation4 + $0x660] sm:$0xff] }
0x15f9   : > { %v3049_v44 = vmax.f32 %v3047_v22, 0.0  ;;  %v3039_v45 = vadd.f32 %v4512_v38, %v2964_v24  ;;  %v3330_v24 = vld [vmem:[#allocation4 + $0x620] sm:$0xff]  ;;  %v5466_v53 = vpack.c.bf16 %v3334_v37, %v3332_v25  ;;  %v5468_v22 = vpack.c.bf16 %v3339_v30, %v3337_v2  ;;  %v3602_v37 = vld [vmem:[#allocation2 + $0xd40] sm:$0xff]  ;;  %v3619_v2 = vld [vmem:[#allocation2 + $0xdc8] sm:$0xff] }
0x15fa   : > { %v5462_v58 = vpack.c.bf16 %v3330_v24, %v3328_v63  ;;  %v3336_v38 = vld [vmem:[#allocation4 + $0x680] sm:$0xff]  ;;  %v3600_v24 = vld [vmem:[#allocation2 + $0xd30] sm:$0xff] }
0x15fb   : > { %3203 = vmatmul.mubr.f32.vlgmr.msra.gmra.mrb[38].mxu1 %v3049_v44  ;;  %3280 = vmatmul.mubr.f32.vlgmr.msra.gmra.mrb[56].mxu0 %v3049_v44  ;;  %v3048_v29 = vadd.f32 %v3991_v28, %v3039_v45  ;;  %v5464_v28 = vpack.c.bf16 %v3335_v36, %v3333_v33  ;;  %v3343_v44 = vld [vmem:[#allocation4 + $0x6e8] sm:$0xff]  ;;  %v5470_v45 = vpack.c.bf16 %v3338_v8, %v3336_v38  ;;  %v3617_v33 = vld [vmem:[#allocation2 + $0xdb8] sm:$0xff]  ;;  %v3620_v30 = vld [vmem:[#allocation2 + $0xdd0] sm:$0xff] }
0x15fc   : > { %3208 = vmatprep.mubr.f32.mxu1 %v5734_v39  ;;  %3285 = vmatprep.mubr.f32.mxu0 %v5734_v39  ;;  %v5446_v39 = vpack.c.bf16 %v3314_v5, %v3312_v3  ;;  %v3355_v3 = vld [vmem:[#allocation4 + $0x7a8] sm:$0xff]  ;;  %v3601_v25 = vld [vmem:[#allocation2 + $0xd38] sm:$0xff]  ;;  %v3603_v38 = vld [vmem:[#allocation2 + $0xd48] sm:$0xff] }
0x15fd   : > { %v3050_v49 = vmax.f32 %v3048_v29, 0.0  ;;  %5435 = vmatpush1.bf16.msra.mxu1 %v5434_v19  ;;  %v5472_v19 = vpack.c.bf16 %v3343_v44, %v3341_v40  ;;  %v3347_v29 = vld [vmem:[#allocation4 + $0x728] sm:$0xff]  ;;  %v3604_v8 = vld [vmem:[#allocation2 + $0xd50] sm:$0xff]  ;;  %v3621_v40 = vld [vmem:[#allocation2 + $0xdd8] sm:$0xff] }
0x15fe   : > { %5437 = vmatprep.subr.bf16.mxu1 %v5436_v4  ;;  %v3340_v4 = vld [vmem:[#allocation4 + $0x6c0] sm:$0xff]  ;;  %v5476_v48 = vpack.c.bf16 %v3347_v29, %v3345_v11  ;;  %v3618_v36 = vld [vmem:[#allocation2 + $0xdc0] sm:$0xff]  ;;  %v3623_v11 = vld [vmem:[#allocation2 + $0xde8] sm:$0xff] }
0x15ff   : > { %3209 = vmatmul.mubr.f32.gmra.mrb[40].mxu1 %v3050_v49  ;;  %3286 = vmatmul.mubr.f32.gmra.mrb[58].mxu0 %v3050_v49  ;;  %v5474_v46 = vpack.c.bf16 %v3342_v14, %v3340_v4  ;;  %v3344_v49 = vld [vmem:[#allocation4 + $0x700] sm:$0xff]  ;;  %v3622_v44 = vld [vmem:[#allocation2 + $0xde0] sm:$0xff]  ;;  %v3624_v29 = vld [vmem:[#allocation2 + $0xdf0] sm:$0xff] }
0x1600   : > { %v3605_v4 = vld [vmem:[#allocation2 + $0xd58] sm:$0xff]  ;;  %v3606_v14 = vld [vmem:[#allocation2 + $0xd60] sm:$0xff] }
0x1601   : > { %5439 = vmatpush1.bf16.msra.mxu1 %v5438_v51  ;;  %v3346_v51 = vld [vmem:[#allocation4 + $0x720] sm:$0xff] }
0x1602   : > { %5441 = vmatprep.subr.bf16.mxu1 %v5440_v56  ;;  %v3349_v56 = vld [vmem:[#allocation4 + $0x748] sm:$0xff]  ;;  %v5478_v16 = vpack.c.bf16 %v3346_v51, %v3344_v49  ;;  %v3607_v49 = vld [vmem:[#allocation2 + $0xd68] sm:$0xff]  ;;  %v3608_v51 = vld [vmem:[#allocation2 + $0xd70] sm:$0xff] }
0x1603   : > { %v5480_v59 = vpack.c.bf16 %v3351_v57, %v3349_v56  ;;  %v3625_v56 = vld [vmem:[#allocation2 + $0xdf8] sm:$0xff]  ;;  %v3626_v57 = vld [vmem:[#allocation2 + $0xe00] sm:$0xff] }
0x1605   : > { %5443 = vmatpush1.bf16.msra.mxu1 %v5442_v60  ;;  %v3350_v60 = vld [vmem:[#allocation4 + $0x760] sm:$0xff] }
0x1606   : > { %5445 = vmatprep.subr.bf16.mxu1 %v5444_v0  ;;  %v3353_v0 = vld [vmem:[#allocation4 + $0x788] sm:$0xff]  ;;  %v5482_v5 = vpack.c.bf16 %v3350_v60, %v3348_v13  ;;  %v3609_v13 = vld [vmem:[#allocation2 + $0xd78] sm:$0xff] }
0x1607   : > { %v5484_v6 = vpack.c.bf16 %v3355_v3, %v3353_v0  ;;  %v3610_v60 = vld [vmem:[#allocation2 + $0xd80] sm:$0xff]  ;;  %v3627_v0 = vld [vmem:[#allocation2 + $0xe08] sm:$0xff]  ;;  %v3628_v3 = vld [vmem:[#allocation2 + $0xe10] sm:$0xff] }
0x1609   : > { %5447 = vmatpush1.bf16.msra.mxu1 %v5446_v39  ;;  %v3354_v39 = vld [vmem:[#allocation4 + $0x7a0] sm:$0xff] }
0x160a   : > { %5449 = vmatprep.subr.bf16.mxu1 %v5448_v9  ;;  %v3357_v9 = vld [vmem:[#allocation4 + $0x7c8] sm:$0xff]  ;;  %v5486_v15 = vpack.c.bf16 %v3354_v39, %v3352_v7 }
0x160b   : > { %v5488_v17 = vpack.c.bf16 %v3359_v12, %v3357_v9  ;;  %v6213_v7 = vld [vmem:[#allocation4 + $0x420] ss:$8 sm:$0xf] }
0x160c   : > { %v3121_v39 = vrot.slane %v6213_v7, %v6162_v32  ;;  %v3125_v9 = vrot.slane %v6213_v7, %v6166_v34 }
0x160d   : > { %5451 = vmatpush1.bf16.msra.mxu1 %v5450_v20  ;;  %v3358_v20 = vld [vmem:[#allocation4 + $0x7e0] sm:$0xff] }
0x160e   : > { %5453 = vmatprep.subr.bf16.mxu1 %v5452_v21  ;;  %v5490_v21 = vpack.c.bf16 %v3358_v20, %v3356_v18 }
0x1611   : > { %5455 = vmatpush1.bf16.msra.mxu1 %v5454_v43  ;;  %v3362_v43 = vld [vmem:[#allocation4 + $0x820] sm:$0xff] }
0x1612   : > { %5457 = vmatprep.subr.bf16.mxu1 %v5456_v52  ;;  %v5494_v52 = vpack.c.bf16 %v3362_v43, %v3360_v27  ;;  %v3369_v27 = vld [vmem:[#allocation4 + $0x888] sm:$0xff] }
0x1613   : > { %v3371_v43 = vld [vmem:[#allocation4 + $0x8a8] sm:$0xff] }
0x1615   : > { %5459 = vmatpush1.bf16.msra.mxu1 %v5458_v55  ;;  %v3616_v55 = vld [vmem:[#allocation2 + $0xdb0] sm:$0xff] }
0x1616   : > { %5461 = vmatprep.subr.bf16.mxu1 %v5460_v10  ;;  %v3599_v10 = vld [vmem:[#allocation2 + $0xd28] sm:$0xff]  ;;  %v5560_v63 = vpack.c.bf16 %v3616_v55, %v3615_v62 }
0x1618   : > { %5561 = vmatprep.subr.bf16.mxu0 %v5560_v63 }
0x1619   : > { %5463 = vmatpush1.bf16.msra.mxu1 %v5462_v58  ;;  %v5562_v58 = vpack.c.bf16 %v3600_v24, %v3599_v10  ;;  %v5500_v24 = vpack.c.bf16 %v3371_v43, %v3369_v27  ;;  %v3399_v27 = vld [vmem:[#allocation4 + $0xa68] sm:$0xff] }
0x161a   : > { %5465 = vmatprep.subr.bf16.mxu1 %v5464_v28  ;;  %v5564_v28 = vpack.c.bf16 %v3618_v36, %v3617_v33  ;;  %v3368_v33 = vld [vmem:[#allocation4 + $0x880] sm:$0xff] }
0x161b   : > { %5563 = vmatpush3.bf16.msra.mxu0 %v5562_v58  ;;  %v3370_v36 = vld [vmem:[#allocation4 + $0x8a0] sm:$0xff] }
0x161c   : > { %5565 = vmatprep.subr.bf16.mxu0 %v5564_v28 }
0x161d   : > { %5467 = vmatpush1.bf16.msra.mxu1 %v5466_v53  ;;  %v5566_v53 = vpack.c.bf16 %v3602_v37, %v3601_v25  ;;  %v3375_v25 = vld [vmem:[#allocation4 + $0x8e8] sm:$0xff] }
0x161e   : > { %5469 = vmatprep.subr.bf16.mxu1 %v5468_v22  ;;  %v5568_v22 = vpack.c.bf16 %v3620_v30, %v3619_v2  ;;  %v5502_v2 = vpack.c.bf16 %v3370_v36, %v3368_v33  ;;  %v3400_v33 = vld [vmem:[#allocation4 + $0xa80] sm:$0xff] }
0x161f   : > { %5567 = vmatpush3.bf16.msra.mxu0 %v5566_v53  ;;  %v3402_v36 = vld [vmem:[#allocation4 + $0xaa0] sm:$0xff] }
0x1620   : > { %5569 = vmatprep.subr.bf16.mxu0 %v5568_v22  ;;  %v3372_v22 = vld [vmem:[#allocation4 + $0x8c0] sm:$0xff] }
0x1621   : > { %5471 = vmatpush1.bf16.msra.mxu1 %v5470_v45  ;;  %v5570_v45 = vpack.c.bf16 %v3604_v8, %v3603_v38  ;;  %v3374_v38 = vld [vmem:[#allocation4 + $0x8e0] sm:$0xff] }
0x1622   : > { %5473 = vmatprep.subr.bf16.mxu1 %v5472_v19  ;;  %v5572_v19 = vpack.c.bf16 %v3622_v44, %v3621_v40  ;;  %v3377_v40 = vld [vmem:[#allocation4 + $0x908] sm:$0xff] }
0x1623   : > { %5571 = vmatpush3.bf16.msra.mxu0 %v5570_v45  ;;  %v3379_v44 = vld [vmem:[#allocation4 + $0x928] sm:$0xff]  ;;  %v5506_v45 = vpack.c.bf16 %v3374_v38, %v3372_v22 }
0x1624   : > { %5573 = vmatprep.subr.bf16.mxu0 %v5572_v19  ;;  %v5508_v19 = vpack.c.bf16 %v3379_v44, %v3377_v40  ;;  %v3410_v40 = vld [vmem:[#allocation4 + $0xb20] sm:$0xff]  ;;  %v3413_v44 = vld [vmem:[#allocation4 + $0xb48] sm:$0xff] }
0x1625   : > { %5475 = vmatpush1.bf16.msra.mxu1 %v5474_v46  ;;  %v5574_v46 = vpack.c.bf16 %v3606_v14, %v3605_v4  ;;  %v3376_v4 = vld [vmem:[#allocation4 + $0x900] sm:$0xff] }
0x1626   : > { %5477 = vmatprep.subr.bf16.mxu1 %v5476_v48  ;;  %v5576_v48 = vpack.c.bf16 %v3624_v29, %v3623_v11  ;;  %v3378_v14 = vld [vmem:[#allocation4 + $0x920] sm:$0xff]  ;;  %v3381_v11 = vld [vmem:[#allocation4 + $0x948] sm:$0xff] }
0x1627   : > { %5575 = vmatpush3.bf16.msra.mxu0 %v5574_v46  ;;  %v3383_v29 = vld [vmem:[#allocation4 + $0x968] sm:$0xff]  ;;  %v5510_v46 = vpack.c.bf16 %v3378_v14, %v3376_v4  ;;  %v3412_v14 = vld [vmem:[#allocation4 + $0xb40] sm:$0xff] }
0x1628   : > { %5577 = vmatprep.subr.bf16.mxu0 %v5576_v48  ;;  %v5512_v48 = vpack.c.bf16 %v3383_v29, %v3381_v11  ;;  %v3414_v11 = vld [vmem:[#allocation4 + $0xb60] sm:$0xff]  ;;  %v3417_v29 = vld [vmem:[#allocation4 + $0xb88] sm:$0xff] }
0x1629   : > { %5479 = vmatpush1.bf16.msra.mxu1 %v5478_v16  ;;  %v5578_v16 = vpack.c.bf16 %v3608_v51, %v3607_v49  ;;  %v3380_v49 = vld [vmem:[#allocation4 + $0x940] sm:$0xff] }
0x162a   : > { %5481 = vmatprep.subr.bf16.mxu1 %v5480_v59  ;;  %v5580_v59 = vpack.c.bf16 %v3626_v57, %v3625_v56  ;;  %v3382_v51 = vld [vmem:[#allocation4 + $0x960] sm:$0xff]  ;;  %v3385_v56 = vld [vmem:[#allocation4 + $0x988] sm:$0xff] }
0x162b   : > { %5579 = vmatpush3.bf16.msra.mxu0 %v5578_v16  ;;  %v3387_v57 = vld [vmem:[#allocation4 + $0x9a8] sm:$0xff]  ;;  %v5514_v16 = vpack.c.bf16 %v3382_v51, %v3380_v49  ;;  %v3416_v51 = vld [vmem:[#allocation4 + $0xb80] sm:$0xff] }
0x162c   : > { %5581 = vmatprep.subr.bf16.mxu0 %v5580_v59  ;;  %v5516_v59 = vpack.c.bf16 %v3387_v57, %v3385_v56  ;;  %v3418_v56 = vld [vmem:[#allocation4 + $0xba0] sm:$0xff]  ;;  %v3421_v57 = vld [vmem:[#allocation4 + $0xbc8] sm:$0xff] }
0x162d   : > { %5483 = vmatpush1.bf16.msra.mxu1 %v5482_v5  ;;  %v5582_v5 = vpack.c.bf16 %v3610_v60, %v3609_v13  ;;  %v3384_v13 = vld [vmem:[#allocation4 + $0x980] sm:$0xff] }
0x162e   : > { %5485 = vmatprep.subr.bf16.mxu1 %v5484_v6  ;;  %v5584_v6 = vpack.c.bf16 %v3628_v3, %v3627_v0  ;;  %v3386_v60 = vld [vmem:[#allocation4 + $0x9a0] sm:$0xff]  ;;  %v3389_v0 = vld [vmem:[#allocation4 + $0x9c8] sm:$0xff] }
0x162f   : > { %5583 = vmatpush3.bf16.msra.mxu0 %v5582_v5  ;;  %v3391_v3 = vld [vmem:[#allocation4 + $0x9e8] sm:$0xff]  ;;  %v5518_v5 = vpack.c.bf16 %v3386_v60, %v3384_v13  ;;  %v3420_v60 = vld [vmem:[#allocation4 + $0xbc0] sm:$0xff] }
0x1630   : > { %5585 = vmatprep.subr.bf16.mxu0 %v5584_v6  ;;  %v5520_v6 = vpack.c.bf16 %v3391_v3, %v3389_v0  ;;  %v3422_v0 = vld [vmem:[#allocation4 + $0xbe0] sm:$0xff]  ;;  %v3425_v3 = vld [vmem:[#allocation4 + $0xc08] sm:$0xff] }
0x1631   : > { %5487 = vmatpush1.bf16.msra.mxu1 %v5486_v15 }
0x1632   : > { %5489 = vmatprep.subr.bf16.mxu1 %v5488_v17 }
0x1635   : > { %5491 = vmatpush1.bf16.msra.mxu1 %v5490_v21  ;;  %v3364_v21 = vld [vmem:[#allocation4 + $0x840] sm:$0xff] }
0x1636   : > { %5493 = vmatprep.subr.bf16.mxu1 %v5492_v26  ;;  %v6224_v26 = vrot.slane %v6213_v7, %v1946_v35  ;;  %v3373_v35 = vld [vmem:[#allocation4 + $0x8c8] sm:$0xff] }
0x1637   : > { %v5504_v53 = vpack.c.bf16 %v3375_v25, %v3373_v35  ;;  %v5534_v35 = vpack.c.bf16 %v3402_v36, %v3400_v33 }
0x1639   : > { %5495 = vmatpush1.bf16.msra.mxu1 %v5494_v52 }
0x163a   : > { %5497 = vmatprep.subr.bf16.mxu1 %v5496_v1  ;;  %v5498_v1 = vpack.c.bf16 %v3366_v23, %v3364_v21  ;;  %v3392_v21 = vld [vmem:[#allocation4 + $0xa00] sm:$0xff] }
0x163b   : > { %v3394_v23 = vld [vmem:[#allocation4 + $0xa20] sm:$0xff] }
0x163c   : > { %v5526_v43 = vpack.c.bf16 %v3394_v23, %v3392_v21 }
0x16ce   : > { %v3204_v12 = vpop.f32.mrb[38].mxu1  ;;  %v6219_v15 = vpop.f32.mrb[56].mxu0 }
0x16cf   : > { %v3205_v17 = vadd.f32 %v3204_v12, %v3121_v39  ;;  %v3206_v18 = vpop.f32.mrb[39].mxu1  ;;  %v3283_v20 = vpop.f32.mrb[57].mxu0  ;;  %v3393_v12 = vld [vmem:[#allocation4 + $0xa08] sm:$0xff] }
0x16d0   : > { %v3207_v47 = vadd.f32 %v3206_v18, %v3125_v9  ;;  %v3284_v58 = vadd.f32 %v3283_v20, %v6224_v26 }
0x16d1   : > { %v3292_v62 = vmax.f32 %v3205_v17, 0.0  ;;  %v3395_v17 = vld [vmem:[#allocation4 + $0xa28] sm:$0xff] }
0x16d2   : > { %v3293_v52 = vmax.f32 %v3207_v47, 0.0  ;;  %v3210_v54 = vpop.f32.mrb[40].mxu1  ;;  %v6226_v61 = vpop.f32.mrb[58].mxu0  ;;  %v3295_v8 = vmax.f32 %v3284_v58, 0.0  ;;  %v5524_v20 = vpack.c.bf16 %v3395_v17, %v3393_v12  ;;  %v3397_v47 = vld [vmem:[#allocation4 + $0xa48] sm:$0xff]  ;;  %v3424_v12 = vld [vmem:[#allocation4 + $0xc00] sm:$0xff] }
0x16d3   : > { %v3211_v55 = vadd.f32 %v3210_v54, %v3121_v39  ;;  %v3212_v10 = vpop.f32.mrb[41].mxu1  ;;  %v6228_v63 = vpop.f32.mrb[59].mxu0  ;;  %v3388_v39 = vld [vmem:[#allocation4 + $0x9c0] sm:$0xff]  ;;  %v3405_v58 = vld [vmem:[#allocation4 + $0xac8] sm:$0xff] }
0x16d4   : > { %v3213_v28 = vadd.f32 %v3212_v10, %v3125_v9  ;;  %3505 = vmatprep.mubr.f32.mxu1 %v3293_v52  ;;  %v3390_v9 = vld [vmem:[#allocation4 + $0x9e0] sm:$0xff]  ;;  %v5528_v52 = vpack.c.bf16 %v3399_v27, %v3397_v47  ;;  %v3290_v21 = vadd.f32 %v6228_v63, %v6224_v26 }
0x16d5   : > { %3506 = vmatmul.mubr.f32.vlgmr.msra.gmra.mrb[42].mxu1 %v3292_v62  ;;  %v3296_v30 = vmax.f32 %v3211_v55, 0.0  ;;  %v5522_v18 = vpack.c.bf16 %v3390_v9, %v3388_v39  ;;  %v3396_v54 = vld [vmem:[#allocation4 + $0xa40] sm:$0xff]  ;;  %v3401_v62 = vld [vmem:[#allocation4 + $0xa88] sm:$0xff]  ;;  %v3129_v39 = vrot.slane %v6213_v7, %v1942_v31  ;;  %v3611_v31 = vld [vmem:[#allocation2 + $0xd88] sm:$0xff] }
0x16d6   : > { %v3297_v37 = vmax.f32 %v3213_v28, 0.0  ;;  %5499 = vmatpush1.bf16.msra.mxu1 %v5498_v1  ;;  %v3398_v1 = vld [vmem:[#allocation4 + $0xa60] sm:$0xff]  ;;  %v3403_v55 = vld [vmem:[#allocation4 + $0xaa8] sm:$0xff]  ;;  %v3299_v27 = vmax.f32 %v3290_v21, 0.0  ;;  %v3612_v7 = vld [vmem:[#allocation2 + $0xd90] sm:$0xff] }
0x16d7   : > { %5501 = vmatprep.subr.bf16.mxu1 %v5500_v24  ;;  %v5530_v10 = vpack.c.bf16 %v3398_v1, %v3396_v54  ;;  %v5532_v24 = vpack.c.bf16 %v3403_v55, %v3401_v62  ;;  %v3407_v28 = vld [vmem:[#allocation4 + $0xae8] sm:$0xff]  ;;  %v3426_v17 = vld [vmem:[#allocation4 + $0xc20] sm:$0xff]  ;;  %v3288_v47 = vadd.f32 %v6226_v61, %v3129_v39 }
0x16d8   : > { %3511 = vmatprep.mubr.f32.mxu1 %v3297_v37  ;;  %v5536_v25 = vpack.c.bf16 %v3407_v28, %v3405_v58  ;;  %v3404_v37 = vld [vmem:[#allocation4 + $0xac0] sm:$0xff]  ;;  %v3630_v54 = vld [vmem:[#allocation2 + $0xe20] sm:$0xff] }
0x16d9   : > { %3512 = vmatmul.mubr.f32.gmra.mrb[44].mxu1 %v3296_v30  ;;  %v3409_v30 = vld [vmem:[#allocation4 + $0xb08] sm:$0xff]  ;;  %v3298_v50 = vmax.f32 %v3288_v47, 0.0  ;;  %v3613_v1 = vld [vmem:[#allocation2 + $0xd98] sm:$0xff] }
0x16da   : > { %5503 = vmatpush1.bf16.msra.mxu1 %v5502_v2  ;;  %3582 = vmatprep.mubr.f32.mxu1 %v3295_v8  ;;  %v3406_v2 = vld [vmem:[#allocation4 + $0xae0] sm:$0xff]  ;;  %v3614_v62 = vld [vmem:[#allocation2 + $0xda0] sm:$0xff] }
0x16db   : > { %5505 = vmatprep.subr.bf16.mxu1 %v5504_v53  ;;  %v3411_v53 = vld [vmem:[#allocation4 + $0xb28] sm:$0xff]  ;;  %v5538_v22 = vpack.c.bf16 %v3406_v2, %v3404_v37  ;;  %v3408_v8 = vld [vmem:[#allocation4 + $0xb00] sm:$0xff]  ;;  %v5590_v55 = vpack.c.bf16 %v3614_v62, %v3613_v1 }
0x16dc   : > { %v5540_v38 = vpack.c.bf16 %v3411_v53, %v3409_v30  ;;  %v3429_v26 = vld [vmem:[#allocation4 + $0xc40] ss:$8 sm:$0x3] }
0x16dd   : > { %v3434_v61 = vrot.slane %v3429_v26, %v6162_v32  ;;  %v3438_v63 = vrot.slane %v3429_v26, %v6166_v34  ;;  %v3992_v34 = vld [vmem:[#allocation2 + $0xe28] ss:$0 sm:$0xff] }
0x16de   : > { %5507 = vmatpush1.bf16.msra.mxu1 %v5506_v45  ;;  %v3415_v45 = vld [vmem:[#allocation4 + $0xb68] sm:$0xff] }
0x16df   : > { %5509 = vmatprep.subr.bf16.mxu1 %v5508_v19  ;;  %v5542_v19 = vpack.c.bf16 %v3410_v40, %v3408_v8  ;;  %v5544_v4 = vpack.c.bf16 %v3415_v45, %v3413_v44 }
0x16e2   : > { %5511 = vmatpush1.bf16.msra.mxu1 %v5510_v46  ;;  %v3419_v46 = vld [vmem:[#allocation4 + $0xba8] sm:$0xff] }
0x16e3   : > { %5513 = vmatprep.subr.bf16.mxu1 %v5512_v48  ;;  %v5546_v48 = vpack.c.bf16 %v3414_v11, %v3412_v14  ;;  %v5548_v49 = vpack.c.bf16 %v3419_v46, %v3417_v29 }
0x16e6   : > { %5515 = vmatpush1.bf16.msra.mxu1 %v5514_v16  ;;  %v3423_v16 = vld [vmem:[#allocation4 + $0xbe8] sm:$0xff] }
0x16e7   : > { %5517 = vmatprep.subr.bf16.mxu1 %v5516_v59  ;;  %v5550_v59 = vpack.c.bf16 %v3418_v56, %v3416_v51  ;;  %v5552_v13 = vpack.c.bf16 %v3423_v16, %v3421_v57 }
0x16ea   : > { %5519 = vmatpush1.bf16.msra.mxu1 %v5518_v5  ;;  %v3427_v5 = vld [vmem:[#allocation4 + $0xc28] sm:$0xff] }
0x16eb   : > { %5521 = vmatprep.subr.bf16.mxu1 %v5520_v6  ;;  %v5554_v6 = vpack.c.bf16 %v3422_v0, %v3420_v60  ;;  %v5556_v9 = vpack.c.bf16 %v3427_v5, %v3425_v3  ;;  %v3726_v60 = vpop.permute.xlu0 %3725 }
0x16ec   : > { %v3738_v5 = vsel %vm217_vm0, %v5954_v41, %v3726_v60 }
0x16ee   : > { %5523 = vmatpush1.bf16.msra.mxu1 %v5522_v18  ;;  %v5558_v18 = vpack.c.bf16 %v3426_v17, %v3424_v12 }
0x16ef   : > { %5525 = vmatprep.subr.bf16.mxu1 %v5524_v20  ;;  %v3282_v20 = vadd.f32 %v6219_v15, %v3129_v39 }
0x16f1   : > { %v3294_v23 = vmax.f32 %v3282_v20, 0.0 }
0x16f2   : > { %5527 = vmatpush1.bf16.msra.mxu1 %v5526_v43  ;;  %v5586_v43 = vpack.c.bf16 %v3612_v7, %v3611_v31 }
0x16f3   : > { %5529 = vmatprep.subr.bf16.mxu1 %v5528_v52  ;;  %v3629_v52 = vld [vmem:[#allocation2 + $0xe18] sm:$0xff] }
0x16f4   : > { %5587 = vmatpush3.bf16.msra.mxu0 %v5586_v43  ;;  %v5588_v15 = vpack.c.bf16 %v3630_v54, %v3629_v52 }
0x16f6   : > { %5531 = vmatpush1.bf16.msra.mxu1 %v5530_v10  ;;  %5589 = vmatprep.subr.bf16.mxu0 %v5588_v15 }
0x16f7   : > { %5533 = vmatprep.subr.bf16.mxu1 %v5532_v24 }
0x16f8   : > { %5591 = vmatpush3.bf16.msra.mxu0 %v5590_v55 }
0x16fa   : > { %5535 = vmatpush1.bf16.msra.mxu1 %v5534_v35 }
0x16fb   : > { %5537 = vmatprep.subr.bf16.mxu1 %v5536_v25 }
0x16fe   : > { %5539 = vmatpush1.bf16.msra.mxu1 %v5538_v22  ;;  %v3742_v22 = vld [vmem:[#allocation2 + $0xe30] sm:$0xff] }
0x16ff   : > { %5541 = vmatprep.subr.bf16.mxu1 %v5540_v38  ;;  %4799 = vmatprep.subr.mxu0 %v3742_v22 }
0x1702   : > { %5543 = vmatpush1.bf16.msra.mxu1 %v5542_v19 }
0x1703   : > { %5545 = vmatprep.subr.bf16.mxu1 %v5544_v4 }
0x1706   : > { %5547 = vmatpush1.bf16.msra.mxu1 %v5546_v48 }
0x1707   : > { %5549 = vmatprep.subr.bf16.mxu1 %v5548_v49 }
0x170a   : > { %5551 = vmatpush1.bf16.msra.mxu1 %v5550_v59  ;;  %v3724_v59 = vpop.permute.xlu1 %3723 }
0x170b   : > { %5553 = vmatprep.subr.bf16.mxu1 %v5552_v13  ;;  %v3737_v13 = vsel %vm217_vm0, %v5956_v42, %v3724_v59 }
0x170e   : > { %5555 = vmatpush1.bf16.msra.mxu1 %v5554_v6 }
0x170f   : > { %5557 = vmatprep.subr.bf16.mxu1 %v5556_v9 }
0x1712   : > { %5559 = vmatpush1.bf16.msra.mxu1 %v5558_v18 }
0x1715   : > { %3583 = vmatmul.mubr.f32.vlgmr.msra.gmra.mrb[42].mxu1 %v3294_v23 }
0x1716   : > { %3588 = vmatprep.mubr.f32.mxu1 %v3299_v27 }
0x1719   : > { %3589 = vmatmul.mubr.f32.gmra.mrb[44].mxu1 %v3298_v50 }
0x17e8   : > { %v3584_v10 = vpop.f32.mrb[42].mxu1 }
0x17e9   : > { %v5592_v24 = vadd.f32 %v3584_v10, %v3434_v61  ;;  %v3586_v33 = vpop.f32.mrb[43].mxu1 }
0x17ea   : > { %v5593_v36 = vadd.f32 %v3586_v33, %v3438_v63 }
0x17eb   : > { %v3595_v35 = vmax.f32 %v5592_v24, 0.0 }
0x17ec   : > { %v3596_v58 = vmax.f32 %v5593_v36, 0.0  ;;  %v3590_v28 = vpop.f32.mrb[44].mxu1 }
0x17ed   : > { %v5594_v25 = vadd.f32 %v3590_v28, %v3434_v61  ;;  %v3592_v37 = vpop.f32.mrb[45].mxu1 }
0x17ee   : > { %v5595_v2 = vadd.f32 %v3592_v37, %v3438_v63  ;;  %3700 = vmatprep.mubr.f32.mxu0 %v3596_v58 }
0x17ef   : > { %3701 = vmatmul.mubr.f32.vlgmr.msra.gmra.mrb[60].mxu0 %v3595_v35  ;;  %v3597_v53 = vmax.f32 %v5594_v25, 0.0 }
0x17f0   : > { %v3598_v30 = vmax.f32 %v5595_v2, 0.0  ;;  %4800 = vmatpush3.msra.mxu0 %v3742_v22 }
0x17f2   : > { %3705 = vmatprep.mubr.f32.mxu0 %v3598_v30 }
0x17f3   : > { %3706 = vmatmul.mubr.f32.gmra.mrb[62].mxu0 %v3597_v53 }
0x18c2   : > { %v4545_v32 = vpop.f32.mrb[60].mxu0 }
0x18c3   : > { %v4546_v38 = vpop.f32.mrb[61].mxu0 }
0x18c4   : > { %v4547_v8 = vadd.f32 %v4546_v38, %v4545_v32 }
0x18c6   : > { %v3703_v40 = vadd.f32 %v4547_v8, %v3992_v34  ;;  %v4548_v44 = vpop.f32.mrb[62].mxu0 }
0x18c7   : > { %v4549_v45 = vpop.f32.mrb[63].mxu0 }
0x18c8   : > { %v3711_v19 = vsub.f32 0.0, %v3703_v40  ;;  %v4550_v4 = vadd.f32 %v4549_v45, %v4548_v44 }
0x18ca   : > { %v3713_v14 = vmul.f32 1.442695, %v3711_v19  ;;  %v3708_v11 = vadd.f32 %v4550_v4, %v3992_v34 }
0x18cc   : > { %5647 = vpow2.f32 %v3713_v14  ;;  %v3712_v29 = vsub.f32 0.0, %v3708_v11 }
0x18ce   : > { %v3715_v46 = vmul.f32 1.442695, %v3712_v29 }
0x18d0   : > { %5649 = vpow2.f32 %v3715_v46 }
0x18d6   : > { %v5648_v48 = vpop.eup %5647 }
0x18d7   : > { %v3717_v49 = vadd.f32 1.0, %v5648_v48 }
0x18d9   : > { %5651 = vrcp.f32 %v3717_v49 }
0x18da   : > { %v5650_v51 = vpop.eup %5649 }
0x18db   : > { %v3718_v56 = vadd.f32 1.0, %v5650_v51 }
0x18dd   : > { %5653 = vrcp.f32 %v3718_v56 }
0x18e3   : > { %v5652_v57 = vpop.eup %5651 }
0x18e4   : > { %3731 = vrot.lane.b32.xlu1 %v5652_v57, %s5736_s24 }
0x18e7   : > { %v5654_v16 = vpop.eup %5653 }
0x18e8   : > { %3733 = vrot.lane.b32.xlu0 %v5654_v16, %s5736_s24 }
0x1956   : > { %v3732_v0 = vpop.permute.xlu1 %3731 }
0x1957   : > { %v3740_v3 = vsel %vm3739_vm1, %v3737_v13, %v3732_v0 }
0x1958   : > { %4801 = vmatprep.mubr.msk.f32.mxu0 %vm3743_vm2, %v3740_v3 }
0x195a   : > { %v3734_v6 = vpop.permute.xlu0 %3733 }
0x195b   : > { %v3741_v39 = vsel %vm3739_vm1, %v3738_v5, %v3734_v6 }
0x195c   : > { %4802 = vmatmul.mubr.msk.f32.vlgmr.msra.gmra.mrb[64].mxu0 %vm3743_vm2, %v3741_v39 }
0x1a2f   : > { %v4803_v9 = vpop.f32.mrb[64].mxu0 }
0x1a30   : > { %3826 = vst [vmem:[%s200_s28 + $0x8] sm:$0xff] %v4803_v9  ;;  %v3816_v12 = vpop.f32.mrb[65].mxu0 }
0x1a31   : > { %3825 = vst [vmem:[%s200_s28] sm:$0xff] %v3816_v12 }
0x1a32 PF: > { %s15_s12 = sadd.s32 1, %s5725_s12  }
0x1a33   : > { %p12_p5 = scmp.ge.s32.totalorder %s15_s12, 4  }
0x1a35   :  { %14 = sbr.rel (!%p12_p5) target bundleno = 2 (0x2), region = 74 }
0x1a3c   :  { %3848 = vsyncpa [#allocation3], 1 }
0x1a3d   :  { %3850 = vsyncpa [#allocation3 + $0x1], 1 }
0x1a3e   :  { %3851 = vsyncpa [#allocation5], 1 }

</bundles_post_ra>
